<compile_context>
chip_gen: v5e
topology: v5e:2x2
jax: 0.10.0
libtpu: 0.0.40
codegen_flags: <defaults>
</compile_context>

<pallas_src>
import functools

import jax
import jax.numpy as jnp
from jax.experimental import pallas as pl
from jax.experimental.pallas import tpu as pltpu

EPS = 1e-5
LANE = 128


def _round_up(x, m):
    return (x + m - 1) // m * m


@functools.lru_cache(maxsize=None)
def _vmem_limit_bytes():
    # Generation-aware scoped-VMEM budget: v5e/v6e have 128 MiB physical VMEM,
    # v7x has 64 MiB.  Use ~75% of physical, capped, with a v7x-safe fallback.
    try:
        cap = int(pltpu.get_tpu_info().vmem_capacity_bytes)
    except Exception:
        cap = 64 * 1024 * 1024
    return max(32 * 1024 * 1024, min(cap * 3 // 4, 100 * 1024 * 1024))


def _pick_row_tile(h, width, dilation, c_in, c_out):
    # Largest row tile dividing H and a multiple of `dilation` whose conv3x3
    # working set fits the VMEM budget.  Picking the largest tile amortizes the
    # per-grid-step overhead and bounds the 2d/th halo re-read fraction.
    d = dilation
    budget = int(_vmem_limit_bytes() * 0.6)
    fixed = 2 * 2 * 9 * c_in * c_out                       # 3x3 weights, bf16, 2-buffered
    for th in range(h, 0, -1):
        if h % th or th % d:
            continue
        need = (fixed
                + 2 * 2 * th * width * c_in                # input tile  (bf16, 2 buf)
                + 2 * 2 * th * width * c_out               # output tile (bf16, 2 buf)
                + 2 * 2 * 2 * d * width * c_in             # halo tiles  (bf16, 2 buf)
                + 2 * (th + 2 * d) * (width + 2 * d) * c_in  # window scratch (bf16)
                + 4 * th * width * c_out)                  # f32 accumulator headroom
        if need <= budget:
            return th
    # TODO(synk): support H not divisible by a multiple of `dilation` (ragged row tiles).
    raise ValueError(f"no valid row tile for H={h}, W={width}, dilation={dilation}")


def _compiler_params():
    # "parallel" on both axes lets the runtime shard the grid across TensorCores
    # on multi-TC parts (v7x).  TODO(synk): if xprof shows one v7x core idle,
    # switch the batch axis to pltpu.CORE_PARALLEL / an explicit core_map split.
    return pltpu.CompilerParams(
        dimension_semantics=("parallel", "parallel"),
        vmem_limit_bytes=_vmem_limit_bytes(),
    )


# ----------------------------- kernels -----------------------------


def conv1x1_stats_kernel(x_ref, w_ref, y_ref, st_ref):
    # x_ref: (TH, W, CinP) bf16, w_ref: (CinP, CoutP) bf16
    # Note: W should be a multiple of the bf16 sublane packing (16) so the
    # (TH, W, C) -> (TH*W, C) reshape stays a pure view.
    th, wd, cin = x_ref.shape
    coutp = w_ref.shape[1]
    x = x_ref[...].reshape(th * wd, cin)
    y = jnp.dot(x, w_ref[...], preferred_element_type=jnp.float32)   # f32 acc
    y_ref[...] = y.reshape(th, wd, coutp).astype(y_ref.dtype)        # bf16 out
    st_ref[0:1, :] = jnp.sum(y, axis=0, keepdims=True)
    st_ref[1:2, :] = jnp.sum(y * y, axis=0, keepdims=True)


def conv3x3_fused_kernel(xp_ref, xc_ref, xn_ref, sc_ref, sh_ref, w_ref,
                         y_ref, st_ref, win_ref, *, dilation):
    # xp_ref/xn_ref: (d, W, C)  halo rows from prev/next row tile (bf16, pre-BN)
    # xc_ref:        (TH, W, C) current row tile (bf16, pre-BN)
    # sc_ref/sh_ref: (1, C) f32 BN scale/shift of the *previous* layer
    # w_ref:         (3, 3, C, CoutP) bf16 (HWIO)
    # win_ref:       (TH+2d, W+2d, C) bf16 VMEM scratch window
    d = dilation
    th, wd, c = xc_ref.shape
    coutp = w_ref.shape[3]
    i = pl.program_id(1)
    last = pl.num_programs(1) - 1

    sc = sc_ref[...].reshape(1, 1, c)
    sh = sh_ref[...].reshape(1, 1, c)

    def bn_relu(v):
        # Previous layer's BN+ReLU, applied per-region in f32, stored as bf16.
        return jnp.maximum(v.astype(jnp.float32) * sc + sh, 0.0).astype(jnp.bfloat16)

    # --- build the padded window directly in the bf16 VMEM scratch (no concats) ---
    zcol = jnp.zeros((th + 2 * d, d, c), jnp.bfloat16)
    zrow = jnp.zeros((d, wd, c), jnp.bfloat16)
    win_ref[:, 0:d, :] = zcol                      # left conv zero-padding
    win_ref[:, d + wd:, :] = zcol                  # right conv zero-padding
    win_ref[d:d + th, d:d + wd, :] = bn_relu(xc_ref[...])   # current rows

    @pl.when(i > 0)
    def _():
        win_ref[0:d, d:d + wd, :] = bn_relu(xp_ref[...])     # top halo

    @pl.when(i == 0)
    def _():
        win_ref[0:d, d:d + wd, :] = zrow                     # top image border

    @pl.when(i < last)
    def _():
        win_ref[d + th:, d:d + wd, :] = bn_relu(xn_ref[...])  # bottom halo

    @pl.when(i == last)
    def _():
        win_ref[d + th:, d:d + wd, :] = zrow                  # bottom image border

    # --- 9 accumulating K=C matmuls over the dilated taps (views of the scratch).
    # With C padded to 128 this fills a v5e 128x128 MXU; on v6e/v7x the 256-wide
    # MXU is fully used only for real C >= 256.
    acc = jnp.zeros((th * wd, coutp), jnp.float32)
    for ky in range(3):
        for kx in range(3):
            patch = win_ref[ky * d:ky * d + th, kx * d:kx * d + wd, :]
            acc = acc + jnp.dot(patch.reshape(th * wd, c), w_ref[ky, kx],
                                preferred_element_type=jnp.float32)

    y_ref[...] = acc.reshape(th, wd, coutp).astype(y_ref.dtype)       # bf16 out
    st_ref[0:1, :] = jnp.sum(acc, axis=0, keepdims=True)
    st_ref[1:2, :] = jnp.sum(acc * acc, axis=0, keepdims=True)


def bn_relu_kernel(x_ref, sc_ref, sh_ref, o_ref):
    # Final BN+ReLU; the channel un-padding slice is folded into this kernel so
    # only the real Cout channels are written back.
    cout = o_ref.shape[-1]
    x = x_ref[..., :cout].astype(jnp.float32)
    sc = sc_ref[:, :cout].reshape(1, 1, cout)
    sh = sh_ref[:, :cout].reshape(1, 1, cout)
    o_ref[...] = jnp.maximum(x * sc + sh, 0.0).astype(o_ref.dtype)


# --------------------------- pallas_call wrappers ---------------------------


def _call_conv1x1(x, w, th):
    n, h, wd, cin = x.shape
    coutp = w.shape[1]
    gh = h // th
    return pl.pallas_call(
        conv1x1_stats_kernel,
        grid=(n, gh),
        in_specs=[
            pl.BlockSpec((None, th, wd, cin), lambda b, i: (b, i, 0, 0)),
            pl.BlockSpec((cin, coutp), lambda b, i: (0, 0)),
        ],
        out_specs=(
            pl.BlockSpec((None, th, wd, coutp), lambda b, i: (b, i, 0, 0)),
            pl.BlockSpec((None, None, 2, coutp), lambda b, i: (b, i, 0, 0)),
        ),
        out_shape=(
            jax.ShapeDtypeStruct((n, h, wd, coutp), jnp.bfloat16),
            jax.ShapeDtypeStruct((n, gh, 2, coutp), jnp.float32),
        ),
        compiler_params=_compiler_params(),
    )(x, w)


def _call_conv3x3(x, scale, shift, w, th, dilation):
    n, h, wd, c = x.shape
    coutp = w.shape[3]
    d = dilation
    gh = h // th
    r = th // d          # d-row halo blocks per row tile
    hb = h // d          # total d-row blocks along H
    kern = functools.partial(conv3x3_fused_kernel, dilation=d)
    return pl.pallas_call(
        kern,
        grid=(n, gh),
        in_specs=[
            # d-row halo from the previous tile (clamped; zeroed in-kernel at i==0)
            pl.BlockSpec((None, d, wd, c),
                         lambda b, i: (b, jnp.maximum(i * r - 1, 0), 0, 0)),
            # current row tile
            pl.BlockSpec((None, th, wd, c), lambda b, i: (b, i, 0, 0)),
            # d-row halo from the next tile (clamped; zeroed in-kernel at i==last)
            pl.BlockSpec((None, d, wd, c),
                         lambda b, i: (b, jnp.minimum((i + 1) * r, hb - 1), 0, 0)),
            pl.BlockSpec((1, c), lambda b, i: (0, 0)),
            pl.BlockSpec((1, c), lambda b, i: (0, 0)),
            pl.BlockSpec((3, 3, c, coutp), lambda b, i: (0, 0, 0, 0)),
        ],
        out_specs=(
            pl.BlockSpec((None, th, wd, coutp), lambda b, i: (b, i, 0, 0)),
            pl.BlockSpec((None, None, 2, coutp), lambda b, i: (b, i, 0, 0)),
        ),
        out_shape=(
            jax.ShapeDtypeStruct((n, h, wd, coutp), jnp.bfloat16),
            jax.ShapeDtypeStruct((n, gh, 2, coutp), jnp.float32),
        ),
        scratch_shapes=[pltpu.VMEM((th + 2 * d, wd + 2 * d, c), jnp.bfloat16)],
        compiler_params=_compiler_params(),
    )(x, x, x, scale, shift, w)


def _call_bn_relu(x, scale, shift, th, cout):
    n, h, wd, cp = x.shape
    return pl.pallas_call(
        bn_relu_kernel,
        grid=(n, h // th),
        in_specs=[
            pl.BlockSpec((None, th, wd, cp), lambda b, i: (b, i, 0, 0)),
            pl.BlockSpec((1, cp), lambda b, i: (0, 0)),
            pl.BlockSpec((1, cp), lambda b, i: (0, 0)),
        ],
        out_specs=pl.BlockSpec((None, th, wd, cout), lambda b, i: (b, i, 0, 0)),
        out_shape=jax.ShapeDtypeStruct((n, h, wd, cout), jnp.float32),
        compiler_params=_compiler_params(),
    )(x, scale, shift)


def _bn_scale_shift(stats, m, gamma, beta):
    # stats: (N, GH, 2, C) partial [sum, sumsq] per tile -> global mean / biased var.
    s = jnp.sum(stats, axis=(0, 1))            # (2, C) f32
    mean = s[0] / m
    var = s[1] / m - mean * mean
    scale = gamma * jax.lax.rsqrt(var + EPS)
    shift = beta - mean * scale
    return scale.reshape(1, -1), shift.reshape(1, -1)


# ------------------------------- module API -------------------------------


def init_cbblock_params(key, in_channels, out_channels):
    ks = jax.random.split(key, 3)
    p = {
        # Conv biases are intentionally omitted: a per-channel bias added right
        # before training-mode BatchNorm is exactly cancelled by the mean
        # subtraction, so the block's forward output is identical without it.
        "w1": 0.1 * jax.random.normal(ks[0], (in_channels, out_channels), jnp.float32),
        "w2": 0.1 * jax.random.normal(ks[1], (3, 3, out_channels, out_channels), jnp.float32),
        "w3": 0.1 * jax.random.normal(ks[2], (3, 3, out_channels, out_channels), jnp.float32),
    }
    for i in (1, 2, 3):
        p[f"gamma{i}"] = jnp.ones((out_channels,), jnp.float32)
        p[f"beta{i}"] = jnp.zeros((out_channels,), jnp.float32)
    return p


@functools.partial(jax.jit, static_argnames=("dilation", "row_tile"))
def cbblock_forward(x_nchw, params, dilation, row_tile=None):
    n, cin, h, width = x_nchw.shape
    cout = params["w1"].shape[1]
    cin_p = _round_up(cin, LANE)
    cout_p = _round_up(cout, LANE)
    d = dilation
    th = row_tile if row_tile is not None else _pick_row_tile(h, width, d, cout_p, cout_p)
    assert h % th == 0 and th % d == 0, (h, th, d)
    m = float(n * h * width)

    # NCHW -> NHWC, channel-pad to the 128-lane width, bf16 activations (one
    # fused XLA pass).  TODO(synk): read NCHW directly in the conv1x1 kernel.
    x = jnp.transpose(x_nchw, (0, 2, 3, 1)).astype(jnp.bfloat16)
    x = jnp.pad(x, ((0, 0), (0, 0), (0, 0), (0, cin_p - cin)))

    w1 = jnp.pad(params["w1"],
                 ((0, cin_p - cin), (0, cout_p - cout))).astype(jnp.bfloat16)

    def pad_w3x3(w_):  # (3, 3, ci, co) HWIO, channel-padded, bf16
        return jnp.pad(w_, ((0, 0), (0, 0), (0, cout_p - cout),
                            (0, cout_p - cout))).astype(jnp.bfloat16)

    w2, w3 = pad_w3x3(params["w2"]), pad_w3x3(params["w3"])

    def pad_vec(v, fill):
        return jnp.pad(v.astype(jnp.float32), (0, cout_p - cout), constant_values=fill)

    g1, b1 = pad_vec(params["gamma1"], 1.0), pad_vec(params["beta1"], 0.0)
    g2, b2 = pad_vec(params["gamma2"], 1.0), pad_vec(params["beta2"], 0.0)
    g3, b3 = pad_vec(params["gamma3"], 1.0), pad_vec(params["beta3"], 0.0)

    # Stage 1: conv1x1 + batch stats.
    y1, st1 = _call_conv1x1(x, w1, th)
    sc1, sh1 = _bn_scale_shift(st1, m, g1, b1)
    # Stage 2: bn1+relu fused into dilated conv2 + batch stats.
    y2, st2 = _call_conv3x3(y1, sc1, sh1, w2, th, d)
    sc2, sh2 = _bn_scale_shift(st2, m, g2, b2)
    # Stage 3: bn2+relu fused into dilated conv3 + batch stats.
    y3, st3 = _call_conv3x3(y2, sc2, sh2, w3, th, d)
    sc3, sh3 = _bn_scale_shift(st3, m, g3, b3)
    # Stage 4: final bn3+relu (channel un-padding folded into the kernel).
    out = _call_bn_relu(y3, sc3, sh3, th, cout)

    return jnp.transpose(out, (0, 3, 1, 2))


# --------------------------- pure-JAX reference ---------------------------


def reference_forward(x_nchw, params, dilation):
    # Mirrors the kernels' bf16 storage between stages so the comparison only
    # differs by accumulation order.
    d = dilation

    def bf16(v):
        return v.astype(jnp.bfloat16).astype(jnp.float32)

    def scale_shift(y, gamma, beta):
        mean = jnp.mean(y, axis=(0, 1, 2))
        var = jnp.mean(y * y, axis=(0, 1, 2)) - mean * mean
        scale = gamma * jax.lax.rsqrt(var + EPS)
        return scale, beta - mean * scale

    def conv3(a, w):
        return jax.lax.conv_general_dilated(
            bf16(a), bf16(w), window_strides=(1, 1), padding=[(d, d), (d, d)],
            rhs_dilation=(d, d), dimension_numbers=("NHWC", "HWIO", "NHWC"),
            preferred_element_type=jnp.float32)

    x = jnp.transpose(x_nchw, (0, 2, 3, 1)).astype(jnp.float32)
    y1 = jnp.einsum("nhwc,cd->nhwd", bf16(x), bf16(params["w1"]),
                    preferred_element_type=jnp.float32)
    s1, t1 = scale_shift(y1, params["gamma1"], params["beta1"])
    a1 = jnp.maximum(bf16(y1) * s1 + t1, 0.0)

    y2 = conv3(a1, params["w2"])
    s2, t2 = scale_shift(y2, params["gamma2"], params["beta2"])
    a2 = jnp.maximum(bf16(y2) * s2 + t2, 0.0)

    y3 = conv3(a2, params["w3"])
    s3, t3 = scale_shift(y3, params["gamma3"], params["beta3"])
    a3 = jnp.maximum(bf16(y3) * s3 + t3, 0.0)
    return jnp.transpose(a3, (0, 3, 1, 2))


if __name__ == "__main__":
    key = jax.random.PRNGKey(0)
    kx, kp = jax.random.split(key)

    in_channels, out_channels, dilation = 4, 8, 2
    n, h, w = 2, 16, 16
    x = jax.random.normal(kx, (n, in_channels, h, w), dtype=jnp.float32)  # NCHW
    params = init_cbblock_params(kp, in_channels, out_channels)

    # Sanity-check the VMEM-budget-driven row-tile picker (no compile involved).
    th_auto = _pick_row_tile(h, w, dilation, LANE, LANE)
    assert h % th_auto == 0 and th_auto % dilation == 0

    # row_tile=8 -> two row tiles per image: exercises the multi-tile grid and
    # the halo-row exchange / edge masking even at this toy spatial size.
    y = cbblock_forward(x, params, dilation, row_tile=8)
    jax.block_until_ready(y)

    assert y.shape == (n, out_channels, h, w)
    assert bool(jnp.all(y >= 0.0))  # final ReLU

    y_ref = reference_forward(x, params, dilation)
    assert bool(jnp.allclose(y, y_ref, atol=1e-2, rtol=1e-2)), \
        float(jnp.max(jnp.abs(y - y_ref)))

    print("KERNEL_OK")
</pallas_src>

<mosaic_0001>
module attributes {stable_mosaic.version = 11 : i64} {
  func.func @conv1x1_stats_kernel(%arg0: i32, %arg1: i32, %arg2: memref<1x8x16x128xbf16, #tpu.memory_space<vmem>>, %arg3: memref<128x128xbf16, #tpu.memory_space<vmem>>, %arg4: memref<1x8x16x128xbf16, #tpu.memory_space<vmem>>, %arg5: memref<1x1x2x128xf32, #tpu.memory_space<vmem>>) attributes {dimension_semantics = [#tpu.dimension_semantics<parallel>, #tpu.dimension_semantics<parallel>], iteration_bounds = array<i64: 2, 2>, scalar_prefetch = 0 : i64, scratch_operands = 0 : i64, tpu.core_type = #tpu.core_type<tc>, window_params = [{transform_indices = @transform_0, window_bounds = array<i64: 1, 8, 16, 128>}, {pipeline_mode = #tpu.pipeline_mode<synchronous>, transform_indices = @transform_1, window_bounds = array<i64: 128, 128>}, {transform_indices = @transform_2, window_bounds = array<i64: 1, 8, 16, 128>}, {transform_indices = @transform_3, window_bounds = array<i64: 1, 1, 2, 128>}]} {
    %c0 = arith.constant 0 : index
    %c0_0 = arith.constant 0 : index
    %c0_1 = arith.constant 0 : index
    %c0_2 = arith.constant 0 : index
    %0 = vector.load %arg2[%c0, %c0_0, %c0_1, %c0_2] : memref<1x8x16x128xbf16, #tpu.memory_space<vmem>>, vector<1x8x16x128xbf16>
    %1 = vector.shape_cast %0 : vector<1x8x16x128xbf16> to vector<8x16x128xbf16>
    %2 = vector.shape_cast %1 : vector<8x16x128xbf16> to vector<128x128xbf16>
    %c0_3 = arith.constant 0 : index
    %c0_4 = arith.constant 0 : index
    %3 = vector.load %arg3[%c0_3, %c0_4] : memref<128x128xbf16, #tpu.memory_space<vmem>>, vector<128x128xbf16>
    %cst = arith.constant dense<0.000000e+00> : vector<128x128xf32>
    %4 = tpu.matmul %2, %3, %cst {dimension_numbers = #tpu.dot_dimension_numbers<[1], [0], [0], [1], [0, 0, 1, 1], [], []>} : vector<128x128xbf16>, vector<128x128xbf16>, vector<128x128xf32> -> vector<128x128xf32>
    %5 = vector.shape_cast %4 : vector<128x128xf32> to vector<8x16x128xf32>
    %6 = arith.truncf %5 : vector<8x16x128xf32> to vector<8x16x128xbf16>
    %c0_5 = arith.constant 0 : index
    %c0_6 = arith.constant 0 : index
    %c0_7 = arith.constant 0 : index
    %c0_8 = arith.constant 0 : index
    %7 = vector.load %arg4[%c0_5, %c0_6, %c0_7, %c0_8] : memref<1x8x16x128xbf16, #tpu.memory_space<vmem>>, vector<1x8x16x128xbf16>
    %8 = vector.shape_cast %7 : vector<1x8x16x128xbf16> to vector<8x16x128xbf16>
    %9 = vector.shape_cast %6 : vector<8x16x128xbf16> to vector<1x8x16x128xbf16>
    tpu.vector_store %arg4[%c0_5, %c0_6, %c0_7, %c0_8], %9 {strides = array<i32>} : memref<1x8x16x128xbf16, #tpu.memory_space<vmem>>, vector<1x8x16x128xbf16>,
    %cst_9 = arith.constant dense<0.000000e+00> : vector<128xf32>
    %10 = vector.multi_reduction <add>, %4, %cst_9 [0] : vector<128x128xf32> to vector<128xf32>
    %11 = vector.shape_cast %10 : vector<128xf32> to vector<1x128xf32>
    %c0_10 = arith.constant 0 : index
    %c0_11 = arith.constant 0 : index
    %c0_12 = arith.constant 0 : index
    %c0_13 = arith.constant 0 : index
    %12 = vector.load %arg5[%c0_10, %c0_11, %c0_12, %c0_13] : memref<1x1x2x128xf32, #tpu.memory_space<vmem>>, vector<1x1x1x128xf32>
    %13 = vector.shape_cast %12 : vector<1x1x1x128xf32> to vector<1x128xf32>
    %14 = vector.shape_cast %11 : vector<1x128xf32> to vector<1x1x1x128xf32>
    tpu.vector_store %arg5[%c0_10, %c0_11, %c0_12, %c0_13], %14 {strides = array<i32>} : memref<1x1x2x128xf32, #tpu.memory_space<vmem>>, vector<1x1x1x128xf32>,
    %15 = arith.mulf %4, %4 : vector<128x128xf32>
    %cst_14 = arith.constant dense<0.000000e+00> : vector<128xf32>
    %16 = vector.multi_reduction <add>, %15, %cst_14 [0] : vector<128x128xf32> to vector<128xf32>
    %17 = vector.shape_cast %16 : vector<128xf32> to vector<1x128xf32>
    %c0_15 = arith.constant 0 : index
    %c0_16 = arith.constant 0 : index
    %c1 = arith.constant 1 : index
    %c0_17 = arith.constant 0 : index
    %18 = vector.load %arg5[%c0_15, %c0_16, %c1, %c0_17] : memref<1x1x2x128xf32, #tpu.memory_space<vmem>>, vector<1x1x1x128xf32>
    %19 = vector.shape_cast %18 : vector<1x1x1x128xf32> to vector<1x128xf32>
    %20 = vector.shape_cast %17 : vector<1x128xf32> to vector<1x1x1x128xf32>
    tpu.vector_store %arg5[%c0_15, %c0_16, %c1, %c0_17], %20 {strides = array<i32>} : memref<1x1x2x128xf32, #tpu.memory_space<vmem>>, vector<1x1x1x128xf32>,
    return
  }
  func.func @transform_0(%arg0: i32, %arg1: i32) -> (i32, i32, i32, i32) {
    %c0_i32 = arith.constant 0 : i32
    %c0_i32_0 = arith.constant 0 : i32
    %c0_i32_1 = arith.constant 0 : i32
    return %arg0, %arg1, %c0_i32, %c0_i32_0 : i32, i32, i32, i32
  }
  func.func @transform_1(%arg0: i32, %arg1: i32) -> (i32, i32) {
    %c0_i32 = arith.constant 0 : i32
    %c0_i32_0 = arith.constant 0 : i32
    %c0_i32_1 = arith.constant 0 : i32
    return %c0_i32, %c0_i32_0 : i32, i32
  }
  func.func @transform_2(%arg0: i32, %arg1: i32) -> (i32, i32, i32, i32) {
    %c0_i32 = arith.constant 0 : i32
    %c0_i32_0 = arith.constant 0 : i32
    %c0_i32_1 = arith.constant 0 : i32
    return %arg0, %arg1, %c0_i32, %c0_i32_0 : i32, i32, i32, i32
  }
  func.func @transform_3(%arg0: i32, %arg1: i32) -> (i32, i32, i32, i32) {
    %c0_i32 = arith.constant 0 : i32
    %c0_i32_0 = arith.constant 0 : i32
    %c0_i32_1 = arith.constant 0 : i32
    return %arg0, %arg1, %c0_i32, %c0_i32_0 : i32, i32, i32, i32
  }
}

module attributes {stable_mosaic.version = 11 : i64} {
  func.func @bn_relu_kernel(%arg0: i32, %arg1: i32, %arg2: memref<1x8x16x128xbf16, #tpu.memory_space<vmem>>, %arg3: memref<1x128xf32, #tpu.memory_space<vmem>>, %arg4: memref<1x128xf32, #tpu.memory_space<vmem>>, %arg5: memref<1x8x16x8xf32, #tpu.memory_space<vmem>>) attributes {dimension_semantics = [#tpu.dimension_semantics<parallel>, #tpu.dimension_semantics<parallel>], iteration_bounds = array<i64: 2, 2>, scalar_prefetch = 0 : i64, scratch_operands = 0 : i64, tpu.core_type = #tpu.core_type<tc>, window_params = [{transform_indices = @transform_0, window_bounds = array<i64: 1, 8, 16, 128>}, {pipeline_mode = #tpu.pipeline_mode<synchronous>, transform_indices = @transform_1, window_bounds = array<i64: 1, 128>}, {pipeline_mode = #tpu.pipeline_mode<synchronous>, transform_indices = @transform_2, window_bounds = array<i64: 1, 128>}, {transform_indices = @transform_3, window_bounds = array<i64: 1, 8, 16, 8>}]} {
    %c0 = arith.constant 0 : index
    %c0_0 = arith.constant 0 : index
    %c0_1 = arith.constant 0 : index
    %c0_2 = arith.constant 0 : index
    %0 = vector.load %arg2[%c0, %c0_0, %c0_1, %c0_2] : memref<1x8x16x128xbf16, #tpu.memory_space<vmem>>, vector<1x8x16x8xbf16>
    %1 = vector.shape_cast %0 : vector<1x8x16x8xbf16> to vector<8x16x8xbf16>
    %2 = arith.extf %1 : vector<8x16x8xbf16> to vector<8x16x8xf32>
    %c0_3 = arith.constant 0 : index
    %c0_4 = arith.constant 0 : index
    %3 = vector.load %arg3[%c0_3, %c0_4] : memref<1x128xf32, #tpu.memory_space<vmem>>, vector<1x8xf32>
    %4 = vector.shape_cast %3 : vector<1x8xf32> to vector<1x1x8xf32>
    %c0_5 = arith.constant 0 : index
    %c0_6 = arith.constant 0 : index
    %5 = vector.load %arg4[%c0_5, %c0_6] : memref<1x128xf32, #tpu.memory_space<vmem>>, vector<1x8xf32>
    %6 = vector.shape_cast %5 : vector<1x8xf32> to vector<1x1x8xf32>
    %7 = vector.broadcast %4 : vector<1x1x8xf32> to vector<8x16x8xf32>
    %8 = arith.mulf %2, %7 : vector<8x16x8xf32>
    %9 = vector.broadcast %6 : vector<1x1x8xf32> to vector<8x16x8xf32>
    %10 = arith.addf %8, %9 : vector<8x16x8xf32>
    %cst = arith.constant 0.000000e+00 : f32
    %11 = vector.broadcast %cst : f32 to vector<8x16x8xf32>
    %12 = arith.maximumf %10, %11 : vector<8x16x8xf32>
    %c0_7 = arith.constant 0 : index
    %c0_8 = arith.constant 0 : index
    %c0_9 = arith.constant 0 : index
    %c0_10 = arith.constant 0 : index
    %13 = vector.load %arg5[%c0_7, %c0_8, %c0_9, %c0_10] : memref<1x8x16x8xf32, #tpu.memory_space<vmem>>, vector<1x8x16x8xf32>
    %14 = vector.shape_cast %13 : vector<1x8x16x8xf32> to vector<8x16x8xf32>
    %15 = vector.shape_cast %12 : vector<8x16x8xf32> to vector<1x8x16x8xf32>
    tpu.vector_store %arg5[%c0_7, %c0_8, %c0_9, %c0_10], %15 {strides = array<i32>} : memref<1x8x16x8xf32, #tpu.memory_space<vmem>>, vector<1x8x16x8xf32>,
    return
  }
  func.func @transform_0(%arg0: i32, %arg1: i32) -> (i32, i32, i32, i32) {
    %c0_i32 = arith.constant 0 : i32
    %c0_i32_0 = arith.constant 0 : i32
    %c0_i32_1 = arith.constant 0 : i32
    return %arg0, %arg1, %c0_i32, %c0_i32_0 : i32, i32, i32, i32
  }
  func.func @transform_1(%arg0: i32, %arg1: i32) -> (i32, i32) {
    %c0_i32 = arith.constant 0 : i32
    %c0_i32_0 = arith.constant 0 : i32
    %c0_i32_1 = arith.constant 0 : i32
    return %c0_i32, %c0_i32_0 : i32, i32
  }
  func.func @transform_2(%arg0: i32, %arg1: i32) -> (i32, i32) {
    %c0_i32 = arith.constant 0 : i32
    %c0_i32_0 = arith.constant 0 : i32
    %c0_i32_1 = arith.constant 0 : i32
    return %c0_i32, %c0_i32_0 : i32, i32
  }
  func.func @transform_3(%arg0: i32, %arg1: i32) -> (i32, i32, i32, i32) {
    %c0_i32 = arith.constant 0 : i32
    %c0_i32_0 = arith.constant 0 : i32
    %c0_i32_1 = arith.constant 0 : i32
    return %arg0, %arg1, %c0_i32, %c0_i32_0 : i32, i32, i32, i32
  }
}

module attributes {stable_mosaic.version = 11 : i64} {
  func.func @conv3x3_fused_kernel(%arg0: i32, %arg1: i32, %arg2: memref<1x2x16x128xbf16, #tpu.memory_space<vmem>>, %arg3: memref<1x8x16x128xbf16, #tpu.memory_space<vmem>>, %arg4: memref<1x2x16x128xbf16, #tpu.memory_space<vmem>>, %arg5: memref<1x128xf32, #tpu.memory_space<vmem>>, %arg6: memref<1x128xf32, #tpu.memory_space<vmem>>, %arg7: memref<3x3x128x128xbf16, #tpu.memory_space<vmem>>, %arg8: memref<1x8x16x128xbf16, #tpu.memory_space<vmem>>, %arg9: memref<1x1x2x128xf32, #tpu.memory_space<vmem>>, %arg10: memref<12x20x128xbf16, #tpu.memory_space<vmem>>) attributes {dimension_semantics = [#tpu.dimension_semantics<parallel>, #tpu.dimension_semantics<parallel>], iteration_bounds = array<i64: 2, 2>, scalar_prefetch = 0 : i64, scratch_operands = 1 : i64, tpu.core_type = #tpu.core_type<tc>, window_params = [{transform_indices = @transform_0, window_bounds = array<i64: 1, 2, 16, 128>}, {transform_indices = @transform_1, window_bounds = array<i64: 1, 8, 16, 128>}, {transform_indices = @transform_2, window_bounds = array<i64: 1, 2, 16, 128>}, {pipeline_mode = #tpu.pipeline_mode<synchronous>, transform_indices = @transform_3, window_bounds = array<i64: 1, 128>}, {pipeline_mode = #tpu.pipeline_mode<synchronous>, transform_indices = @transform_4, window_bounds = array<i64: 1, 128>}, {pipeline_mode = #tpu.pipeline_mode<synchronous>, transform_indices = @transform_5, window_bounds = array<i64: 3, 3, 128, 128>}, {transform_indices = @transform_6, window_bounds = array<i64: 1, 8, 16, 128>}, {transform_indices = @transform_7, window_bounds = array<i64: 1, 1, 2, 128>}]} {
    %c0 = arith.constant 0 : index
    %c0_0 = arith.constant 0 : index
    %0 = vector.load %arg5[%c0, %c0_0] : memref<1x128xf32, #tpu.memory_space<vmem>>, vector<1x128xf32>
    %1 = vector.shape_cast %0 : vector<1x128xf32> to vector<1x1x128xf32>
    %c0_1 = arith.constant 0 : index
    %c0_2 = arith.constant 0 : index
    %2 = vector.load %arg6[%c0_1, %c0_2] : memref<1x128xf32, #tpu.memory_space<vmem>>, vector<1x128xf32>
    %3 = vector.shape_cast %2 : vector<1x128xf32> to vector<1x1x128xf32>
    %cst = arith.constant 0.000000e+00 : bf16
    %4 = vector.broadcast %cst : bf16 to vector<12x2x128xbf16>
    %cst_3 = arith.constant 0.000000e+00 : bf16
    %5 = vector.broadcast %cst_3 : bf16 to vector<2x16x128xbf16>
    %c0_4 = arith.constant 0 : index
    %c0_5 = arith.constant 0 : index
    %c0_6 = arith.constant 0 : index
    %6 = vector.load %arg10[%c0_4, %c0_5, %c0_6] : memref<12x20x128xbf16, #tpu.memory_space<vmem>>, vector<12x2x128xbf16>
    tpu.vector_store %arg10[%c0_4, %c0_5, %c0_6], %4 {strides = array<i32>} : memref<12x20x128xbf16, #tpu.memory_space<vmem>>, vector<12x2x128xbf16>,
    %c0_7 = arith.constant 0 : index
    %c18 = arith.constant 18 : index
    %c0_8 = arith.constant 0 : index
    %7 = vector.load %arg10[%c0_7, %c18, %c0_8] : memref<12x20x128xbf16, #tpu.memory_space<vmem>>, vector<12x2x128xbf16>
    tpu.vector_store %arg10[%c0_7, %c18, %c0_8], %4 {strides = array<i32>} : memref<12x20x128xbf16, #tpu.memory_space<vmem>>, vector<12x2x128xbf16>,
    %c0_9 = arith.constant 0 : index
    %c0_10 = arith.constant 0 : index
    %c0_11 = arith.constant 0 : index
    %c0_12 = arith.constant 0 : index
    %8 = vector.load %arg3[%c0_9, %c0_10, %c0_11, %c0_12] : memref<1x8x16x128xbf16, #tpu.memory_space<vmem>>, vector<1x8x16x128xbf16>
    %9 = vector.shape_cast %8 : vector<1x8x16x128xbf16> to vector<8x16x128xbf16>
    %10 = arith.extf %9 : vector<8x16x128xbf16> to vector<8x16x128xf32>
    %11 = vector.broadcast %1 : vector<1x1x128xf32> to vector<8x16x128xf32>
    %12 = arith.mulf %10, %11 : vector<8x16x128xf32>
    %13 = vector.broadcast %3 : vector<1x1x128xf32> to vector<8x16x128xf32>
    %14 = arith.addf %12, %13 : vector<8x16x128xf32>
    %cst_13 = arith.constant 0.000000e+00 : f32
    %15 = vector.broadcast %cst_13 : f32 to vector<8x16x128xf32>
    %16 = arith.maximumf %14, %15 : vector<8x16x128xf32>
    %17 = arith.truncf %16 : vector<8x16x128xf32> to vector<8x16x128xbf16>
    %c2 = arith.constant 2 : index
    %c2_14 = arith.constant 2 : index
    %c0_15 = arith.constant 0 : index
    %18 = vector.load %arg10[%c2, %c2_14, %c0_15] : memref<12x20x128xbf16, #tpu.memory_space<vmem>>, vector<8x16x128xbf16>
    tpu.vector_store %arg10[%c2, %c2_14, %c0_15], %17 {strides = array<i32>} : memref<12x20x128xbf16, #tpu.memory_space<vmem>>, vector<8x16x128xbf16>,
    %c0_i32 = arith.constant 0 : i32
    %19 = arith.cmpi sgt, %arg1, %c0_i32 : i32
    %20 = arith.extui %19 : i1 to i32
    %c0_i32_16 = arith.constant 0 : i32
    %21 = arith.cmpi ne, %20, %c0_i32_16 : i32
    scf.if %21 {
      %c0_107 = arith.constant 0 : index
      %c0_108 = arith.constant 0 : index
      %c0_109 = arith.constant 0 : index
      %c0_110 = arith.constant 0 : index
      %102 = vector.load %arg2[%c0_107, %c0_108, %c0_109, %c0_110] : memref<1x2x16x128xbf16, #tpu.memory_space<vmem>>, vector<1x2x16x128xbf16>
      %103 = vector.shape_cast %102 : vector<1x2x16x128xbf16> to vector<2x16x128xbf16>
      %104 = arith.extf %103 : vector<2x16x128xbf16> to vector<2x16x128xf32>
      %105 = vector.broadcast %1 : vector<1x1x128xf32> to vector<2x16x128xf32>
      %106 = arith.mulf %104, %105 : vector<2x16x128xf32>
      %107 = vector.broadcast %3 : vector<1x1x128xf32> to vector<2x16x128xf32>
      %108 = arith.addf %106, %107 : vector<2x16x128xf32>
      %cst_111 = arith.constant 0.000000e+00 : f32
      %109 = vector.broadcast %cst_111 : f32 to vector<2x16x128xf32>
      %110 = arith.maximumf %108, %109 : vector<2x16x128xf32>
      %111 = arith.truncf %110 : vector<2x16x128xf32> to vector<2x16x128xbf16>
      %c0_112 = arith.constant 0 : index
      %c2_113 = arith.constant 2 : index
      %c0_114 = arith.constant 0 : index
      %112 = vector.load %arg10[%c0_112, %c2_113, %c0_114] : memref<12x20x128xbf16, #tpu.memory_space<vmem>>, vector<2x16x128xbf16>
      tpu.vector_store %arg10[%c0_112, %c2_113, %c0_114], %111 {strides = array<i32>} : memref<12x20x128xbf16, #tpu.memory_space<vmem>>, vector<2x16x128xbf16>,
    } else {
    }
    %c0_i32_17 = arith.constant 0 : i32
    %22 = arith.cmpi eq, %arg1, %c0_i32_17 : i32
    %23 = arith.extui %22 : i1 to i32
    %c0_i32_18 = arith.constant 0 : i32
    %24 = arith.cmpi ne, %23, %c0_i32_18 : i32
    scf.if %24 {
      %c0_107 = arith.constant 0 : index
      %c2_108 = arith.constant 2 : index
      %c0_109 = arith.constant 0 : index
      %102 = vector.load %arg10[%c0_107, %c2_108, %c0_109] : memref<12x20x128xbf16, #tpu.memory_space<vmem>>, vector<2x16x128xbf16>
      tpu.vector_store %arg10[%c0_107, %c2_108, %c0_109], %5 {strides = array<i32>} : memref<12x20x128xbf16, #tpu.memory_space<vmem>>, vector<2x16x128xbf16>,
    } else {
    }
    %c1_i32 = arith.constant 1 : i32
    %25 = arith.cmpi slt, %arg1, %c1_i32 : i32
    %26 = arith.extui %25 : i1 to i32
    %c0_i32_19 = arith.constant 0 : i32
    %27 = arith.cmpi ne, %26, %c0_i32_19 : i32
    scf.if %27 {
      %c0_107 = arith.constant 0 : index
      %c0_108 = arith.constant 0 : index
      %c0_109 = arith.constant 0 : index
      %c0_110 = arith.constant 0 : index
      %102 = vector.load %arg4[%c0_107, %c0_108, %c0_109, %c0_110] : memref<1x2x16x128xbf16, #tpu.memory_space<vmem>>, vector<1x2x16x128xbf16>
      %103 = vector.shape_cast %102 : vector<1x2x16x128xbf16> to vector<2x16x128xbf16>
      %104 = arith.extf %103 : vector<2x16x128xbf16> to vector<2x16x128xf32>
      %105 = vector.broadcast %1 : vector<1x1x128xf32> to vector<2x16x128xf32>
      %106 = arith.mulf %104, %105 : vector<2x16x128xf32>
      %107 = vector.broadcast %3 : vector<1x1x128xf32> to vector<2x16x128xf32>
      %108 = arith.addf %106, %107 : vector<2x16x128xf32>
      %cst_111 = arith.constant 0.000000e+00 : f32
      %109 = vector.broadcast %cst_111 : f32 to vector<2x16x128xf32>
      %110 = arith.maximumf %108, %109 : vector<2x16x128xf32>
      %111 = arith.truncf %110 : vector<2x16x128xf32> to vector<2x16x128xbf16>
      %c10 = arith.constant 10 : index
      %c2_112 = arith.constant 2 : index
      %c0_113 = arith.constant 0 : index
      %112 = vector.load %arg10[%c10, %c2_112, %c0_113] : memref<12x20x128xbf16, #tpu.memory_space<vmem>>, vector<2x16x128xbf16>
      tpu.vector_store %arg10[%c10, %c2_112, %c0_113], %111 {strides = array<i32>} : memref<12x20x128xbf16, #tpu.memory_space<vmem>>, vector<2x16x128xbf16>,
    } else {
    }
    %c1_i32_20 = arith.constant 1 : i32
    %28 = arith.cmpi eq, %arg1, %c1_i32_20 : i32
    %29 = arith.extui %28 : i1 to i32
    %c0_i32_21 = arith.constant 0 : i32
    %30 = arith.cmpi ne, %29, %c0_i32_21 : i32
    scf.if %30 {
      %c10 = arith.constant 10 : index
      %c2_107 = arith.constant 2 : index
      %c0_108 = arith.constant 0 : index
      %102 = vector.load %arg10[%c10, %c2_107, %c0_108] : memref<12x20x128xbf16, #tpu.memory_space<vmem>>, vector<2x16x128xbf16>
      tpu.vector_store %arg10[%c10, %c2_107, %c0_108], %5 {strides = array<i32>} : memref<12x20x128xbf16, #tpu.memory_space<vmem>>, vector<2x16x128xbf16>,
    } else {
    }
    %cst_22 = arith.constant 0.000000e+00 : f32
    %31 = vector.broadcast %cst_22 : f32 to vector<128x128xf32>
    %c0_23 = arith.constant 0 : index
    %c0_24 = arith.constant 0 : index
    %c0_25 = arith.constant 0 : index
    %32 = vector.load %arg10[%c0_23, %c0_24, %c0_25] : memref<12x20x128xbf16, #tpu.memory_space<vmem>>, vector<8x16x128xbf16>
    %33 = vector.shape_cast %32 : vector<8x16x128xbf16> to vector<128x128xbf16>
    %c0_26 = arith.constant 0 : index
    %c0_27 = arith.constant 0 : index
    %c0_28 = arith.constant 0 : index
    %c0_29 = arith.constant 0 : index
    %34 = vector.load %arg7[%c0_26, %c0_27, %c0_28, %c0_29] : memref<3x3x128x128xbf16, #tpu.memory_space<vmem>>, vector<1x1x128x128xbf16>
    %35 = vector.shape_cast %34 : vector<1x1x128x128xbf16> to vector<128x128xbf16>
    %cst_30 = arith.constant dense<0.000000e+00> : vector<128x128xf32>
    %36 = tpu.matmul %33, %35, %cst_30 {dimension_numbers = #tpu.dot_dimension_numbers<[1], [0], [0], [1], [0, 0, 1, 1], [], []>} : vector<128x128xbf16>, vector<128x128xbf16>, vector<128x128xf32> -> vector<128x128xf32>
    %37 = arith.addf %31, %36 : vector<128x128xf32>
    %c0_31 = arith.constant 0 : index
    %c2_32 = arith.constant 2 : index
    %c0_33 = arith.constant 0 : index
    %38 = vector.load %arg10[%c0_31, %c2_32, %c0_33] : memref<12x20x128xbf16, #tpu.memory_space<vmem>>, vector<8x16x128xbf16>
    %39 = vector.shape_cast %38 : vector<8x16x128xbf16> to vector<128x128xbf16>
    %c0_34 = arith.constant 0 : index
    %c1 = arith.constant 1 : index
    %c0_35 = arith.constant 0 : index
    %c0_36 = arith.constant 0 : index
    %40 = vector.load %arg7[%c0_34, %c1, %c0_35, %c0_36] : memref<3x3x128x128xbf16, #tpu.memory_space<vmem>>, vector<1x1x128x128xbf16>
    %41 = vector.shape_cast %40 : vector<1x1x128x128xbf16> to vector<128x128xbf16>
    %cst_37 = arith.constant dense<0.000000e+00> : vector<128x128xf32>
    %42 = tpu.matmul %39, %41, %cst_37 {dimension_numbers = #tpu.dot_dimension_numbers<[1], [0], [0], [1], [0, 0, 1, 1], [], []>} : vector<128x128xbf16>, vector<128x128xbf16>, vector<128x128xf32> -> vector<128x128xf32>
    %43 = arith.addf %37, %42 : vector<128x128xf32>
    %c0_38 = arith.constant 0 : index
    %c4 = arith.constant 4 : index
    %c0_39 = arith.constant 0 : index
    %44 = vector.load %arg10[%c0_38, %c4, %c0_39] : memref<12x20x128xbf16, #tpu.memory_space<vmem>>, vector<8x16x128xbf16>
    %45 = vector.shape_cast %44 : vector<8x16x128xbf16> to vector<128x128xbf16>
    %c0_40 = arith.constant 0 : index
    %c2_41 = arith.constant 2 : index
    %c0_42 = arith.constant 0 : index
    %c0_43 = arith.constant 0 : index
    %46 = vector.load %arg7[%c0_40, %c2_41, %c0_42, %c0_43] : memref<3x3x128x128xbf16, #tpu.memory_space<vmem>>, vector<1x1x128x128xbf16>
    %47 = vector.shape_cast %46 : vector<1x1x128x128xbf16> to vector<128x128xbf16>
    %cst_44 = arith.constant dense<0.000000e+00> : vector<128x128xf32>
    %48 = tpu.matmul %45, %47, %cst_44 {dimension_numbers = #tpu.dot_dimension_numbers<[1], [0], [0], [1], [0, 0, 1, 1], [], []>} : vector<128x128xbf16>, vector<128x128xbf16>, vector<128x128xf32> -> vector<128x128xf32>
    %49 = arith.addf %43, %48 : vector<128x128xf32>
    %c2_45 = arith.constant 2 : index
    %c0_46 = arith.constant 0 : index
    %c0_47 = arith.constant 0 : index
    %50 = vector.load %arg10[%c2_45, %c0_46, %c0_47] : memref<12x20x128xbf16, #tpu.memory_space<vmem>>, vector<8x16x128xbf16>
    %51 = vector.shape_cast %50 : vector<8x16x128xbf16> to vector<128x128xbf16>
    %c1_48 = arith.constant 1 : index
    %c0_49 = arith.constant 0 : index
    %c0_50 = arith.constant 0 : index
    %c0_51 = arith.constant 0 : index
    %52 = vector.load %arg7[%c1_48, %c0_49, %c0_50, %c0_51] : memref<3x3x128x128xbf16, #tpu.memory_space<vmem>>, vector<1x1x128x128xbf16>
    %53 = vector.shape_cast %52 : vector<1x1x128x128xbf16> to vector<128x128xbf16>
    %cst_52 = arith.constant dense<0.000000e+00> : vector<128x128xf32>
    %54 = tpu.matmul %51, %53, %cst_52 {dimension_numbers = #tpu.dot_dimension_numbers<[1], [0], [0], [1], [0, 0, 1, 1], [], []>} : vector<128x128xbf16>, vector<128x128xbf16>, vector<128x128xf32> -> vector<128x128xf32>
    %55 = arith.addf %49, %54 : vector<128x128xf32>
    %c2_53 = arith.constant 2 : index
    %c2_54 = arith.constant 2 : index
    %c0_55 = arith.constant 0 : index
    %56 = vector.load %arg10[%c2_53, %c2_54, %c0_55] : memref<12x20x128xbf16, #tpu.memory_space<vmem>>, vector<8x16x128xbf16>
    %57 = vector.shape_cast %56 : vector<8x16x128xbf16> to vector<128x128xbf16>
    %c1_56 = arith.constant 1 : index
    %c1_57 = arith.constant 1 : index
    %c0_58 = arith.constant 0 : index
    %c0_59 = arith.constant 0 : index
    %58 = vector.load %arg7[%c1_56, %c1_57, %c0_58, %c0_59] : memref<3x3x128x128xbf16, #tpu.memory_space<vmem>>, vector<1x1x128x128xbf16>
    %59 = vector.shape_cast %58 : vector<1x1x128x128xbf16> to vector<128x128xbf16>
    %cst_60 = arith.constant dense<0.000000e+00> : vector<128x128xf32>
    %60 = tpu.matmul %57, %59, %cst_60 {dimension_numbers = #tpu.dot_dimension_numbers<[1], [0], [0], [1], [0, 0, 1, 1], [], []>} : vector<128x128xbf16>, vector<128x128xbf16>, vector<128x128xf32> -> vector<128x128xf32>
    %61 = arith.addf %55, %60 : vector<128x128xf32>
    %c2_61 = arith.constant 2 : index
    %c4_62 = arith.constant 4 : index
    %c0_63 = arith.constant 0 : index
    %62 = vector.load %arg10[%c2_61, %c4_62, %c0_63] : memref<12x20x128xbf16, #tpu.memory_space<vmem>>, vector<8x16x128xbf16>
    %63 = vector.shape_cast %62 : vector<8x16x128xbf16> to vector<128x128xbf16>
    %c1_64 = arith.constant 1 : index
    %c2_65 = arith.constant 2 : index
    %c0_66 = arith.constant 0 : index
    %c0_67 = arith.constant 0 : index
    %64 = vector.load %arg7[%c1_64, %c2_65, %c0_66, %c0_67] : memref<3x3x128x128xbf16, #tpu.memory_space<vmem>>, vector<1x1x128x128xbf16>
    %65 = vector.shape_cast %64 : vector<1x1x128x128xbf16> to vector<128x128xbf16>
    %cst_68 = arith.constant dense<0.000000e+00> : vector<128x128xf32>
    %66 = tpu.matmul %63, %65, %cst_68 {dimension_numbers = #tpu.dot_dimension_numbers<[1], [0], [0], [1], [0, 0, 1, 1], [], []>} : vector<128x128xbf16>, vector<128x128xbf16>, vector<128x128xf32> -> vector<128x128xf32>
    %67 = arith.addf %61, %66 : vector<128x128xf32>
    %c4_69 = arith.constant 4 : index
    %c0_70 = arith.constant 0 : index
    %c0_71 = arith.constant 0 : index
    %68 = vector.load %arg10[%c4_69, %c0_70, %c0_71] : memref<12x20x128xbf16, #tpu.memory_space<vmem>>, vector<8x16x128xbf16>
    %69 = vector.shape_cast %68 : vector<8x16x128xbf16> to vector<128x128xbf16>
    %c2_72 = arith.constant 2 : index
    %c0_73 = arith.constant 0 : index
    %c0_74 = arith.constant 0 : index
    %c0_75 = arith.constant 0 : index
    %70 = vector.load %arg7[%c2_72, %c0_73, %c0_74, %c0_75] : memref<3x3x128x128xbf16, #tpu.memory_space<vmem>>, vector<1x1x128x128xbf16>
    %71 = vector.shape_cast %70 : vector<1x1x128x128xbf16> to vector<128x128xbf16>
    %cst_76 = arith.constant dense<0.000000e+00> : vector<128x128xf32>
    %72 = tpu.matmul %69, %71, %cst_76 {dimension_numbers = #tpu.dot_dimension_numbers<[1], [0], [0], [1], [0, 0, 1, 1], [], []>} : vector<128x128xbf16>, vector<128x128xbf16>, vector<128x128xf32> -> vector<128x128xf32>
    %73 = arith.addf %67, %72 : vector<128x128xf32>
    %c4_77 = arith.constant 4 : index
    %c2_78 = arith.constant 2 : index
    %c0_79 = arith.constant 0 : index
    %74 = vector.load %arg10[%c4_77, %c2_78, %c0_79] : memref<12x20x128xbf16, #tpu.memory_space<vmem>>, vector<8x16x128xbf16>
    %75 = vector.shape_cast %74 : vector<8x16x128xbf16> to vector<128x128xbf16>
    %c2_80 = arith.constant 2 : index
    %c1_81 = arith.constant 1 : index
    %c0_82 = arith.constant 0 : index
    %c0_83 = arith.constant 0 : index
    %76 = vector.load %arg7[%c2_80, %c1_81, %c0_82, %c0_83] : memref<3x3x128x128xbf16, #tpu.memory_space<vmem>>, vector<1x1x128x128xbf16>
    %77 = vector.shape_cast %76 : vector<1x1x128x128xbf16> to vector<128x128xbf16>
    %cst_84 = arith.constant dense<0.000000e+00> : vector<128x128xf32>
    %78 = tpu.matmul %75, %77, %cst_84 {dimension_numbers = #tpu.dot_dimension_numbers<[1], [0], [0], [1], [0, 0, 1, 1], [], []>} : vector<128x128xbf16>, vector<128x128xbf16>, vector<128x128xf32> -> vector<128x128xf32>
    %79 = arith.addf %73, %78 : vector<128x128xf32>
    %c4_85 = arith.constant 4 : index
    %c4_86 = arith.constant 4 : index
    %c0_87 = arith.constant 0 : index
    %80 = vector.load %arg10[%c4_85, %c4_86, %c0_87] : memref<12x20x128xbf16, #tpu.memory_space<vmem>>, vector<8x16x128xbf16>
    %81 = vector.shape_cast %80 : vector<8x16x128xbf16> to vector<128x128xbf16>
    %c2_88 = arith.constant 2 : index
    %c2_89 = arith.constant 2 : index
    %c0_90 = arith.constant 0 : index
    %c0_91 = arith.constant 0 : index
    %82 = vector.load %arg7[%c2_88, %c2_89, %c0_90, %c0_91] : memref<3x3x128x128xbf16, #tpu.memory_space<vmem>>, vector<1x1x128x128xbf16>
    %83 = vector.shape_cast %82 : vector<1x1x128x128xbf16> to vector<128x128xbf16>
    %cst_92 = arith.constant dense<0.000000e+00> : vector<128x128xf32>
    %84 = tpu.matmul %81, %83, %cst_92 {dimension_numbers = #tpu.dot_dimension_numbers<[1], [0], [0], [1], [0, 0, 1, 1], [], []>} : vector<128x128xbf16>, vector<128x128xbf16>, vector<128x128xf32> -> vector<128x128xf32>
    %85 = arith.addf %79, %84 : vector<128x128xf32>
    %86 = vector.shape_cast %85 : vector<128x128xf32> to vector<8x16x128xf32>
    %87 = arith.truncf %86 : vector<8x16x128xf32> to vector<8x16x128xbf16>
    %c0_93 = arith.constant 0 : index
    %c0_94 = arith.constant 0 : index
    %c0_95 = arith.constant 0 : index
    %c0_96 = arith.constant 0 : index
    %88 = vector.load %arg8[%c0_93, %c0_94, %c0_95, %c0_96] : memref<1x8x16x128xbf16, #tpu.memory_space<vmem>>, vector<1x8x16x128xbf16>
    %89 = vector.shape_cast %88 : vector<1x8x16x128xbf16> to vector<8x16x128xbf16>
    %90 = vector.shape_cast %87 : vector<8x16x128xbf16> to vector<1x8x16x128xbf16>
    tpu.vector_store %arg8[%c0_93, %c0_94, %c0_95, %c0_96], %90 {strides = array<i32>} : memref<1x8x16x128xbf16, #tpu.memory_space<vmem>>, vector<1x8x16x128xbf16>,
    %cst_97 = arith.constant dense<0.000000e+00> : vector<128xf32>
    %91 = vector.multi_reduction <add>, %85, %cst_97 [0] : vector<128x128xf32> to vector<128xf32>
    %92 = vector.shape_cast %91 : vector<128xf32> to vector<1x128xf32>
    %c0_98 = arith.constant 0 : index
    %c0_99 = arith.constant 0 : index
    %c0_100 = arith.constant 0 : index
    %c0_101 = arith.constant 0 : index
    %93 = vector.load %arg9[%c0_98, %c0_99, %c0_100, %c0_101] : memref<1x1x2x128xf32, #tpu.memory_space<vmem>>, vector<1x1x1x128xf32>
    %94 = vector.shape_cast %93 : vector<1x1x1x128xf32> to vector<1x128xf32>
    %95 = vector.shape_cast %92 : vector<1x128xf32> to vector<1x1x1x128xf32>
    tpu.vector_store %arg9[%c0_98, %c0_99, %c0_100, %c0_101], %95 {strides = array<i32>} : memref<1x1x2x128xf32, #tpu.memory_space<vmem>>, vector<1x1x1x128xf32>,
    %96 = arith.mulf %85, %85 : vector<128x128xf32>
    %cst_102 = arith.constant dense<0.000000e+00> : vector<128xf32>
    %97 = vector.multi_reduction <add>, %96, %cst_102 [0] : vector<128x128xf32> to vector<128xf32>
    %98 = vector.shape_cast %97 : vector<128xf32> to vector<1x128xf32>
    %c0_103 = arith.constant 0 : index
    %c0_104 = arith.constant 0 : index
    %c1_105 = arith.constant 1 : index
    %c0_106 = arith.constant 0 : index
    %99 = vector.load %arg9[%c0_103, %c0_104, %c1_105, %c0_106] : memref<1x1x2x128xf32, #tpu.memory_space<vmem>>, vector<1x1x1x128xf32>
    %100 = vector.shape_cast %99 : vector<1x1x1x128xf32> to vector<1x128xf32>
    %101 = vector.shape_cast %98 : vector<1x128xf32> to vector<1x1x1x128xf32>
    tpu.vector_store %arg9[%c0_103, %c0_104, %c1_105, %c0_106], %101 {strides = array<i32>} : memref<1x1x2x128xf32, #tpu.memory_space<vmem>>, vector<1x1x1x128xf32>,
    return
  }
  func.func @transform_0(%arg0: i32, %arg1: i32) -> (i32, i32, i32, i32) {
    %c4_i32 = arith.constant 4 : i32
    %0 = arith.muli %arg1, %c4_i32 : i32
    %c1_i32 = arith.constant 1 : i32
    %1 = arith.subi %0, %c1_i32 : i32
    %c0_i32 = arith.constant 0 : i32
    %2 = arith.maxsi %1, %c0_i32 : i32
    %c0_i32_0 = arith.constant 0 : i32
    %c0_i32_1 = arith.constant 0 : i32
    %c0_i32_2 = arith.constant 0 : i32
    return %arg0, %2, %c0_i32_0, %c0_i32_1 : i32, i32, i32, i32
  }
  func.func @transform_1(%arg0: i32, %arg1: i32) -> (i32, i32, i32, i32) {
    %c0_i32 = arith.constant 0 : i32
    %c0_i32_0 = arith.constant 0 : i32
    %c0_i32_1 = arith.constant 0 : i32
    return %arg0, %arg1, %c0_i32, %c0_i32_0 : i32, i32, i32, i32
  }
  func.func @transform_2(%arg0: i32, %arg1: i32) -> (i32, i32, i32, i32) {
    %c1_i32 = arith.constant 1 : i32
    %0 = arith.addi %arg1, %c1_i32 : i32
    %c4_i32 = arith.constant 4 : i32
    %1 = arith.muli %0, %c4_i32 : i32
    %c7_i32 = arith.constant 7 : i32
    %2 = arith.minsi %1, %c7_i32 : i32
    %c0_i32 = arith.constant 0 : i32
    %c0_i32_0 = arith.constant 0 : i32
    %c0_i32_1 = arith.constant 0 : i32
    return %arg0, %2, %c0_i32, %c0_i32_0 : i32, i32, i32, i32
  }
  func.func @transform_3(%arg0: i32, %arg1: i32) -> (i32, i32) {
    %c0_i32 = arith.constant 0 : i32
    %c0_i32_0 = arith.constant 0 : i32
    %c0_i32_1 = arith.constant 0 : i32
    return %c0_i32, %c0_i32_0 : i32, i32
  }
  func.func @transform_4(%arg0: i32, %arg1: i32) -> (i32, i32) {
    %c0_i32 = arith.constant 0 : i32
    %c0_i32_0 = arith.constant 0 : i32
    %c0_i32_1 = arith.constant 0 : i32
    return %c0_i32, %c0_i32_0 : i32, i32
  }
  func.func @transform_5(%arg0: i32, %arg1: i32) -> (i32, i32, i32, i32) {
    %c0_i32 = arith.constant 0 : i32
    %c0_i32_0 = arith.constant 0 : i32
    %c0_i32_1 = arith.constant 0 : i32
    %c0_i32_2 = arith.constant 0 : i32
    %c0_i32_3 = arith.constant 0 : i32
    return %c0_i32, %c0_i32_0, %c0_i32_1, %c0_i32_2 : i32, i32, i32, i32
  }
  func.func @transform_6(%arg0: i32, %arg1: i32) -> (i32, i32, i32, i32) {
    %c0_i32 = arith.constant 0 : i32
    %c0_i32_0 = arith.constant 0 : i32
    %c0_i32_1 = arith.constant 0 : i32
    return %arg0, %arg1, %c0_i32, %c0_i32_0 : i32, i32, i32, i32
  }
  func.func @transform_7(%arg0: i32, %arg1: i32) -> (i32, i32, i32, i32) {
    %c0_i32 = arith.constant 0 : i32
    %c0_i32_0 = arith.constant 0 : i32
    %c0_i32_1 = arith.constant 0 : i32
    return %arg0, %arg1, %c0_i32, %c0_i32_0 : i32, i32, i32, i32
  }
}

</mosaic_0001>

<bundles_post_ra>
// kernel: cbblock_forward.7
= control target key start
LH: loop header
LB: loop body
LE: loop exit
PB: predicated region body
PF: predicated region fallthrough
CT: control target
= control target key end

     0   :  { %s575_s12 = smov 0   ;;  %s577_s13 = smov 0   ;;  %s716_s0 = inlined_call_operand.vmem [shape: bf16[2,16,16,128], index: 0, kind: input, shape index: {}]   ;;  %s717_s1 = inlined_call_operand.vmem [shape: f32[1,128], index: 1, kind: input, shape index: {}]   ;;  %s718_s2 = inlined_call_operand.vmem [shape: f32[1,128], index: 2, kind: input, shape index: {}]   ;;  %s719_s3 = inlined_call_operand.vmem [shape: f32[2,16,16,8], index: 3, kind: output, shape index: {}]  }
   0x1   :  { %s579_s14 = smov 0   ;;  %s581_s15 = smov 0  }
   0x2   :  { %s583_s16 = smov 0  }
   0x3 LB: > { %s22_s17 = sadd.s32 1, %s545_s14  ;;  %s25_s18 = sadd.s32 1, %s549_s15  ;;  %s553_s16 = sphi %s583_s16, %s13_s16   ;;  %s549_s15 = sphi %s581_s15, %s723_s15   ;;  %s545_s14 = sphi %s579_s14, %s722_s14   ;;  %s541_s13 = sphi %s577_s13, %s721_s13   ;;  %s537_s12 = sphi %s575_s12, %s720_s12  }
   0x4   : > { %p23_p0 = scmp.ge.s32.totalorder %s22_s17, 2  ;;  %p423_p1 = scmp.ge.s32.totalorder %s553_s16, 1 }
   0x5   : > { %p159_p2 = scmp.lt.s32.totalorder %s553_s16, 5 }
   0x6   : > { %s725_s17 = smov (%p23_p0, %s22_s17), 0  ;;  %s727_s18 = smov (!%p23_p0, %s25_s18), %s549_s15 }
   0x7   : > { %p160_p3 = pnand %p423_p1, %p159_p2  ;;  %p27_p4 = scmp.ge.s32.totalorder %s727_s18, 2 }
   0x8   : > { %s424_s19 = sshll.u32 (!%p160_p3), %s537_s12, 3  ;;  %p194_p5 = scmp.lt.s32.totalorder (!%p160_p3), %s541_s13, 1 }
   0x9   : > { %s729_s18 = smov (%p27_p4, %s727_s18), 0  ;;  %163 = sbr.rel (%p160_p3) target bundleno = 44 (0x2c), region = 32 }
   0xa   : > { %p196_p6 = scmp.lt.s32.totalorder (!%p160_p3), %s424_s19, 15 }
   0xe   : > { %s731_s13 = smov (!%p194_p5, %s541_s13), 1  ;;  %s733_s19 = smov (!%p196_p6, %s424_s19), 15  ;;  %v616_v0 = vld [vmem:[%s717_s1] ss:$0 sm:$0xff]  ;;  %vm303_vm0 = vcmask 64512  }
   0xf   : > { %s426_s20 = sshll.u32 %s731_s13, 5  ;;  %s425_s21 = sshll.u32 %s733_s19, 1  ;;  %v624_v5 = vld [vmem:[%s718_s2] ss:$0 sm:$0xff] }
  0x10   : > { %s605_s22 = sadd.s32 %s426_s20, %s425_s21 }
  0x11   : > { %s427_s23 = sshll.u32 %s605_s22, 2  ;;  %s431_s4 = sshll.u32 %s605_s22, 3 }
  0x12   : > { %s611_s26 = scalar_lea.vmem %s716_s0, %s427_s23  ;;  %s643_s7 = scalar_lea.vmem %s719_s3, %s431_s4 }
  0x13   : > { %v435_v1 = vld [vmem:[%s611_s26] sm:$0xff]   ;;  %v466_v2 = vld [vmem:[%s611_s26 + $0x8] sm:$0xff]   ;;  %v467_v3 = vld [vmem:[%s611_s26 + $0x10] sm:$0xff]  }
  0x14   : > { %v436_v4 = vunpack.c.l.bf16 %v435_v1  ;;  %v437_v6 = vunpack.c.h.bf16 %v435_v1  ;;  %v440_v7 = vunpack.c.l.bf16 %v466_v2  ;;  %v441_v8 = vunpack.c.h.bf16 %v466_v2  ;;  %v468_v9 = vld [vmem:[%s611_s26 + $0x18] sm:$0xff]   ;;  %v469_v30 = vld [vmem:[%s611_s26 + $0x20] sm:$0xff]   ;;  %v470_v31 = vld [vmem:[%s611_s26 + $0x28] sm:$0xff]  }
  0x15   : > { %v444_v10 = vunpack.c.l.bf16 %v467_v3  ;;  %v445_v11 = vunpack.c.h.bf16 %v467_v3  ;;  %v448_v12 = vunpack.c.l.bf16 %v468_v9  ;;  %v449_v13 = vunpack.c.h.bf16 %v468_v9  ;;  %v471_v36 = vld [vmem:[%s611_s26 + $0x30] sm:$0xff]   ;;  %v472_v37 = vld [vmem:[%s611_s26 + $0x38] sm:$0xff]  }
  0x16   : > { %v252_v14 = vmul.f32 %v616_v0, %v436_v4  ;;  %v253_v15 = vmul.f32 %v616_v0, %v437_v6  ;;  %v254_v16 = vmul.f32 %v616_v0, %v440_v7  ;;  %v255_v17 = vmul.f32 %v616_v0, %v441_v8 }
  0x17   : > { %v256_v18 = vmul.f32 %v616_v0, %v444_v10  ;;  %v257_v19 = vmul.f32 %v616_v0, %v445_v11  ;;  %v258_v20 = vmul.f32 %v616_v0, %v448_v12  ;;  %v259_v21 = vmul.f32 %v616_v0, %v449_v13 }
  0x18   : > { %v271_v22 = vadd.f32 %v624_v5, %v252_v14  ;;  %v272_v23 = vadd.f32 %v624_v5, %v253_v15  ;;  %v273_v24 = vadd.f32 %v624_v5, %v254_v16  ;;  %v274_v25 = vadd.f32 %v624_v5, %v255_v17 }
  0x19   : > { %v275_v26 = vadd.f32 %v624_v5, %v256_v18  ;;  %v276_v27 = vadd.f32 %v624_v5, %v257_v19  ;;  %v277_v28 = vadd.f32 %v624_v5, %v258_v20  ;;  %v278_v29 = vadd.f32 %v624_v5, %v259_v21 }
  0x1a   : > { %v287_v32 = vmax.f32 %v271_v22, 0.0  ;;  %v288_v33 = vmax.f32 %v272_v23, 0.0  ;;  %v289_v34 = vmax.f32 %v273_v24, 0.0  ;;  %v290_v35 = vmax.f32 %v274_v25, 0.0 }
  0x1b   : > { %v291_v38 = vmax.f32 %v275_v26, 0.0  ;;  %v292_v39 = vmax.f32 %v276_v27, 0.0  ;;  %v293_v40 = vmax.f32 %v277_v28, 0.0  ;;  %v294_v41 = vmax.f32 %v278_v29, 0.0 }
  0x1c   : > { %304 = vst.msk [vmem:[%s643_s7] sm:$0xff] %vm303_vm0, %v287_v32  ;;  %v452_v42 = vunpack.c.l.bf16 %v469_v30  ;;  %v453_v43 = vunpack.c.h.bf16 %v469_v30  ;;  %v456_v44 = vunpack.c.l.bf16 %v470_v31  ;;  %v457_v45 = vunpack.c.h.bf16 %v470_v31 }
  0x1d   : > { %305 = vst.msk [vmem:[%s643_s7 + $0x8] sm:$0xff] %vm303_vm0, %v288_v33  ;;  %v460_v46 = vunpack.c.l.bf16 %v471_v36  ;;  %v461_v47 = vunpack.c.h.bf16 %v471_v36  ;;  %v464_v48 = vunpack.c.l.bf16 %v472_v37  ;;  %v465_v49 = vunpack.c.h.bf16 %v472_v37 }
  0x1e   : > { %306 = vst.msk [vmem:[%s643_s7 + $0x10] sm:$0xff] %vm303_vm0, %v289_v34  ;;  %v260_v50 = vmul.f32 %v616_v0, %v452_v42  ;;  %v261_v51 = vmul.f32 %v616_v0, %v453_v43  ;;  %v262_v52 = vmul.f32 %v616_v0, %v456_v44  ;;  %v263_v53 = vmul.f32 %v616_v0, %v457_v45 }
  0x1f   : > { %307 = vst.msk [vmem:[%s643_s7 + $0x18] sm:$0xff] %vm303_vm0, %v290_v35  ;;  %v264_v54 = vmul.f32 %v616_v0, %v460_v46  ;;  %v265_v55 = vmul.f32 %v616_v0, %v461_v47  ;;  %v266_v56 = vmul.f32 %v616_v0, %v464_v48  ;;  %v267_v57 = vmul.f32 %v616_v0, %v465_v49 }
  0x20   : > { %308 = vst.msk [vmem:[%s643_s7 + $0x20] sm:$0xff] %vm303_vm0, %v291_v38  ;;  %v279_v58 = vadd.f32 %v624_v5, %v260_v50  ;;  %v280_v59 = vadd.f32 %v624_v5, %v261_v51  ;;  %v281_v60 = vadd.f32 %v624_v5, %v262_v52  ;;  %v282_v61 = vadd.f32 %v624_v5, %v263_v53 }
  0x21   : > { %309 = vst.msk [vmem:[%s643_s7 + $0x28] sm:$0xff] %vm303_vm0, %v292_v39  ;;  %v283_v62 = vadd.f32 %v624_v5, %v264_v54  ;;  %v284_v63 = vadd.f32 %v624_v5, %v265_v55  ;;  %v285_v3 = vadd.f32 %v624_v5, %v266_v56  ;;  %v286_v6 = vadd.f32 %v624_v5, %v267_v57 }
  0x22   : > { %310 = vst.msk [vmem:[%s643_s7 + $0x30] sm:$0xff] %vm303_vm0, %v293_v40  ;;  %v295_v0 = vmax.f32 %v279_v58, 0.0  ;;  %v296_v1 = vmax.f32 %v280_v59, 0.0  ;;  %v297_v2 = vmax.f32 %v281_v60, 0.0  ;;  %v298_v4 = vmax.f32 %v282_v61, 0.0 }
  0x23   : > { %311 = vst.msk [vmem:[%s643_s7 + $0x38] sm:$0xff] %vm303_vm0, %v294_v41  ;;  %v299_v7 = vmax.f32 %v283_v62, 0.0  ;;  %v300_v8 = vmax.f32 %v284_v63, 0.0  ;;  %v301_v9 = vmax.f32 %v285_v3, 0.0  ;;  %v302_v10 = vmax.f32 %v286_v6, 0.0 }
  0x24   : > { %312 = vst.msk [vmem:[%s643_s7 + $0x40] sm:$0xff] %vm303_vm0, %v295_v0 }
  0x25   : > { %313 = vst.msk [vmem:[%s643_s7 + $0x48] sm:$0xff] %vm303_vm0, %v296_v1 }
  0x26   : > { %314 = vst.msk [vmem:[%s643_s7 + $0x50] sm:$0xff] %vm303_vm0, %v297_v2 }
  0x27   : > { %315 = vst.msk [vmem:[%s643_s7 + $0x58] sm:$0xff] %vm303_vm0, %v298_v4 }
  0x28   : > { %316 = vst.msk [vmem:[%s643_s7 + $0x60] sm:$0xff] %vm303_vm0, %v299_v7 }
  0x29   : > { %317 = vst.msk [vmem:[%s643_s7 + $0x68] sm:$0xff] %vm303_vm0, %v300_v8 }
  0x2a   : > { %318 = vst.msk [vmem:[%s643_s7 + $0x70] sm:$0xff] %vm303_vm0, %v301_v9 }
  0x2b   : > { %319 = vst.msk [vmem:[%s643_s7 + $0x78] sm:$0xff] %vm303_vm0, %v302_v10 }
  0x2c PF: > { %s13_s16 = sadd.s32 1, %s553_s16   ;;  %s720_s12 = smov %s545_s14 }
  0x2d   : > { %p10_p7 = scmp.ge.s32.totalorder %s13_s16, 6   ;;  %s721_s13 = smov %s549_s15 }
  0x2e   : > { %s722_s14 = smov %s725_s17  ;;  %s723_s15 = smov %s729_s18 }
  0x2f   :  { %12 = sbr.rel (!%p10_p7) target bundleno = 3 (0x3), region = 62 }

// kernel: cbblock_forward.4
= control target key start
LH: loop header
LB: loop body
LE: loop exit
PB: predicated region body
PF: predicated region fallthrough
CT: control target
= control target key end

     0   :  { %s919_s12 = smov 0   ;;  %s921_s13 = smov 0   ;;  %s1033_s0 = inlined_call_operand.vmem [shape: bf16[2,16,16,128], index: 0, kind: input, shape index: {}]   ;;  %s1034_s1 = inlined_call_operand.vmem [shape: bf16[128,128], index: 1, kind: input, shape index: {}]   ;;  %s1035_s2 = inlined_call_operand.vmem [shape: bf16[2,16,16,128], index: 2, kind: output, shape index: {0}]   ;;  %s1036_s3 = inlined_call_operand.vmem [shape: f32[2,2,2,128], index: 3, kind: output, shape index: {1}]  }
   0x1   :  { %s923_s14 = smov 0   ;;  %s925_s15 = smov 0  }
   0x2   :  { %s927_s16 = smov 0  }
   0x3 LB: > { %s23_s17 = sadd.s32 1, %s889_s14  ;;  %s26_s18 = sadd.s32 1, %s893_s15  ;;  %s897_s16 = sphi %s927_s16, %s14_s16   ;;  %s893_s15 = sphi %s925_s15, %s1040_s15   ;;  %s889_s14 = sphi %s923_s14, %s1039_s14   ;;  %s885_s13 = sphi %s921_s13, %s1038_s13   ;;  %s881_s12 = sphi %s919_s12, %s1037_s12  }
   0x4   : > { %p24_p0 = scmp.ge.s32.totalorder %s23_s17, 2  ;;  %p655_p1 = scmp.ge.s32.totalorder %s897_s16, 1 }
   0x5   : > { %p164_p2 = scmp.lt.s32.totalorder %s897_s16, 5 }
   0x6   : > { %s1042_s17 = smov (%p24_p0, %s23_s17), 0  ;;  %s1044_s18 = smov (!%p24_p0, %s26_s18), %s893_s15 }
   0x7   : > { %p165_p3 = pnand %p655_p1, %p164_p2  ;;  %p28_p4 = scmp.ge.s32.totalorder %s1044_s18, 2 }
   0x8   : > { %s656_s25 = sshll.u32 (!%p165_p3), %s881_s12, 3  ;;  %p207_p5 = scmp.lt.s32.totalorder (!%p165_p3), %s885_s13, 1 }
   0x9   : > { %s1046_s18 = smov (%p28_p4, %s1044_s18), 0  ;;  %168 = sbr.rel (%p165_p3) target bundleno = 237 (0xed), region = 28 }
   0xa   : > { %p209_p6 = scmp.lt.s32.totalorder (!%p165_p3), %s656_s25, 15  ;;  %p230_p7 = scmp.lt.s32.totalorder (!%p165_p3), %s881_s12, 1 }
   0xe   : > { %v747_v0 = vld [vmem:[%s1034_s1 + $0x38] sm:$0xff]  ;;  %v746_v1 = vld [vmem:[%s1034_s1 + $0x30] sm:$0xff]  ;;  %v745_v2 = vld [vmem:[%s1034_s1 + $0x28] sm:$0xff]  ;;  %s1048_s13 = smov (!%p207_p5, %s885_s13), 1  ;;  %s1050_s25 = smov (!%p209_p6, %s656_s25), 15 }
   0xf   : > { %364 = vmatpush.bf16.msra.mxu0 %v747_v0  ;;  %795 = vmatpush.bf16.msra.mxu1 %v747_v0  ;;  %v744_v3 = vld [vmem:[%s1034_s1 + $0x20] sm:$0xff]  ;;  %v743_v4 = vld [vmem:[%s1034_s1 + $0x18] sm:$0xff]  ;;  %s657_s30 = sshll.u32 %s1050_s25, 1  ;;  %s658_s4 = sshll.u32 %s1048_s13, 5  ;;  %v742_v5 = vld [vmem:[%s1034_s1 + $0x10] sm:$0xff] }
  0x10   : > { %796 = vmatpush.bf16.msra.mxu2 %v747_v0  ;;  %797 = vmatpush.bf16.msra.mxu3 %v747_v0  ;;  %s977_s7 = sadd.s32 %s658_s4, %s657_s30  ;;  %v741_v6 = vld [vmem:[%s1034_s1 + $0x8] sm:$0xff]  ;;  %v740_v7 = vld [vmem:[%s1034_s1] sm:$0xff]  ;;  %s1052_s12 = smov (!%p230_p7, %s881_s12), 1 }
  0x11   : > { %s659_s10 = sshll.u32 %s977_s7, 2  ;;  %s664_s26 = sshll.u32 %s1048_s13, 1 }
  0x12   : > { %s215_s22 = scalar_lea.vmem %s1033_s0, %s659_s10  ;;  %s998_s25 = scalar_lea.vmem %s1035_s2, %s659_s10 }
  0x13   : > { %365 = vmatpush.bf16.msra.mxu0 %v746_v1  ;;  %798 = vmatpush.bf16.msra.mxu1 %v746_v1  ;;  %v732_v8 = vld [vmem:[%s215_s22] sm:$0xff]  ;;  %v734_v9 = vld [vmem:[%s215_s22 + $0x10] sm:$0xff]  ;;  %v733_v12 = vld [vmem:[%s215_s22 + $0x8] sm:$0xff]  ;;  %s233_s27 = sadd.s32 %s664_s26, %s1052_s12 }
  0x14   : > { %799 = vmatpush.bf16.msra.mxu2 %v746_v1  ;;  %800 = vmatpush.bf16.msra.mxu3 %v746_v1  ;;  %v736_v10 = vld [vmem:[%s215_s22 + $0x20] sm:$0xff]  ;;  %v738_v11 = vld [vmem:[%s215_s22 + $0x30] sm:$0xff]  ;;  %v735_v13 = vld [vmem:[%s215_s22 + $0x18] sm:$0xff]  ;;  %s665_s28 = sshll.u32 %s233_s27, 1 }
  0x15   : > { %v737_v14 = vld [vmem:[%s215_s22 + $0x28] sm:$0xff]  ;;  %v739_v15 = vld [vmem:[%s215_s22 + $0x38] sm:$0xff]  ;;  %s235_s4 = scalar_lea.vmem %s1036_s3, %s665_s28 }
  0x17   : > { %366 = vmatpush.bf16.msra.mxu0 %v745_v2  ;;  %801 = vmatpush.bf16.msra.mxu1 %v745_v2 }
  0x18   : > { %802 = vmatpush.bf16.msra.mxu2 %v745_v2  ;;  %803 = vmatpush.bf16.msra.mxu3 %v745_v2 }
  0x1b   : > { %367 = vmatpush.bf16.msra.mxu0 %v744_v3  ;;  %804 = vmatpush.bf16.msra.mxu1 %v744_v3 }
  0x1c   : > { %805 = vmatpush.bf16.msra.mxu2 %v744_v3  ;;  %806 = vmatpush.bf16.msra.mxu3 %v744_v3 }
  0x1f   : > { %368 = vmatpush.bf16.msra.mxu0 %v743_v4  ;;  %807 = vmatpush.bf16.msra.mxu1 %v743_v4 }
  0x20   : > { %808 = vmatpush.bf16.msra.mxu2 %v743_v4  ;;  %809 = vmatpush.bf16.msra.mxu3 %v743_v4 }
  0x23   : > { %369 = vmatpush.bf16.msra.mxu0 %v742_v5  ;;  %810 = vmatpush.bf16.msra.mxu1 %v742_v5 }
  0x24   : > { %811 = vmatpush.bf16.msra.mxu2 %v742_v5  ;;  %812 = vmatpush.bf16.msra.mxu3 %v742_v5 }
  0x27   : > { %370 = vmatpush.bf16.msra.mxu0 %v741_v6  ;;  %813 = vmatpush.bf16.msra.mxu1 %v741_v6 }
  0x28   : > { %814 = vmatpush.bf16.msra.mxu2 %v741_v6  ;;  %815 = vmatpush.bf16.msra.mxu3 %v741_v6 }
  0x2b   : > { %371 = vmatpush.bf16.msra.mxu0 %v740_v7  ;;  %816 = vmatpush.bf16.msra.mxu1 %v740_v7 }
  0x2c   : > { %817 = vmatpush.bf16.msra.mxu2 %v740_v7  ;;  %818 = vmatpush.bf16.msra.mxu3 %v740_v7 }
  0x2e   : > { %372 = vmatmul.bf16.vlgmr.msra.gmra.mxu0 %v732_v8  ;;  %382 = vmatmul.bf16.vlgmr.msra.gmra.mxu1 %v734_v9 }
  0x2f   : > { %392 = vmatmul.bf16.vlgmr.msra.gmra.mxu2 %v736_v10  ;;  %402 = vmatmul.bf16.vlgmr.msra.gmra.mxu3 %v738_v11 }
  0x3e   : > { %377 = vmatmul.bf16.gmra.mxu0 %v733_v12  ;;  %387 = vmatmul.bf16.gmra.mxu1 %v735_v13 }
  0x3f   : > { %397 = vmatmul.bf16.gmra.mxu2 %v737_v14  ;;  %407 = vmatmul.bf16.gmra.mxu3 %v739_v15 }
  0xab   : > { %v373_v16 = vpop.f32.mrf.mxu0  ;;  %v383_v17 = vpop.f32.mrf.mxu1 }
  0xac   : > { %v467_v31 = vmul.f32 %v373_v16, %v373_v16  ;;  %v471_v45 = vmul.f32 %v383_v17, %v383_v17 }
  0xb2   : > { %v393_v18 = vpop.f32.mrf.mxu2  ;;  %v991_v19 = vpop.f32.mrf.mxu3 }
  0xb3   : > { %v375_v20 = vpop.f32.mrf.mxu0  ;;  %v385_v21 = vpop.f32.mrf.mxu1  ;;  %v475_v61 = vmul.f32 %v393_v18, %v393_v18  ;;  %v479_v9 = vmul.f32 %v991_v19, %v991_v19 }
  0xb4   : > { %v751_v22 = vpack.c.bf16 %v375_v20, %v373_v16  ;;  %v761_v23 = vpack.c.bf16 %v385_v21, %v383_v17  ;;  %v468_v30 = vmul.f32 %v375_v20, %v375_v20  ;;  %v445_v33 = vadd.f32 %v375_v20, %v373_v16 }
  0xb5   : > { %v472_v48 = vmul.f32 %v385_v21, %v385_v21 }
  0xb6   : > { %752 = vst [vmem:[%s998_s25] sm:$0xff] %v751_v22   ;;  %v483_v34 = vadd.f32 %v468_v30, %v467_v31 }
  0xb7   : > { %789 = vst [vmem:[%s998_s25 + $0x10] sm:$0xff] %v761_v23  }
  0xba   : > { %v395_v24 = vpop.f32.mrf.mxu2  ;;  %v405_v25 = vpop.f32.mrf.mxu3 }
  0xbb   : > { %v378_v26 = vpop.f32.mrf.mxu0  ;;  %v388_v27 = vpop.f32.mrf.mxu1  ;;  %v771_v28 = vpack.c.bf16 %v395_v24, %v393_v18  ;;  %v781_v29 = vpack.c.bf16 %v405_v25, %v991_v19  ;;  %v476_v0 = vmul.f32 %v395_v24, %v395_v24  ;;  %v480_v12 = vmul.f32 %v405_v25, %v405_v25 }
  0xbc   : > { %v469_v32 = vmul.f32 %v378_v26, %v378_v26  ;;  %v446_v35 = vadd.f32 %v445_v33, %v378_v26  ;;  %v473_v51 = vmul.f32 %v388_v27, %v388_v27 }
  0xbd   : > { %791 = vst [vmem:[%s998_s25 + $0x20] sm:$0xff] %v771_v28  }
  0xbe   : > { %793 = vst [vmem:[%s998_s25 + $0x30] sm:$0xff] %v781_v29   ;;  %v484_v38 = vadd.f32 %v483_v34, %v469_v32 }
  0xc2   : > { %v398_v36 = vpop.f32.mrf.mxu2  ;;  %v408_v37 = vpop.f32.mrf.mxu3 }
  0xc3   : > { %v380_v39 = vpop.f32.mrf.mxu0  ;;  %v390_v40 = vpop.f32.mrf.mxu1  ;;  %v477_v4 = vmul.f32 %v398_v36, %v398_v36  ;;  %v481_v16 = vmul.f32 %v408_v37, %v408_v37 }
  0xc4   : > { %v756_v41 = vpack.c.bf16 %v380_v39, %v378_v26  ;;  %v447_v42 = vadd.f32 %v446_v35, %v380_v39  ;;  %v470_v43 = vmul.f32 %v380_v39, %v380_v39  ;;  %v766_v44 = vpack.c.bf16 %v390_v40, %v388_v27 }
  0xc5   : > { %v474_v59 = vmul.f32 %v390_v40, %v390_v40 }
  0xc6   : > { %788 = vst [vmem:[%s998_s25 + $0x8] sm:$0xff] %v756_v41   ;;  %v448_v46 = vadd.f32 %v447_v42, %v383_v17  ;;  %v485_v47 = vadd.f32 %v484_v38, %v470_v43 }
  0xc7   : > { %790 = vst [vmem:[%s998_s25 + $0x18] sm:$0xff] %v766_v44  }
  0xc8   : > { %v486_v49 = vadd.f32 %v485_v47, %v471_v45  ;;  %v449_v50 = vadd.f32 %v448_v46, %v385_v21 }
  0xca   : > { %v450_v52 = vadd.f32 %v449_v50, %v388_v27  ;;  %v487_v53 = vadd.f32 %v486_v49, %v472_v48  ;;  %v400_v54 = vpop.f32.mrf.mxu2  ;;  %v410_v55 = vpop.f32.mrf.mxu3 }
  0xcb   : > { %v776_v56 = vpack.c.bf16 %v400_v54, %v398_v36  ;;  %v786_v57 = vpack.c.bf16 %v410_v55, %v408_v37  ;;  %v478_v8 = vmul.f32 %v400_v54, %v400_v54  ;;  %v482_v21 = vmul.f32 %v410_v55, %v410_v55 }
  0xcc   : > { %v451_v58 = vadd.f32 %v450_v52, %v390_v40  ;;  %v488_v60 = vadd.f32 %v487_v53, %v473_v51 }
  0xcd   : > { %792 = vst [vmem:[%s998_s25 + $0x28] sm:$0xff] %v776_v56  }
  0xce   : > { %v452_v62 = vadd.f32 %v451_v58, %v393_v18  ;;  %v489_v63 = vadd.f32 %v488_v60, %v474_v59  ;;  %794 = vst [vmem:[%s998_s25 + $0x38] sm:$0xff] %v786_v57  }
  0xd0   : > { %v490_v1 = vadd.f32 %v489_v63, %v475_v61  ;;  %v453_v2 = vadd.f32 %v452_v62, %v395_v24 }
  0xd2   : > { %v454_v3 = vadd.f32 %v453_v2, %v398_v36  ;;  %v491_v5 = vadd.f32 %v490_v1, %v476_v0 }
  0xd4   : > { %v492_v6 = vadd.f32 %v491_v5, %v477_v4  ;;  %v455_v7 = vadd.f32 %v454_v3, %v400_v54 }
  0xd6   : > { %v456_v10 = vadd.f32 %v455_v7, %v991_v19  ;;  %v493_v11 = vadd.f32 %v492_v6, %v478_v8 }
  0xd8   : > { %v494_v13 = vadd.f32 %v493_v11, %v479_v9  ;;  %v457_v14 = vadd.f32 %v456_v10, %v405_v25 }
  0xda   : > { %v458_v15 = vadd.f32 %v457_v14, %v408_v37  ;;  %v495_v17 = vadd.f32 %v494_v13, %v480_v12 }
  0xdc   : > { %v496_v18 = vadd.f32 %v495_v17, %v481_v16  ;;  %v459_v20 = vadd.f32 %v458_v15, %v410_v55 }
  0xde   : > { %v460_v22 = vrot.slane %v459_v20, 4  ;;  %v497_v23 = vadd.f32 %v496_v18, %v482_v21 }
  0xe0   : > { %v461_v24 = vadd.f32 %v460_v22, %v459_v20  ;;  %v498_v26 = vrot.slane %v497_v23, 4 }
  0xe2   : > { %v462_v27 = vrot.slane %v461_v24, 2  ;;  %v499_v19 = vadd.f32 %v498_v26, %v497_v23 }
  0xe4   : > { %v463_v28 = vadd.f32 %v462_v27, %v461_v24  ;;  %v500_v29 = vrot.slane %v499_v19, 2 }
  0xe6   : > { %v464_v25 = vrot.slane %v463_v28, 1  ;;  %v501_v30 = vadd.f32 %v500_v29, %v499_v19 }
  0xe8   : > { %v465_v31 = vadd.f32 %v464_v25, %v463_v28  ;;  %v502_v32 = vrot.slane %v501_v30, 1 }
  0xea   : > { %466 = vst [vmem:[%s235_s4] sm:$0x1] %v465_v31  ;;  %v503_v33 = vadd.f32 %v502_v32, %v501_v30 }
  0xec   : > { %504 = vst [vmem:[%s235_s4 + $0x1] sm:$0x1] %v503_v33 }
  0xed PF: > { %s14_s16 = sadd.s32 1, %s897_s16   ;;  %s1037_s12 = smov %s889_s14 }
  0xee   : > { %p11_p8 = scmp.ge.s32.totalorder %s14_s16, 6   ;;  %s1038_s13 = smov %s893_s15 }
  0xef   : > { %s1039_s14 = smov %s1042_s17  ;;  %s1040_s15 = smov %s1046_s18 }
  0xf0   :  { %13 = sbr.rel (!%p11_p8) target bundleno = 3 (0x3), region = 70 }

// kernel: cbblock_forward.5
= control target key start
LH: loop header
LB: loop body
LE: loop exit
PB: predicated region body
PF: predicated region fallthrough
CT: control target
= control target key end

     0   :  { %s4169_s24 = smov 0   ;;  %s4171_s25 = smov 0   ;;  %s5000_s0 = inlined_call_operand.vmem [shape: bf16[2,16,16,128], index: 0, kind: input, shape index: {}, may-alias: {0,1,2}]   ;;  %s5001_s1 = inlined_call_operand.vmem [shape: bf16[2,16,16,128], index: 1, kind: input, shape index: {}, may-alias: {0,1,2}]   ;;  %s5002_s2 = inlined_call_operand.vmem [shape: bf16[2,16,16,128], index: 2, kind: input, shape index: {}, may-alias: {0,1,2}]   ;;  %s5003_s3 = inlined_call_operand.vmem [shape: f32[1,128], index: 3, kind: input, shape index: {}]   ;;  %s5004_s4 = inlined_call_operand.vmem [shape: f32[1,128], index: 4, kind: input, shape index: {}]   ;;  %s5005_s5 = inlined_call_operand.vmem [shape: bf16[3,3,128,128], index: 5, kind: input, shape index: {}]   ;;  %s5006_s6 = inlined_call_operand.vmem [shape: bf16[2,16,16,128], index: 6, kind: output, shape index: {0}]   ;;  %s5007_s7 = inlined_call_operand.vmem [shape: f32[2,2,2,128], index: 7, kind: output, shape index: {1}]  }
   0x1   :  { %s4173_s26 = smov 0   ;;  %s4175_s27 = smov 0  }
   0x2   :  { %s4177_s28 = smov 0  }
   0x3 LB: > { %s27_s29 = sadd.s32 1, %s4116_s26  ;;  %s30_s30 = sadd.s32 1, %s4120_s27  ;;  %s4124_s28 = sphi %s4177_s28, %s18_s28   ;;  %s4120_s27 = sphi %s4175_s27, %s5019_s27   ;;  %s4116_s26 = sphi %s4173_s26, %s5018_s26   ;;  %s4112_s25 = sphi %s4171_s25, %s5017_s25   ;;  %s4108_s24 = sphi %s4169_s24, %s5016_s24  }
   0x4   : > { %p28_p0 = scmp.ge.s32.totalorder %s27_s29, 2  ;;  %p3223_p1 = scmp.ge.s32.totalorder %s4124_s28, 1 }
   0x5   : > { %p332_p2 = scmp.lt.s32.totalorder %s4124_s28, 5 }
   0x6   : > { %s5021_s29 = smov (%p28_p0, %s27_s29), 0  ;;  %s5023_s30 = smov (!%p28_p0, %s30_s30), %s4120_s27 }
   0x7   : > { %p333_p3 = pnand %p3223_p1, %p332_p2  ;;  %p32_p4 = scmp.ge.s32.totalorder %s5023_s30, 2 }
   0x8   : > { %s3224_s8 = sshll.u32 (!%p333_p3), %s4108_s24, 2  ;;  %p415_p5 = scmp.lt.s32.totalorder (!%p333_p3), %s4112_s25, 1 }
   0x9   : > { %s5025_s30 = smov (%p32_p4, %s5023_s30), 0  ;;  %336 = sbr.rel (%p333_p3) target bundleno = 603 (0x25b), region = 44 }
   0xa   : > { %s3225_s9 = sadd.s32 (!%p333_p3), 4294967295, %s3224_s8  ;;  %s3230_s10 = sshll.u32 (!%p333_p3), %s4108_s24, 3 }
   0xb   : > { %p412_p6 = scmp.gt.s32.totalorder (!%p333_p3), %s3225_s9, 0  ;;  %p4205_p7 = scmp.lt.s32.totalorder (!%p333_p3), %s3230_s10, 15 }
   0xc   : > { %s4217_s13 = sadd.s32 (!%p333_p3), 4, %s3224_s8  ;;  %p472_p10 = scmp.lt.s32.totalorder (!%p333_p3), %s4108_s24, 1 }
   0xd   : > { %p442_p8 = scmp.lt.s32.totalorder (!%p333_p3), %s4217_s13, 7  ;;  %p3245_p12 = scmp.le.s32.totalorder (!%p333_p3), %s4108_s24, 0 }
   0xe   : > { %v4126_v0 = vmov 0   ;;  %s5027_s25 = smov (!%p415_p5, %s4112_s25), 1  ;;  %s5029_s9 = smov (!%p412_p6, %s3225_s9), 0  ;;  %v4242_v1 = vld [vmem:[%s5003_s3] ss:$0 sm:$0xff]  ;;  %vm623_vm0 = vcmask 1040384  }
   0xf   : > { %481 = vst [vmem:[#allocation2] sm:$0x1] %v4126_v0  ;;  %s4215_s12 = sshll.u32 %s5027_s25, 5  ;;  %s3226_s14 = sshll.u32 %s5029_s9, 1  ;;  %v4267_v7 = vld [vmem:[%s5004_s4] ss:$0 sm:$0xff] }
  0x10   : > { %482 = vst [vmem:[#allocation2 + $0xc] sm:$0x1] %v4126_v0  ;;  %p417_p9 = scmp.lt.s32.totalorder %s3226_s14, 15  ;;  %s5031_s10 = smov (!%p4205_p7, %s3230_s10), 15  ;;  %vm624_vm1 = vcmask 1044484  }
  0x11   : > { %483 = vst [vmem:[#allocation2 + $0x18] sm:$0x1] %v4126_v0  ;;  %s3231_s15 = sshll.u32 %s5031_s10, 1  ;;  %s3243_s16 = sshll.u32 %s5027_s25, 1  ;;  %vm4324_vm2 = vmor %vm623_vm0, %vm624_vm1 }
  0x12   : > { %484 = vst [vmem:[#allocation2 + $0x24] sm:$0x1] %v4126_v0  ;;  %s5033_s14 = smov (!%p417_p9, %s3226_s14), 15  ;;  %s436_s18 = sadd.s32 %s3231_s15, %s4215_s12 }
  0x13   : > { %485 = vst [vmem:[#allocation2 + $0x30] sm:$0x1] %v4126_v0  ;;  %s3227_s17 = sshll.u32 %s5033_s14, 1  ;;  %s3233_s20 = sshll.u32 %s436_s18, 2 }
  0x14   : > { %486 = vst [vmem:[#allocation2 + $0x3c] sm:$0x1] %v4126_v0  ;;  %s421_s19 = sadd.s32 %s4215_s12, %s3227_s17  ;;  %s4237_s8 = scalar_lea.vmem %s5001_s1, %s3233_s20 }
  0x15   : > { %487 = vst [vmem:[#allocation2 + $0x48] sm:$0x1] %v4126_v0  ;;  %s3229_s21 = sshll.u32 %s421_s19, 2  ;;  %s4253_s19 = scalar_lea.vmem %s5006_s6, %s3233_s20  ;;  %v3914_v2 = vld [vmem:[%s4237_s8] sm:$0xff]   ;;  %v4001_v3 = vld [vmem:[%s4237_s8 + $0x8] sm:$0xff]   ;;  %v4002_v4 = vld [vmem:[%s4237_s8 + $0x10] sm:$0xff]  }
  0x16   : > { %488 = vst [vmem:[#allocation2 + $0x54] sm:$0x1] %v4126_v0  ;;  %s4248_s15 = scalar_lea.vmem %s5000_s0, %s3229_s21  ;;  %s5035_s13 = smov (!%p442_p8, %s4217_s13), 7  ;;  %v3915_v5 = vunpack.c.l.bf16 %v3914_v2  ;;  %v3916_v6 = vunpack.c.h.bf16 %v3914_v2  ;;  %v3919_v8 = vunpack.c.l.bf16 %v4001_v3  ;;  %v3920_v9 = vunpack.c.h.bf16 %v4001_v3  ;;  %v4003_v10 = vld [vmem:[%s4237_s8 + $0x18] sm:$0xff]   ;;  %v4297_v27 = vld [vmem:[%s4237_s8 + $0x20] sm:$0xff]   ;;  %v4005_v57 = vld [vmem:[%s4237_s8 + $0x28] sm:$0xff]  }
  0x17   : > { %489 = vst [vmem:[#allocation2 + $0x60] sm:$0x1] %v4126_v0  ;;  %s473_s20 = scalar_select %p472_p10, %s4108_s24, 1  ;;  %v3923_v11 = vunpack.c.l.bf16 %v4002_v4  ;;  %v3924_v12 = vunpack.c.h.bf16 %v4002_v4  ;;  %v3927_v13 = vunpack.c.l.bf16 %v4003_v10  ;;  %v3928_v14 = vunpack.c.h.bf16 %v4003_v10  ;;  %v4006_v58 = vld [vmem:[%s4237_s8 + $0x30] sm:$0xff]  }
  0x18   : > { %490 = vst [vmem:[#allocation2 + $0x6c] sm:$0x1] %v4126_v0  ;;  %s3235_s23 = sshll.u32 %s5035_s13, 1  ;;  %v540_v15 = vmul.f32 %v4242_v1, %v3915_v5  ;;  %v541_v16 = vmul.f32 %v4242_v1, %v3916_v6  ;;  %v542_v17 = vmul.f32 %v4242_v1, %v3919_v8  ;;  %v543_v18 = vmul.f32 %v4242_v1, %v3920_v9  ;;  %v4007_v9 = vld [vmem:[%s4237_s8 + $0x38] sm:$0xff]  }
  0x19   : > { %491 = vst [vmem:[#allocation2 + $0x78] sm:$0x1] %v4126_v0  ;;  %p4281_p11 = scmp.lt.s32.totalorder %s3235_s23, 15  ;;  %s475_s10 = sadd.s32 %s3243_s16, %s473_s20  ;;  %v544_v19 = vmul.f32 %v4242_v1, %v3923_v11  ;;  %v545_v20 = vmul.f32 %v4242_v1, %v3924_v12  ;;  %v546_v21 = vmul.f32 %v4242_v1, %v3927_v13  ;;  %v547_v22 = vmul.f32 %v4242_v1, %v3928_v14 }
  0x1a   : > { %492 = vst [vmem:[#allocation2 + $0x84] sm:$0x1] %v4126_v0  ;;  %s3244_s13 = sshll.u32 %s475_s10, 1  ;;  %v559_v23 = vadd.f32 %v4267_v7, %v540_v15  ;;  %v560_v24 = vadd.f32 %v4267_v7, %v541_v16  ;;  %v561_v25 = vadd.f32 %v4267_v7, %v542_v17  ;;  %v562_v26 = vadd.f32 %v4267_v7, %v543_v18 }
  0x1b   : > { %493 = vst [vmem:[#allocation2 + $0x8] sm:$0x2] %v4126_v0  ;;  %s5037_s23 = smov (!%p4281_p11, %s3235_s23), 15  ;;  %v563_v28 = vadd.f32 %v4267_v7, %v544_v19  ;;  %v564_v29 = vadd.f32 %v4267_v7, %v545_v20  ;;  %v565_v30 = vadd.f32 %v4267_v7, %v546_v21  ;;  %v566_v31 = vadd.f32 %v4267_v7, %v547_v22  ;;  %s4310_s11 = scalar_lea.vmem %s5007_s7, %s3244_s13 }
  0x1c   : > { %494 = vst [vmem:[#allocation2 + $0x14] sm:$0x2] %v4126_v0  ;;  %v575_v32 = vmax.f32 %v559_v23, 0.0  ;;  %v576_v33 = vmax.f32 %v560_v24, 0.0  ;;  %v577_v34 = vmax.f32 %v561_v25, 0.0  ;;  %v578_v35 = vmax.f32 %v562_v26, 0.0 }
  0x1d   : > { %495 = vst [vmem:[#allocation2 + $0x20] sm:$0x2] %v4126_v0  ;;  %s3236_s14 = sshll.u32 %s5037_s23, 1  ;;  %v579_v36 = vmax.f32 %v563_v28, 0.0  ;;  %v580_v37 = vmax.f32 %v564_v29, 0.0  ;;  %v581_v38 = vmax.f32 %v565_v30, 0.0  ;;  %v3931_v39 = vunpack.c.l.bf16 %v4297_v27 }
  0x1e   : > { %496 = vst [vmem:[#allocation2 + $0x2c] sm:$0x2] %v4126_v0  ;;  %s451_s17 = sadd.s32 %s3236_s14, %s4215_s12  ;;  %v591_v40 = vpack.c.bf16 %v575_v32, %v575_v32  ;;  %v592_v41 = vpack.c.bf16 %v576_v33, %v576_v33  ;;  %v593_v42 = vpack.c.bf16 %v577_v34, %v577_v34  ;;  %v594_v43 = vpack.c.bf16 %v578_v35, %v578_v35 }
  0x1f   : > { %497 = vst [vmem:[#allocation2 + $0x38] sm:$0x2] %v4126_v0  ;;  %s3238_s18 = sshll.u32 %s451_s17, 2  ;;  %v595_v44 = vpack.c.bf16 %v579_v36, %v579_v36  ;;  %v596_v45 = vpack.c.bf16 %v580_v37, %v580_v37  ;;  %v597_v46 = vpack.c.bf16 %v581_v38, %v581_v38  ;;  %v582_v47 = vmax.f32 %v566_v31, 0.0 }
  0x20   : > { %498 = vst [vmem:[#allocation2 + $0x44] sm:$0x2] %v4126_v0  ;;  %s4320_s20 = scalar_lea.vmem %s5002_s2, %s3238_s18  ;;  %v626_v48 = vrot.slane %v591_v40, 7  ;;  %v628_v49 = vrot.slane %v592_v41, 7  ;;  %v631_v50 = vrot.slane %v593_v42, 7  ;;  %v633_v51 = vrot.slane %v594_v43, 7 }
  0x21   : > { %499 = vst [vmem:[#allocation2 + $0x50] sm:$0x2] %v4126_v0  ;;  %v636_v53 = vrot.slane %v595_v44, 7  ;;  %v638_v54 = vrot.slane %v596_v45, 7  ;;  %v641_v55 = vrot.slane %v597_v46, 7  ;;  %v598_v56 = vpack.c.bf16 %v582_v47, %v582_v47 }
  0x22   : > { %500 = vst [vmem:[#allocation2 + $0x5c] sm:$0x2] %v4126_v0  ;;  %v627_v59 = vrot.slane %v626_v48, 4  ;;  %v630_v60 = vrot.slane %v628_v49, 4  ;;  %v632_v61 = vrot.slane %v631_v50, 4  ;;  %v635_v62 = vrot.slane %v633_v51, 4 }
  0x23   : > { %501 = vst [vmem:[#allocation2 + $0x68] sm:$0x2] %v4126_v0  ;;  %v637_v63 = vrot.slane %v636_v53, 4  ;;  %v642_v2 = vrot.slane %v641_v55, 4  ;;  %v643_v3 = vrot.slane %v598_v56, 7  ;;  %v3932_v6 = vunpack.c.h.bf16 %v4297_v27 }
  0x24   : > { %502 = vst [vmem:[#allocation2 + $0x74] sm:$0x2] %v4126_v0  ;;  %v629_v4 = vsel %vm4324_vm2, %v627_v59, %v628_v49  ;;  %v634_v5 = vsel %vm4324_vm2, %v632_v61, %v633_v51  ;;  %v548_v8 = vmul.f32 %v4242_v1, %v3931_v39  ;;  %v3935_v13 = vunpack.c.l.bf16 %v4005_v57 }
  0x25   : > { %503 = vst [vmem:[#allocation2 + $0x80] sm:$0x2] %v4126_v0  ;;  %v639_v10 = vsel %vm4324_vm2, %v637_v63, %v638_v54  ;;  %v644_v11 = vsel %vm4324_vm2, %v642_v2, %v643_v3  ;;  %v645_v12 = vrot.slane %v643_v3, 4  ;;  %v549_v15 = vmul.f32 %v4242_v1, %v3932_v6 }
  0x26   : > { %504 = vst [vmem:[#allocation2 + $0x8c] sm:$0x2] %v4126_v0  ;;  %v640_v0 = vrot.slane %v638_v54, 4  ;;  %v567_v14 = vadd.f32 %v4267_v7, %v548_v8  ;;  %v3936_v16 = vunpack.c.h.bf16 %v4005_v57  ;;  %v3939_v17 = vunpack.c.l.bf16 %v4006_v58 }
  0x27   : > { %691 = vst [vmem:[#allocation2 + $0x18] sm:$0xe] %v626_v48  ;;  %v550_v18 = vmul.f32 %v4242_v1, %v3935_v13  ;;  %v3940_v19 = vunpack.c.h.bf16 %v4006_v58  ;;  %v3943_v20 = vunpack.c.l.bf16 %v4007_v9  ;;  %v3944_v21 = vunpack.c.h.bf16 %v4007_v9 }
  0x28   : > { %694 = vst [vmem:[#allocation2 + $0x24] sm:$0xe] %v631_v50  ;;  %v583_v22 = vmax.f32 %v567_v14, 0.0  ;;  %v568_v23 = vadd.f32 %v4267_v7, %v549_v15  ;;  %v551_v24 = vmul.f32 %v4242_v1, %v3936_v16  ;;  %v552_v25 = vmul.f32 %v4242_v1, %v3939_v17 }
  0x29   : > { %693 = vst [vmem:[#allocation2 + $0x20] sm:$0x1] %v630_v60  ;;  %v569_v26 = vadd.f32 %v4267_v7, %v550_v18  ;;  %v553_v27 = vmul.f32 %v4242_v1, %v3940_v19  ;;  %v554_v28 = vmul.f32 %v4242_v1, %v3943_v20  ;;  %v555_v29 = vmul.f32 %v4242_v1, %v3944_v21 }
  0x2a   : > { %692 = vst [vmem:[#allocation2 + $0x1c] sm:$0xf] %v629_v4  ;;  %v599_v30 = vpack.c.bf16 %v583_v22, %v583_v22  ;;  %v584_v31 = vmax.f32 %v568_v23, 0.0  ;;  %v570_v32 = vadd.f32 %v4267_v7, %v551_v24  ;;  %v571_v33 = vadd.f32 %v4267_v7, %v552_v25 }
  0x2b   : > { %695 = vst [vmem:[#allocation2 + $0x28] sm:$0xf] %v634_v5  ;;  %v585_v34 = vmax.f32 %v569_v26, 0.0  ;;  %v572_v35 = vadd.f32 %v4267_v7, %v553_v27  ;;  %v573_v36 = vadd.f32 %v4267_v7, %v554_v28  ;;  %v574_v37 = vadd.f32 %v4267_v7, %v555_v29 }
  0x2c   : > { %696 = vst [vmem:[#allocation2 + $0x2c] sm:$0x1] %v635_v62  ;;  %v646_v38 = vrot.slane %v599_v30, 7  ;;  %v600_v39 = vpack.c.bf16 %v584_v31, %v584_v31  ;;  %v586_v40 = vmax.f32 %v570_v32, 0.0  ;;  %v587_v41 = vmax.f32 %v571_v33, 0.0 }
  0x2d   : > { %697 = vst [vmem:[#allocation2 + $0x30] sm:$0xe] %v636_v53  ;;  %v601_v42 = vpack.c.bf16 %v585_v34, %v585_v34  ;;  %v588_v43 = vmax.f32 %v572_v35, 0.0  ;;  %v589_v44 = vmax.f32 %v573_v36, 0.0  ;;  %v590_v45 = vmax.f32 %v574_v37, 0.0 }
  0x2e   : > { %698 = vst [vmem:[#allocation2 + $0x34] sm:$0xf] %v639_v10  ;;  %v647_v46 = vrot.slane %v646_v38, 4  ;;  %v648_v47 = vrot.slane %v600_v39, 7  ;;  %v602_v48 = vpack.c.bf16 %v586_v40, %v586_v40  ;;  %v603_v49 = vpack.c.bf16 %v587_v41, %v587_v41 }
  0x2f   : > { %699 = vst [vmem:[#allocation2 + $0x38] sm:$0x1] %v640_v0  ;;  %v651_v50 = vrot.slane %v601_v42, 7  ;;  %v604_v51 = vpack.c.bf16 %v588_v43, %v588_v43  ;;  %v605_v53 = vpack.c.bf16 %v589_v44, %v589_v44  ;;  %v606_v54 = vpack.c.bf16 %v590_v45, %v590_v45 }
  0x30   : > { %700 = vst [vmem:[#allocation2 + $0x3c] sm:$0xe] %v641_v55  ;;  %v649_v55 = vsel %vm4324_vm2, %v647_v46, %v648_v47  ;;  %v650_v56 = vrot.slane %v648_v47, 4  ;;  %v653_v57 = vrot.slane %v602_v48, 7  ;;  %v656_v58 = vrot.slane %v603_v49, 7 }
  0x31   : > { %701 = vst [vmem:[#allocation2 + $0x40] sm:$0xf] %v644_v11  ;;  %v652_v59 = vrot.slane %v651_v50, 4  ;;  %v658_v60 = vrot.slane %v604_v51, 7  ;;  %v661_v61 = vrot.slane %v605_v53, 7  ;;  %v663_v3 = vrot.slane %v606_v54, 7 }
  0x32   : > { %702 = vst [vmem:[#allocation2 + $0x44] sm:$0x1] %v645_v12  ;;  %v655_v62 = vrot.slane %v653_v57, 4  ;;  %v657_v63 = vrot.slane %v656_v58, 4 }
  0x33   : > { %703 = vst [vmem:[#allocation2 + $0x48] sm:$0xe] %v646_v38  ;;  %v654_v0 = vsel %vm4324_vm2, %v652_v59, %v653_v57  ;;  %v662_v2 = vrot.slane %v661_v61, 4  ;;  %v660_v5 = vrot.slane %v658_v60, 4  ;;  %v665_v8 = vrot.slane %v663_v3, 4 }
  0x34   : > { %704 = vst [vmem:[#allocation2 + $0x4c] sm:$0xf] %v649_v55  ;;  %v659_v4 = vsel %vm4324_vm2, %v657_v63, %v658_v60 }
  0x35   : > { %705 = vst [vmem:[#allocation2 + $0x50] sm:$0x1] %v650_v56  ;;  %v664_v6 = vsel %vm4324_vm2, %v662_v2, %v663_v3 }
  0x36   : > { %706 = vst [vmem:[#allocation2 + $0x54] sm:$0xe] %v651_v50 }
  0x37   : > { %707 = vst [vmem:[#allocation2 + $0x58] sm:$0xf] %v654_v0 }
  0x38   : > { %708 = vst [vmem:[#allocation2 + $0x5c] sm:$0x1] %v655_v62 }
  0x39   : > { %709 = vst [vmem:[#allocation2 + $0x60] sm:$0xe] %v656_v58 }
  0x3a   : > { %710 = vst [vmem:[#allocation2 + $0x64] sm:$0xf] %v659_v4  ;;  %718 = sbr.rel (%p3245_p12) target bundleno = 82 (0x52), region = 48 }
  0x3b   : > { %711 = vst [vmem:[#allocation2 + $0x68] sm:$0x1] %v660_v5 }
  0x3c   : > { %712 = vst [vmem:[#allocation2 + $0x6c] sm:$0xe] %v661_v61 }
  0x3d   : > { %713 = vst [vmem:[#allocation2 + $0x70] sm:$0xf] %v664_v6 }
  0x3e   : > { %714 = vst [vmem:[#allocation2 + $0x74] sm:$0x1] %v665_v8 }
  0x3f   : > { %v3946_v9 = vld [vmem:[%s4248_s15] sm:$0xff]   ;;  %v4008_v10 = vld [vmem:[%s4248_s15 + $0x8] sm:$0xff]  }
  0x40   : > { %v3947_v11 = vunpack.c.l.bf16 %v3946_v9  ;;  %v3948_v12 = vunpack.c.h.bf16 %v3946_v9  ;;  %v3951_v13 = vunpack.c.l.bf16 %v4008_v10  ;;  %v3952_v14 = vunpack.c.h.bf16 %v4008_v10 }
  0x42   : > { %v727_v15 = vmul.f32 %v4242_v1, %v3947_v11  ;;  %v728_v16 = vmul.f32 %v4242_v1, %v3948_v12  ;;  %v729_v17 = vmul.f32 %v4242_v1, %v3951_v13  ;;  %v730_v18 = vmul.f32 %v4242_v1, %v3952_v14 }
  0x44   : > { %v731_v19 = vadd.f32 %v4267_v7, %v727_v15  ;;  %v732_v20 = vadd.f32 %v4267_v7, %v728_v16  ;;  %v733_v21 = vadd.f32 %v4267_v7, %v729_v17  ;;  %v734_v22 = vadd.f32 %v4267_v7, %v730_v18 }
  0x46   : > { %v735_v23 = vmax.f32 %v731_v19, 0.0  ;;  %v736_v24 = vmax.f32 %v732_v20, 0.0  ;;  %v737_v25 = vmax.f32 %v733_v21, 0.0  ;;  %v738_v26 = vmax.f32 %v734_v22, 0.0 }
  0x48   : > { %v739_v27 = vpack.c.bf16 %v735_v23, %v735_v23  ;;  %v740_v28 = vpack.c.bf16 %v736_v24, %v736_v24  ;;  %v741_v29 = vpack.c.bf16 %v737_v25, %v737_v25  ;;  %v742_v30 = vpack.c.bf16 %v738_v26, %v738_v26 }
  0x4a   : > { %v747_v31 = vrot.slane %v739_v27, 7  ;;  %v749_v32 = vrot.slane %v740_v28, 7  ;;  %v752_v33 = vrot.slane %v741_v29, 7  ;;  %v754_v34 = vrot.slane %v742_v30, 7 }
  0x4c   : > { %763 = vst [vmem:[#allocation2] sm:$0xe] %v747_v31  ;;  %v748_v35 = vrot.slane %v747_v31, 4  ;;  %v751_v36 = vrot.slane %v749_v32, 4  ;;  %v753_v37 = vrot.slane %v752_v33, 4  ;;  %v756_v38 = vrot.slane %v754_v34, 4 }
  0x4d   : > { %766 = vst [vmem:[#allocation2 + $0xc] sm:$0xe] %v752_v33 }
  0x4e   : > { %v750_v39 = vsel %vm4324_vm2, %v748_v35, %v749_v32  ;;  %765 = vst [vmem:[#allocation2 + $0x8] sm:$0x1] %v751_v36  ;;  %v755_v40 = vsel %vm4324_vm2, %v753_v37, %v754_v34 }
  0x4f   : > { %764 = vst [vmem:[#allocation2 + $0x4] sm:$0xf] %v750_v39 }
  0x50   : > { %767 = vst [vmem:[#allocation2 + $0x10] sm:$0xf] %v755_v40 }
  0x51   : > { %768 = vst [vmem:[#allocation2 + $0x14] sm:$0x1] %v756_v38 }
  0x52 PF: > { %p3246_p13 = scmp.ne.s32.totalorder %s4108_s24, 0 }
  0x54   : > { %772 = sbr.rel (%p3246_p13) target bundleno = 96 (0x60), region = 52 }
  0x59   : > { %v4127_v41 = vmov 0  }
  0x5a   : > { %773 = vst [vmem:[#allocation2] sm:$0xe] %v4127_v41 }
  0x5b   : > { %774 = vst [vmem:[#allocation2 + $0x4] sm:$0xf] %v4127_v41 }
  0x5c   : > { %775 = vst [vmem:[#allocation2 + $0x8] sm:$0x1] %v4127_v41 }
  0x5d   : > { %776 = vst [vmem:[#allocation2 + $0xc] sm:$0xe] %v4127_v41 }
  0x5e   : > { %777 = vst [vmem:[#allocation2 + $0x10] sm:$0xf] %v4127_v41 }
  0x5f   : > { %778 = vst [vmem:[#allocation2 + $0x14] sm:$0x1] %v4127_v41 }
  0x60 PF: > { %p3247_p0 = scmp.ge.s32.totalorder %s4108_s24, 1 }
  0x62   : > { %782 = sbr.rel (%p3247_p0) target bundleno = 122 (0x7a), region = 56 }
  0x67   : > { %v3954_v42 = vld [vmem:[%s4320_s20] sm:$0xff]   ;;  %v4009_v43 = vld [vmem:[%s4320_s20 + $0x8] sm:$0xff]  }
  0x68   : > { %v3955_v44 = vunpack.c.l.bf16 %v3954_v42  ;;  %v3956_v45 = vunpack.c.h.bf16 %v3954_v42  ;;  %v3959_v46 = vunpack.c.l.bf16 %v4009_v43  ;;  %v3960_v47 = vunpack.c.h.bf16 %v4009_v43 }
  0x6a   : > { %v791_v48 = vmul.f32 %v4242_v1, %v3955_v44  ;;  %v792_v49 = vmul.f32 %v4242_v1, %v3956_v45  ;;  %v793_v50 = vmul.f32 %v4242_v1, %v3959_v46  ;;  %v794_v51 = vmul.f32 %v4242_v1, %v3960_v47 }
  0x6c   : > { %v795_v53 = vadd.f32 %v4267_v7, %v791_v48  ;;  %v796_v54 = vadd.f32 %v4267_v7, %v792_v49  ;;  %v797_v55 = vadd.f32 %v4267_v7, %v793_v50  ;;  %v798_v56 = vadd.f32 %v4267_v7, %v794_v51 }
  0x6e   : > { %v799_v57 = vmax.f32 %v795_v53, 0.0  ;;  %v800_v58 = vmax.f32 %v796_v54, 0.0  ;;  %v801_v59 = vmax.f32 %v797_v55, 0.0  ;;  %v802_v60 = vmax.f32 %v798_v56, 0.0 }
  0x70   : > { %v803_v61 = vpack.c.bf16 %v799_v57, %v799_v57  ;;  %v804_v62 = vpack.c.bf16 %v800_v58, %v800_v58  ;;  %v805_v63 = vpack.c.bf16 %v801_v59, %v801_v59  ;;  %v806_v0 = vpack.c.bf16 %v802_v60, %v802_v60 }
  0x72   : > { %v811_v2 = vrot.slane %v803_v61, 7  ;;  %v813_v3 = vrot.slane %v804_v62, 7  ;;  %v816_v4 = vrot.slane %v805_v63, 7  ;;  %v818_v1 = vrot.slane %v806_v0, 7 }
  0x74   : > { %828 = vst [vmem:[#allocation2 + $0x78] sm:$0xe] %v811_v2  ;;  %v812_v5 = vrot.slane %v811_v2, 4  ;;  %v815_v6 = vrot.slane %v813_v3, 4  ;;  %v817_v8 = vrot.slane %v816_v4, 4  ;;  %v820_v9 = vrot.slane %v818_v1, 4 }
  0x75   : > { %831 = vst [vmem:[#allocation2 + $0x84] sm:$0xe] %v816_v4 }
  0x76   : > { %v814_v7 = vsel %vm4324_vm2, %v812_v5, %v813_v3  ;;  %830 = vst [vmem:[#allocation2 + $0x80] sm:$0x1] %v815_v6  ;;  %v819_v10 = vsel %vm4324_vm2, %v817_v8, %v818_v1 }
  0x77   : > { %829 = vst [vmem:[#allocation2 + $0x7c] sm:$0xf] %v814_v7 }
  0x78   : > { %832 = vst [vmem:[#allocation2 + $0x88] sm:$0xf] %v819_v10 }
  0x79   : > { %833 = vst [vmem:[#allocation2 + $0x8c] sm:$0x1] %v820_v9 }
  0x7a PF: > { %p3248_p1 = scmp.ne.s32.totalorder %s4108_s24, 1 }
  0x7c   : > { %837 = sbr.rel (%p3248_p1) target bundleno = 136 (0x88), region = 60 }
  0x81   : > { %v4128_v11 = vmov 0  }
  0x82   : > { %839 = vst [vmem:[#allocation2 + $0x78] sm:$0xe] %v4128_v11 }
  0x83   : > { %840 = vst [vmem:[#allocation2 + $0x7c] sm:$0xf] %v4128_v11 }
  0x84   : > { %841 = vst [vmem:[#allocation2 + $0x80] sm:$0x1] %v4128_v11 }
  0x85   : > { %842 = vst [vmem:[#allocation2 + $0x84] sm:$0xe] %v4128_v11 }
  0x86   : > { %843 = vst [vmem:[#allocation2 + $0x88] sm:$0xf] %v4128_v11 }
  0x87   : > { %844 = vst [vmem:[#allocation2 + $0x8c] sm:$0x1] %v4128_v11 }
  0x88 PF: > { %v3840_v52 = vld [vmem:[%s5005_s5 + $0x78] sm:$0xff]  ;;  %v3839_v12 = vld [vmem:[%s5005_s5 + $0x70] sm:$0xff]  ;;  %v3838_v13 = vld [vmem:[%s5005_s5 + $0x68] sm:$0xff]  ;;  %vm917_vm3 = vcmask 1042432   ;;  %vm918_vm4 = vcmask 1046532   ;;  %vm1291_vm6 = vcmask 1041408  }
  0x89   : > { %4017 = vmatpush.bf16.msra.mxu1 %v3840_v52  ;;  %4018 = vmatpush.bf16.msra.mxu2 %v3840_v52  ;;  %v3837_v14 = vld [vmem:[%s5005_s5 + $0x60] sm:$0xff]  ;;  %v4408_v15 = vld [vmem:[#allocation2 + $0x1c] sm:$0xf]  ;;  %v4410_v16 = vld [vmem:[#allocation2 + $0x34] sm:$0xf]  ;;  %vm1292_vm7 = vcmask 1045508  }
  0x8a   : > { %4019 = vmatpush.bf16.msra.mxu3 %v3840_v52  ;;  %1073 = vmatpush.bf16.msra.mxu0 %v3840_v52  ;;  %v4412_v17 = vld [vmem:[#allocation2 + $0x4c] sm:$0xf]  ;;  %v4414_v18 = vld [vmem:[#allocation2 + $0x4] sm:$0xf]  ;;  %v881_v19 = vld [vmem:[#allocation2 + $0x18] sm:$0xe] }
  0x8b   : > { %v882_v20 = vld [vmem:[#allocation2 + $0x20] sm:$0x1]  ;;  %v936_v21 = vrot.slane %v4408_v15, 5  ;;  %v3836_v22 = vld [vmem:[%s5005_s5 + $0x58] sm:$0xff]  ;;  %v885_v23 = vld [vmem:[#allocation2 + $0x30] sm:$0xe] }
  0x8c   : > { %v886_v24 = vld [vmem:[#allocation2 + $0x38] sm:$0x1]  ;;  %v950_v25 = vrot.slane %v4410_v16, 5  ;;  %v889_v26 = vld [vmem:[#allocation2 + $0x48] sm:$0xe]  ;;  %v964_v28 = vrot.slane %v4412_v17, 5  ;;  %vm4428_vm5 = vmor %vm917_vm3, %vm918_vm4 }
  0x8d   : > { %4020 = vmatpush.bf16.msra.mxu1 %v3839_v12  ;;  %4021 = vmatpush.bf16.msra.mxu2 %v3839_v12  ;;  %v890_v27 = vld [vmem:[#allocation2 + $0x50] sm:$0x1]  ;;  %v922_v29 = vrot.slane %v4414_v18, 5  ;;  %v877_v30 = vld [vmem:[#allocation2] sm:$0xe]  ;;  %v3251_v32 = vrot.slane %v881_v19, 9  ;;  %vm4559_vm8 = vmor %vm1291_vm6, %vm1292_vm7 }
  0x8e   : > { %4022 = vmatpush.bf16.msra.mxu3 %v3839_v12  ;;  %1074 = vmatpush.bf16.msra.mxu0 %v3839_v12  ;;  %v878_v31 = vld [vmem:[#allocation2 + $0x8] sm:$0x1]  ;;  %v938_v33 = vrot.slane %v936_v21, 4  ;;  %v939_v34 = vrot.slane %v882_v20, 5  ;;  %v3253_v35 = vrot.slane %v885_v23, 9  ;;  %v3835_v36 = vld [vmem:[%s5005_s5 + $0x50] sm:$0xff] }
  0x8f   : > { %v952_v38 = vrot.slane %v950_v25, 4  ;;  %v953_v39 = vrot.slane %v886_v24, 5  ;;  %v3255_v40 = vrot.slane %v889_v26, 9  ;;  %v967_v41 = vrot.slane %v890_v27, 5  ;;  %v3834_v48 = vld [vmem:[%s5005_s5 + $0x48] sm:$0xff]  ;;  %v3833_v60 = vld [vmem:[%s5005_s5 + $0x40] sm:$0xff] }
  0x90   : > { %v966_v42 = vrot.slane %v964_v28, 4  ;;  %v3249_v43 = vrot.slane %v877_v30, 9  ;;  %v924_v44 = vrot.slane %v922_v29, 4  ;;  %v925_v45 = vrot.slane %v878_v31, 5  ;;  %v4454_v2 = vld [vmem:[#allocation2 + $0x28] sm:$0xf] }
  0x91   : > { %4023 = vmatpush.bf16.msra.mxu1 %v3838_v13  ;;  %4024 = vmatpush.bf16.msra.mxu2 %v3838_v13  ;;  %v937_v46 = vsel %vm4428_vm5, %v3251_v32, %v936_v21  ;;  %v940_v47 = vsel %vm4428_vm5, %v938_v33, %v939_v34  ;;  %v951_v49 = vsel %vm4428_vm5, %v3253_v35, %v950_v25  ;;  %v3848_v3 = vld [vmem:[%s5005_s5 + $0xb8] sm:$0xff]  ;;  %v4459_v4 = vld [vmem:[#allocation2 + $0x40] sm:$0xf]  ;;  %v4466_v6 = vld [vmem:[#allocation2 + $0x10] sm:$0xf]  ;;  %v943_v12 = vrot.slane %v4454_v2, 5 }
  0x92   : > { %4025 = vmatpush.bf16.msra.mxu3 %v3838_v13  ;;  %1075 = vmatpush.bf16.msra.mxu0 %v3838_v13  ;;  %v954_v50 = vsel %vm4428_vm5, %v952_v38, %v953_v39  ;;  %v965_v51 = vsel %vm4428_vm5, %v3255_v40, %v964_v28  ;;  %v968_v53 = vsel %vm4428_vm5, %v966_v42, %v967_v41  ;;  %v997_v56 = vunpack.c.l.b16 %v937_v46  ;;  %v3832_v1 = vld [vmem:[%s5005_s5 + $0x38] sm:$0xff]  ;;  %v883_v11 = vld [vmem:[#allocation2 + $0x24] sm:$0xe]  ;;  %v884_v52 = vld [vmem:[#allocation2 + $0x2c] sm:$0x1] }
  0x93   : > { %v923_v54 = vsel %vm4428_vm5, %v3249_v43, %v922_v29  ;;  %v926_v55 = vsel %vm4428_vm5, %v924_v44, %v925_v45  ;;  %v998_v57 = vunpack.c.l.b16 %v940_v47  ;;  %v1001_v58 = vunpack.c.l.b16 %v951_v49  ;;  %v4464_v5 = vld [vmem:[#allocation2 + $0x58] sm:$0xf]  ;;  %v3847_v19 = vld [vmem:[%s5005_s5 + $0xb0] sm:$0xff]  ;;  %v887_v20 = vld [vmem:[#allocation2 + $0x3c] sm:$0xe] }
  0x94   : > { %v1002_v59 = vunpack.c.l.b16 %v954_v50  ;;  %v1005_v61 = vunpack.c.l.b16 %v965_v51  ;;  %v1006_v62 = vunpack.c.l.b16 %v968_v53  ;;  %v993_v63 = vunpack.c.l.b16 %v923_v54  ;;  %v3864_v7 = vld [vmem:[%s5005_s5 + $0xf8] sm:$0xff]  ;;  %v888_v21 = vld [vmem:[#allocation2 + $0x44] sm:$0x1]  ;;  %v891_v23 = vld [vmem:[#allocation2 + $0x54] sm:$0xe] }
  0x95   : > { %4026 = vmatpush.bf16.msra.mxu1 %v3837_v14  ;;  %4027 = vmatpush.bf16.msra.mxu2 %v3837_v14  ;;  %v994_v0 = vunpack.c.l.b16 %v926_v55  ;;  %v1011_v8 = vpack.c.b16 %v998_v57, %v997_v56  ;;  %v3872_v10 = vld [vmem:[%s5005_s5 + $0x138] sm:$0xff]  ;;  %v971_v25 = vrot.slane %v4464_v5, 5  ;;  %v929_v26 = vrot.slane %v4466_v6, 5  ;;  %v3831_v27 = vld [vmem:[%s5005_s5 + $0x30] sm:$0xff]  ;;  %v879_v28 = vld [vmem:[#allocation2 + $0xc] sm:$0xe] }
  0x96   : > { %4028 = vmatpush.bf16.msra.mxu3 %v3837_v14  ;;  %1076 = vmatpush.bf16.msra.mxu0 %v3837_v14  ;;  %v1013_v9 = vpack.c.b16 %v1002_v59, %v1001_v58  ;;  %v1015_v13 = vpack.c.b16 %v1006_v62, %v1005_v61  ;;  %v892_v24 = vld [vmem:[#allocation2 + $0x5c] sm:$0x1]  ;;  %v880_v29 = vld [vmem:[#allocation2 + $0x14] sm:$0x1]  ;;  %v3252_v30 = vrot.slane %v883_v11, 9  ;;  %v945_v31 = vrot.slane %v943_v12, 4 }
  0x97   : > { %v1009_v14 = vpack.c.b16 %v994_v0, %v993_v63  ;;  %v946_v32 = vrot.slane %v884_v52, 5  ;;  %v3254_v33 = vrot.slane %v887_v20, 9  ;;  %v960_v35 = vrot.slane %v888_v21, 5  ;;  %v3863_v39 = vld [vmem:[%s5005_s5 + $0xf0] sm:$0xff]  ;;  %v3846_v45 = vld [vmem:[%s5005_s5 + $0xa8] sm:$0xff]  ;;  %v3845_v58 = vld [vmem:[%s5005_s5 + $0xa0] sm:$0xff] }
  0x98   : > { %v974_v38 = vrot.slane %v892_v24, 5  ;;  %v3871_v40 = vld [vmem:[%s5005_s5 + $0x130] sm:$0xff]  ;;  %v973_v41 = vrot.slane %v971_v25, 4  ;;  %v3250_v42 = vrot.slane %v879_v28, 9  ;;  %v931_v43 = vrot.slane %v929_v26, 4  ;;  %v3830_v46 = vld [vmem:[%s5005_s5 + $0x28] sm:$0xff] }
  0x99   : > { %4029 = vmatpush.bf16.msra.mxu1 %v3836_v22  ;;  %4030 = vmatpush.bf16.msra.mxu2 %v3836_v22  ;;  %v932_v44 = vrot.slane %v880_v29, 5  ;;  %v944_v47 = vsel %vm4428_vm5, %v3252_v30, %v943_v12  ;;  %v3862_v53 = vld [vmem:[%s5005_s5 + $0xe8] sm:$0xff]  ;;  %v3829_v59 = vld [vmem:[%s5005_s5 + $0x20] sm:$0xff]  ;;  %v3828_v11 = vld [vmem:[%s5005_s5 + $0x18] sm:$0xff] }
  0x9a   : > { %4031 = vmatpush.bf16.msra.mxu3 %v3836_v22  ;;  %1077 = vmatpush.bf16.msra.mxu0 %v3836_v22  ;;  %v957_v22 = vrot.slane %v4459_v4, 5  ;;  %v3870_v54 = vld [vmem:[%s5005_s5 + $0x128] sm:$0xff]  ;;  %v975_v55 = vsel %vm4428_vm5, %v973_v41, %v974_v38  ;;  %v930_v56 = vsel %vm4428_vm5, %v3250_v42, %v929_v26  ;;  %v4536_v52 = vld [vmem:[#allocation2 + $0x1c] sm:$0xf]  ;;  %v1259_v24 = vld [vmem:[#allocation2] sm:$0xc] }
  0x9b   : > { %v933_v57 = vsel %vm4428_vm5, %v931_v43, %v932_v44  ;;  %v3860_v20 = vld [vmem:[%s5005_s5 + $0xd8] sm:$0xff]  ;;  %v1756_v26 = vrot.slane %v4536_v52, 5  ;;  %v1708_v28 = vld [vmem:[#allocation2 + $0x20] sm:$0x1]  ;;  %v3369_v29 = vrot.slane %v1259_v24, 10  ;;  %v3858_v43 = vld [vmem:[%s5005_s5 + $0xc8] sm:$0xff] }
  0x9c   : > { %v959_v34 = vrot.slane %v957_v22, 4  ;;  %v958_v49 = vsel %vm4428_vm5, %v3254_v33, %v957_v22  ;;  %v3868_v22 = vld [vmem:[%s5005_s5 + $0x118] sm:$0xff]  ;;  %v3867_v33 = vld [vmem:[%s5005_s5 + $0x110] sm:$0xff]  ;;  %v1759_v38 = vrot.slane %v1708_v28, 5  ;;  %v3866_v44 = vld [vmem:[%s5005_s5 + $0x108] sm:$0xff] }
  0x9d   : > { %4032 = vmatpush.bf16.msra.mxu1 %v3835_v36  ;;  %4033 = vmatpush.bf16.msra.mxu2 %v3835_v36  ;;  %v1003_v62 = vunpack.c.l.b16 %v958_v49  ;;  %v3878_v24 = vld [vmem:[%s5005_s5 + $0x168] sm:$0xff] }
  0x9e   : > { %4034 = vmatpush.bf16.msra.mxu3 %v3835_v36  ;;  %1078 = vmatpush.bf16.msra.mxu0 %v3835_v36  ;;  %v3256_v36 = vrot.slane %v891_v23, 9  ;;  %v961_v50 = vsel %vm4428_vm5, %v959_v34, %v960_v35  ;;  %v3843_v23 = vld [vmem:[%s5005_s5 + $0x90] sm:$0xff] }
  0x9f   : > { %v1004_v63 = vunpack.c.l.b16 %v961_v50 }
  0xa0   : > { %v972_v51 = vsel %vm4428_vm5, %v3256_v36, %v971_v25  ;;  %v1260_v25 = vld [vmem:[#allocation2 + $0x8] sm:$0x3]  ;;  %v1758_v36 = vrot.slane %v1756_v26, 4 }
  0xa1   : > { %4035 = vmatpush.bf16.msra.mxu1 %v3834_v48  ;;  %4036 = vmatpush.bf16.msra.mxu2 %v3834_v48  ;;  %v1007_v0 = vunpack.c.l.b16 %v972_v51  ;;  %v3896_v51 = vld [vmem:[%s5005_s5 + $0x1b8] sm:$0xff] }
  0xa2   : > { %4037 = vmatpush.bf16.msra.mxu3 %v3834_v48  ;;  %1079 = vmatpush.bf16.msra.mxu0 %v3834_v48  ;;  %v947_v48 = vsel %vm4428_vm5, %v945_v31, %v946_v32  ;;  %v1299_v31 = vrot.slane %v1260_v25, 6  ;;  %v3859_v32 = vld [vmem:[%s5005_s5 + $0xd0] sm:$0xff]  ;;  %v3902_v25 = vld [vmem:[%s5005_s5 + $0x1e8] sm:$0xff] }
  0xa3   : > { %v1000_v61 = vunpack.c.l.b16 %v947_v48  ;;  %v3825_v48 = vld [vmem:[%s5005_s5] sm:$0xff] }
  0xa5   : > { %4038 = vmatpush.bf16.msra.mxu1 %v3833_v60  ;;  %4039 = vmatpush.bf16.msra.mxu2 %v3833_v60 }
  0xa6   : > { %4040 = vmatpush.bf16.msra.mxu3 %v3833_v60  ;;  %1080 = vmatpush.bf16.msra.mxu0 %v3833_v60  ;;  %v999_v60 = vunpack.c.l.b16 %v944_v47  ;;  %v3841_v47 = vld [vmem:[%s5005_s5 + $0x80] sm:$0xff] }
  0xa8   : > { %1091 = vmatmul.bf16.vlgmr.msra.gmra.mxu1 %v1011_v8  ;;  %1101 = vmatmul.bf16.vlgmr.msra.gmra.mxu2 %v1013_v9  ;;  %v996_v8 = vunpack.c.l.b16 %v933_v57  ;;  %v3861_v9 = vld [vmem:[%s5005_s5 + $0xe0] sm:$0xff]  ;;  %v1012_v12 = vpack.c.b16 %v1000_v61, %v999_v60  ;;  %v4607_v60 = vld [vmem:[#allocation2 + $0x28] sm:$0xf] }
  0xa9   : > { %1447 = vmatpush.bf16.msrb.mxu2 %v3848_v3  ;;  %1210 = vmatpush.bf16.msrb.mxu1 %v3832_v1  ;;  %v1008_v3 = vunpack.c.l.b16 %v975_v55  ;;  %v995_v1 = vunpack.c.l.b16 %v930_v56  ;;  %v3857_v56 = vld [vmem:[%s5005_s5 + $0xc0] sm:$0xff] }
  0xaa   : > { %1111 = vmatmul.bf16.vlgmr.msra.gmra.mxu3 %v1015_v13  ;;  %1081 = vmatmul.bf16.vlgmr.msra.gmra.mxu0 %v1009_v14  ;;  %v1014_v13 = vpack.c.b16 %v1004_v63, %v1003_v62  ;;  %v1296_v14 = vrot.slane %v4414_v18, 6  ;;  %v3827_v18 = vld [vmem:[%s5005_s5 + $0x10] sm:$0xff]  ;;  %v3865_v57 = vld [vmem:[%s5005_s5 + $0x100] sm:$0xff]  ;;  %v3849_v63 = vld [vmem:[#allocation2 + $0x18] sm:$0xff] }
  0xab   : > { %1641 = vmatpush.bf16.msrb.mxu3 %v3864_v7  ;;  %1907 = vmatpush.bf16.msrb.mxu0 %v3872_v10  ;;  %v3869_v7 = vld [vmem:[%s5005_s5 + $0x120] sm:$0xff]  ;;  %v3844_v10 = vld [vmem:[%s5005_s5 + $0x98] sm:$0xff]  ;;  %v1010_v21 = vpack.c.b16 %v996_v8, %v995_v1  ;;  %v1262_v1 = vld [vmem:[#allocation2 + $0x14] sm:$0x3]  ;;  %v1303_v8 = vrot.slane %v4466_v6, 6 }
  0xac   : > { %v1298_v30 = vrot.slane %v1296_v14, 4  ;;  %v1297_v41 = vsel %vm4559_vm8, %v3369_v29, %v1296_v14  ;;  %v3817_v61 = vld [vmem:[#allocation2] sm:$0xff]  ;;  %v3903_v6 = vld [vmem:[%s5005_s5 + $0x1f0] sm:$0xff] }
  0xad   : > { %1448 = vmatpush.bf16.msrb.mxu2 %v3847_v19  ;;  %1211 = vmatpush.bf16.msrb.mxu1 %v3831_v27  ;;  %v1016_v19 = vpack.c.b16 %v1008_v3, %v1007_v0  ;;  %v1706_v27 = vld [vmem:[#allocation2 + $0x18] sm:$0xe]  ;;  %v1367_v49 = vunpack.c.l.b16 %v1297_v41  ;;  %v1261_v3 = vld [vmem:[#allocation2 + $0xc] sm:$0xc] }
  0xae   : > { %v3505_v35 = vrot.slane %v1706_v27, 9  ;;  %v1300_v42 = vsel %vm4559_vm8, %v1298_v30, %v1299_v31  ;;  %v3370_v14 = vrot.slane %v1261_v3, 10 }
  0xaf   : > { %1642 = vmatpush.bf16.msrb.mxu3 %v3863_v39  ;;  %1908 = vmatpush.bf16.msrb.mxu0 %v3871_v40  ;;  %v3842_v39 = vld [vmem:[%s5005_s5 + $0x88] sm:$0xff]  ;;  %v1368_v50 = vunpack.c.l.b16 %v1300_v42  ;;  %v1310_v42 = vrot.slane %v4408_v15, 6  ;;  %v3901_v15 = vld [vmem:[%s5005_s5 + $0x1e0] sm:$0xff] }
  0xb0   : > { %v3826_v40 = vld [vmem:[%s5005_s5 + $0x8] sm:$0xff]  ;;  %v1304_v27 = vsel %vm4559_vm8, %v3370_v14, %v1303_v8 }
  0xb1   : > { %1449 = vmatpush.bf16.msrb.mxu2 %v3846_v45  ;;  %1212 = vmatpush.bf16.msrb.mxu1 %v3830_v46  ;;  %v1757_v45 = vsel %vm4428_vm5, %v3505_v35, %v1756_v26  ;;  %v1760_v46 = vsel %vm4428_vm5, %v1758_v36, %v1759_v38  ;;  %v1383_v62 = vpack.c.b16 %v1368_v50, %v1367_v49  ;;  %v3910_v26 = vld [vmem:[%s5005_s5 + $0x228] sm:$0xff]  ;;  %v1369_v31 = vunpack.c.l.b16 %v1304_v27  ;;  %v4643_v36 = vld [vmem:[#allocation2 + $0x34] sm:$0xf] }
  0xb2   : > { %v1828_v55 = vunpack.c.l.b16 %v1760_v46  ;;  %v3818_v38 = vld [vmem:[#allocation2 + $0xc] sm:$0xff]  ;;  %v1312_v49 = vrot.slane %v1310_v42, 4 }
  0xb3   : > { %1643 = vmatpush.bf16.msrb.mxu3 %v3862_v53  ;;  %1909 = vmatpush.bf16.msrb.mxu0 %v3870_v54  ;;  %v3880_v53 = vld [vmem:[%s5005_s5 + $0x178] sm:$0xff]  ;;  %v1827_v54 = vunpack.c.l.b16 %v1757_v45  ;;  %v1770_v45 = vrot.slane %v4643_v36, 5  ;;  %v1712_v46 = vld [vmem:[#allocation2 + $0x30] sm:$0xe] }
  0xb5   : > { %1450 = vmatpush.bf16.msrb.mxu2 %v3845_v58  ;;  %1213 = vmatpush.bf16.msrb.mxu1 %v3829_v59  ;;  %v3904_v58 = vld [vmem:[%s5005_s5 + $0x1f8] sm:$0xff]  ;;  %v1843_v0 = vpack.c.b16 %v1828_v55, %v1827_v54  ;;  %v3507_v54 = vrot.slane %v1712_v46, 9  ;;  %v1772_v55 = vrot.slane %v1770_v45, 4  ;;  %v1267_v46 = vld [vmem:[#allocation2 + $0x30] sm:$0xc] }
  0xb6   : > { %v3912_v59 = vld [vmem:[%s5005_s5 + $0x238] sm:$0xff] }
  0xb7   : > { %1644 = vmatpush.bf16.msrb.mxu3 %v3861_v9  ;;  %1910 = vmatpush.bf16.msrb.mxu0 %v3869_v7  ;;  %v3895_v9 = vld [vmem:[%s5005_s5 + $0x1b0] sm:$0xff]  ;;  %v1709_v7 = vld [vmem:[#allocation2 + $0x24] sm:$0xe] }
  0xb8   : > { %1096 = vmatmul.bf16.gmra.mxu1 %v1012_v12  ;;  %1106 = vmatmul.bf16.gmra.mxu2 %v1014_v13  ;;  %v1711_v12 = vld [vmem:[#allocation2 + $0x2c] sm:$0x1]  ;;  %v3911_v13 = vld [vmem:[%s5005_s5 + $0x230] sm:$0xff] }
  0xb9   : > { %1451 = vmatpush.bf16.msrb.mxu2 %v3844_v10  ;;  %1214 = vmatpush.bf16.msrb.mxu1 %v3828_v11  ;;  %v1763_v10 = vrot.slane %v4607_v60, 5  ;;  %v3879_v11 = vld [vmem:[%s5005_s5 + $0x170] sm:$0xff] }
  0xba   : > { %1116 = vmatmul.bf16.gmra.mxu3 %v1016_v19  ;;  %1086 = vmatmul.bf16.gmra.mxu0 %v1010_v21  ;;  %v1305_v19 = vrot.slane %v1303_v8, 4  ;;  %v3506_v21 = vrot.slane %v1709_v7, 9  ;;  %v4667_v8 = vld [vmem:[#allocation2 + $0x40] sm:$0xf] }
  0xbb   : > { %1645 = vmatpush.bf16.msrb.mxu3 %v3860_v20  ;;  %1911 = vmatpush.bf16.msrb.mxu0 %v3868_v22  ;;  %v1306_v20 = vrot.slane %v1262_v1, 6  ;;  %v1765_v22 = vrot.slane %v1763_v10, 4  ;;  %v1777_v14 = vrot.slane %v4667_v8, 5 }
  0xbc   : > { %v1764_v29 = vsel %vm4428_vm5, %v3506_v21, %v1763_v10  ;;  %v3851_v10 = vld [vmem:[#allocation2 + $0x30] sm:$0xff] }
  0xbd   : > { %1452 = vmatpush.bf16.msrb.mxu2 %v3843_v23  ;;  %1215 = vmatpush.bf16.msrb.mxu1 %v3827_v18  ;;  %v1766_v23 = vrot.slane %v1711_v12, 5  ;;  %v3894_v18 = vld [vmem:[%s5005_s5 + $0x1a8] sm:$0xff]  ;;  %v1307_v28 = vsel %vm4559_vm8, %v1305_v19, %v1306_v20  ;;  %v1317_v12 = vrot.slane %v4454_v2, 6  ;;  %v1715_v19 = vld [vmem:[#allocation2 + $0x3c] sm:$0xe] }
  0xbe   : > { %v1717_v20 = vld [vmem:[#allocation2 + $0x44] sm:$0x1]  ;;  %v3900_v2 = vld [vmem:[%s5005_s5 + $0x1d8] sm:$0xff] }
  0xbf   : > { %1646 = vmatpush.bf16.msrb.mxu3 %v3859_v32  ;;  %1912 = vmatpush.bf16.msrb.mxu0 %v3867_v33  ;;  %v1767_v30 = vsel %vm4428_vm5, %v1765_v22, %v1766_v23  ;;  %v1370_v32 = vunpack.c.l.b16 %v1307_v28  ;;  %v1829_v33 = vunpack.c.l.b16 %v1764_v29  ;;  %v1319_v22 = vrot.slane %v1317_v12, 4  ;;  %v3908_v28 = vld [vmem:[%s5005_s5 + $0x218] sm:$0xff] }
  0xc0   : > { %v1830_v35 = vunpack.c.l.b16 %v1767_v30  ;;  %v1780_v27 = vrot.slane %v1717_v20, 5  ;;  %v1270_v20 = vld [vmem:[#allocation2 + $0x44] sm:$0x3] }
  0xc1   : > { %1453 = vmatpush.bf16.msrb.mxu2 %v3842_v39  ;;  %1216 = vmatpush.bf16.msrb.mxu1 %v3826_v40  ;;  %v1384_v39 = vpack.c.b16 %v1370_v32, %v1369_v31  ;;  %v3850_v40 = vld [vmem:[#allocation2 + $0x24] sm:$0xff] }
  0xc2   : > { %v1844_v41 = vpack.c.b16 %v1830_v35, %v1829_v33 }
  0xc3   : > { %1647 = vmatpush.bf16.msrb.mxu3 %v3858_v43  ;;  %1913 = vmatpush.bf16.msrb.mxu0 %v3866_v44  ;;  %v1263_v43 = vld [vmem:[#allocation2 + $0x18] sm:$0xc]  ;;  %v1264_v44 = vld [vmem:[#allocation2 + $0x20] sm:$0x3] }
  0xc4   : > { %v1313_v50 = vrot.slane %v1264_v44, 6 }
  0xc5   : > { %1454 = vmatpush.bf16.msrb.mxu2 %v3841_v47  ;;  %1217 = vmatpush.bf16.msrb.mxu1 %v3825_v48  ;;  %v1714_v47 = vld [vmem:[#allocation2 + $0x38] sm:$0x1]  ;;  %v3371_v48 = vrot.slane %v1263_v43, 10  ;;  %v3852_v43 = vld [vmem:[#allocation2 + $0x3c] sm:$0xff] }
  0xc7   : > { %1648 = vmatpush.bf16.msrb.mxu3 %v3857_v56  ;;  %1914 = vmatpush.bf16.msrb.mxu0 %v3865_v57  ;;  %v1773_v56 = vrot.slane %v1714_v47, 5  ;;  %v3909_v57 = vld [vmem:[%s5005_s5 + $0x220] sm:$0xff]  ;;  %v1268_v47 = vld [vmem:[#allocation2 + $0x38] sm:$0x3] }
  0xc8   : > { %1218 = vmatmul.bf16.vlgmr.msrb.gmra.mxu1 %v3817_v61  ;;  %1455 = vmatmul.bf16.vlgmr.msrb.gmra.mxu2 %v1383_v62  ;;  %v1771_v61 = vsel %vm4428_vm5, %v3507_v54, %v1770_v45  ;;  %v1324_v45 = vrot.slane %v4410_v16, 6  ;;  %v3891_v54 = vld [vmem:[%s5005_s5 + $0x190] sm:$0xff] }
  0xc9   : > { %2352 = vmatpush.bf16.msra.mxu2 %v3896_v51  ;;  %2157 = vmatpush.bf16.msra.mxu1 %v3880_v53  ;;  %v3893_v51 = vld [vmem:[%s5005_s5 + $0x1a0] sm:$0xff]  ;;  %v1774_v62 = vsel %vm4428_vm5, %v1772_v55, %v1773_v56  ;;  %v1831_v3 = vunpack.c.l.b16 %v1771_v61  ;;  %v3899_v16 = vld [vmem:[%s5005_s5 + $0x1d0] sm:$0xff] }
  0xca   : > { %1649 = vmatmul.bf16.vlgmr.msrb.gmra.mxu3 %v3849_v63  ;;  %1915 = vmatmul.bf16.vlgmr.msrb.gmra.mxu0 %v1843_v0  ;;  %v3877_v53 = vld [vmem:[%s5005_s5 + $0x160] sm:$0xff]  ;;  %v1832_v1 = vunpack.c.l.b16 %v1774_v62  ;;  %v3875_v55 = vld [vmem:[%s5005_s5 + $0x150] sm:$0xff] }
  0xcb   : > { %2618 = vmatpush.bf16.msra.mxu3 %v3904_v58  ;;  %2868 = vmatpush.bf16.msra.mxu0 %v3912_v59  ;;  %v1311_v58 = vsel %vm4559_vm8, %v3371_v48, %v1310_v42  ;;  %v1314_v59 = vsel %vm4559_vm8, %v1312_v49, %v1313_v50  ;;  %v1718_v49 = vld [vmem:[#allocation2 + $0x48] sm:$0xe]  ;;  %v1720_v50 = vld [vmem:[#allocation2 + $0x50] sm:$0x1] }
  0xcc   : > { %v1371_v63 = vunpack.c.l.b16 %v1311_v58  ;;  %v1372_v0 = vunpack.c.l.b16 %v1314_v59  ;;  %v3509_v56 = vrot.slane %v1718_v49, 9  ;;  %v1787_v58 = vrot.slane %v1720_v50, 5  ;;  %v3907_v59 = vld [vmem:[%s5005_s5 + $0x210] sm:$0xff]  ;;  %v1271_v49 = vld [vmem:[#allocation2 + $0x48] sm:$0xc] }
  0xcd   : > { %2353 = vmatpush.bf16.msra.mxu2 %v3895_v9  ;;  %2158 = vmatpush.bf16.msra.mxu1 %v3879_v11  ;;  %v3819_v9 = vld [vmem:[#allocation2 + $0x18] sm:$0xff]  ;;  %v1845_v11 = vpack.c.b16 %v1832_v1, %v1831_v3  ;;  %v1272_v50 = vld [vmem:[#allocation2 + $0x50] sm:$0x3] }
  0xce   : > { %v1385_v7 = vpack.c.b16 %v1372_v0, %v1371_v63 }
  0xcf   : > { %2619 = vmatpush.bf16.msra.mxu3 %v3903_v6  ;;  %2869 = vmatpush.bf16.msra.mxu0 %v3911_v13  ;;  %v1265_v6 = vld [vmem:[#allocation2 + $0x24] sm:$0xc]  ;;  %v1266_v13 = vld [vmem:[#allocation2 + $0x2c] sm:$0x3] }
  0xd0   : > { %v3372_v21 = vrot.slane %v1265_v6, 10  ;;  %v1320_v23 = vrot.slane %v1266_v13, 6  ;;  %v3853_v6 = vld [vmem:[#allocation2 + $0x48] sm:$0xff] }
  0xd1   : > { %2354 = vmatpush.bf16.msra.mxu2 %v3894_v18  ;;  %2159 = vmatpush.bf16.msra.mxu1 %v3878_v24  ;;  %v3892_v18 = vld [vmem:[%s5005_s5 + $0x198] sm:$0xff] }
  0xd2   : > { %v3876_v24 = vld [vmem:[%s5005_s5 + $0x158] sm:$0xff]  ;;  %v1318_v29 = vsel %vm4559_vm8, %v3372_v21, %v1317_v12  ;;  %v1321_v30 = vsel %vm4559_vm8, %v1319_v22, %v1320_v23  ;;  %v1721_v22 = vld [vmem:[#allocation2 + $0x54] sm:$0xe] }
  0xd3   : > { %2620 = vmatpush.bf16.msra.mxu3 %v3902_v25  ;;  %2870 = vmatpush.bf16.msra.mxu0 %v3910_v26  ;;  %v3508_v25 = vrot.slane %v1715_v19, 9  ;;  %v1779_v26 = vrot.slane %v1777_v14, 4  ;;  %v1373_v33 = vunpack.c.l.b16 %v1318_v29  ;;  %v1374_v35 = vunpack.c.l.b16 %v1321_v30  ;;  %v1269_v19 = vld [vmem:[#allocation2 + $0x3c] sm:$0xc]  ;;  %v1723_v23 = vld [vmem:[#allocation2 + $0x5c] sm:$0x1] }
  0xd4   : > { %v3874_v29 = vld [vmem:[%s5005_s5 + $0x148] sm:$0xff] }
  0xd5   : > { %2355 = vmatpush.bf16.msra.mxu2 %v3893_v51  ;;  %2160 = vmatpush.bf16.msra.mxu1 %v3877_v53  ;;  %v1778_v31 = vsel %vm4428_vm5, %v3508_v25, %v1777_v14  ;;  %v1781_v32 = vsel %vm4428_vm5, %v1779_v26, %v1780_v27  ;;  %v1386_v42 = vpack.c.b16 %v1374_v35, %v1373_v33  ;;  %v3373_v51 = vrot.slane %v1267_v46, 10  ;;  %v3890_v25 = vld [vmem:[%s5005_s5 + $0x188] sm:$0xff]  ;;  %v3854_v46 = vld [vmem:[#allocation2 + $0x54] sm:$0xff] }
  0xd6   : > { %v1327_v53 = vrot.slane %v1268_v47, 6  ;;  %v1331_v14 = vrot.slane %v4459_v4, 6  ;;  %v3898_v4 = vld [vmem:[%s5005_s5 + $0x1c8] sm:$0xff]  ;;  %v3510_v26 = vrot.slane %v1721_v22, 9  ;;  %v1345_v22 = vrot.slane %v4464_v5, 6 }
  0xd7   : > { %2621 = vmatpush.bf16.msra.mxu3 %v3901_v15  ;;  %2871 = vmatpush.bf16.msra.mxu0 %v3909_v57  ;;  %v1326_v15 = vrot.slane %v1324_v45, 4  ;;  %v1325_v61 = vsel %vm4559_vm8, %v3373_v51, %v1324_v45  ;;  %v3906_v35 = vld [vmem:[%s5005_s5 + $0x208] sm:$0xff] }
  0xd8   : > { %1223 = vmatmul.bf16.gmra.mxu1 %v3818_v38  ;;  %1460 = vmatmul.bf16.gmra.mxu2 %v1384_v39  ;;  %v1833_v38 = vunpack.c.l.b16 %v1778_v31  ;;  %v1834_v39 = vunpack.c.l.b16 %v1781_v32  ;;  %v1375_v3 = vunpack.c.l.b16 %v1325_v61  ;;  %v3873_v61 = vld [vmem:[%s5005_s5 + $0x140] sm:$0xff] }
  0xd9   : > { %2356 = vmatpush.bf16.msra.mxu2 %v3892_v18  ;;  %2161 = vmatpush.bf16.msra.mxu1 %v3876_v24  ;;  %v1328_v62 = vsel %vm4559_vm8, %v1326_v15, %v1327_v53  ;;  %v3374_v18 = vrot.slane %v1269_v19, 10  ;;  %v1334_v24 = vrot.slane %v1270_v20, 6  ;;  %v1724_v15 = vld [vmem:[#allocation2 + $0x60] sm:$0xe]  ;;  %v1726_v53 = vld [vmem:[#allocation2 + $0x68] sm:$0x1] }
  0xda   : > { %1654 = vmatmul.bf16.gmra.mxu3 %v3850_v40  ;;  %1920 = vmatmul.bf16.gmra.mxu0 %v1844_v41  ;;  %v4691_v40 = vld [vmem:[#allocation2 + $0x4c] sm:$0xf]  ;;  %v3820_v41 = vld [vmem:[#allocation2 + $0x24] sm:$0xff]  ;;  %v1846_v44 = vpack.c.b16 %v1834_v39, %v1833_v38  ;;  %v1376_v1 = vunpack.c.l.b16 %v1328_v62 }
  0xdb   : > { %2622 = vmatpush.bf16.msra.mxu3 %v3900_v2  ;;  %2872 = vmatpush.bf16.msra.mxu0 %v3908_v28  ;;  %v1784_v48 = vrot.slane %v4691_v40, 5  ;;  %v1333_v2 = vrot.slane %v1331_v14, 4  ;;  %v1794_v28 = vrot.slane %v1723_v23, 5  ;;  %v1332_v30 = vsel %vm4559_vm8, %v3374_v18, %v1331_v14  ;;  %v3855_v20 = vld [vmem:[#allocation2 + $0x60] sm:$0xff]  ;;  %v1273_v18 = vld [vmem:[#allocation2 + $0x54] sm:$0xc] }
  0xdc   : > { %v1387_v12 = vpack.c.b16 %v1376_v1, %v1375_v3  ;;  %v1377_v38 = vunpack.c.l.b16 %v1332_v30  ;;  %v3905_v1 = vld [vmem:[%s5005_s5 + $0x200] sm:$0xff] }
  0xdd   : > { %v1786_v57 = vrot.slane %v1784_v48, 4  ;;  %2357 = vmatpush.bf16.msra.mxu2 %v3891_v54  ;;  %2162 = vmatpush.bf16.msra.mxu1 %v3875_v55  ;;  %v1785_v63 = vsel %vm4428_vm5, %v3509_v56, %v1784_v48  ;;  %v1335_v31 = vsel %vm4559_vm8, %v1333_v2, %v1334_v24  ;;  %v1338_v48 = vrot.slane %v4412_v17, 6  ;;  %v3889_v56 = vld [vmem:[%s5005_s5 + $0x180] sm:$0xff]  ;;  %v1274_v2 = vld [vmem:[#allocation2 + $0x5c] sm:$0x3] }
  0xde   : > { %v1378_v39 = vunpack.c.l.b16 %v1335_v31  ;;  %v3375_v54 = vrot.slane %v1271_v49, 10  ;;  %v1341_v55 = vrot.slane %v1272_v50, 6  ;;  %v3897_v17 = vld [vmem:[%s5005_s5 + $0x1c0] sm:$0xff] }
  0xdf   : > { %2623 = vmatpush.bf16.msra.mxu3 %v3899_v16  ;;  %2873 = vmatpush.bf16.msra.mxu0 %v3907_v59  ;;  %v1788_v0 = vsel %vm4428_vm5, %v1786_v57, %v1787_v58  ;;  %v1340_v16 = vrot.slane %v1338_v48, 4  ;;  %v3511_v57 = vrot.slane %v1724_v15, 9  ;;  %v1801_v59 = vrot.slane %v1726_v53, 5 }
  0xe0   : > { %v1388_v45 = vpack.c.b16 %v1378_v39, %v1377_v38  ;;  %v1339_v62 = vsel %vm4559_vm8, %v3375_v54, %v1338_v48  ;;  %v2418_v48 = vld [vmem:[#allocation2 + $0x34] sm:$0xf]  ;;  %v2006_v53 = vrot.slane %v4536_v52, 6 }
  0xe1   : > { %2358 = vmatpush.bf16.msra.mxu2 %v3890_v25  ;;  %2163 = vmatpush.bf16.msra.mxu1 %v3874_v29  ;;  %v1727_v25 = vld [vmem:[#allocation2 + $0x6c] sm:$0xe] }
  0xe2   : > { %v3512_v29 = vrot.slane %v1727_v25, 9  ;;  %v2008_v52 = vrot.slane %v2006_v53, 4 }
  0xe3   : > { %2624 = vmatpush.bf16.msra.mxu3 %v3898_v4  ;;  %2874 = vmatpush.bf16.msra.mxu0 %v3906_v35  ;;  %v1729_v4 = vld [vmem:[#allocation2 + $0x74] sm:$0x1] }
  0xe4   : > { %v1808_v31 = vrot.slane %v1729_v4, 5 }
  0xe5   : > { %2359 = vmatpush.bf16.msra.mxu2 %v3889_v56  ;;  %2164 = vmatpush.bf16.msra.mxu1 %v3873_v61  ;;  %v1972_v56 = vld [vmem:[#allocation2 + $0x18] sm:$0xc]  ;;  %v2717_v61 = vrot.slane %v2418_v48, 6 }
  0xe7   : > { %2625 = vmatpush.bf16.msra.mxu3 %v3897_v17  ;;  %2875 = vmatpush.bf16.msra.mxu0 %v3905_v1  ;;  %v2467_v17 = vrot.slane %v2418_v48, 5 }
  0xe8   : > { %1228 = vmatmul.bf16.gmra.mxu1 %v3819_v9  ;;  %1465 = vmatmul.bf16.gmra.mxu2 %v1385_v7  ;;  %v1835_v9 = vunpack.c.l.b16 %v1785_v63  ;;  %v1836_v7 = vunpack.c.l.b16 %v1788_v0  ;;  %v1342_v63 = vsel %vm4559_vm8, %v1340_v16, %v1341_v55  ;;  %v3856_v16 = vld [vmem:[#allocation2 + $0x6c] sm:$0xff] }
  0xea   : > { %1659 = vmatmul.bf16.gmra.mxu3 %v3851_v10  ;;  %1925 = vmatmul.bf16.gmra.mxu0 %v1845_v11  ;;  %v4715_v10 = vld [vmem:[#allocation2 + $0x58] sm:$0xf]  ;;  %v3821_v11 = vld [vmem:[#allocation2 + $0x30] sm:$0xff]  ;;  %v1847_v13 = vpack.c.b16 %v1836_v7, %v1835_v9  ;;  %v1379_v9 = vunpack.c.l.b16 %v1339_v62  ;;  %v1380_v7 = vunpack.c.l.b16 %v1342_v63 }
  0xeb   : > { %v1791_v21 = vrot.slane %v4715_v10, 5  ;;  %v2419_v62 = vld [vmem:[#allocation2 + $0x38] sm:$0x1]  ;;  %v2683_v63 = vld [vmem:[#allocation2 + $0x30] sm:$0xc] }
  0xec   : > { %v1389_v14 = vpack.c.b16 %v1380_v7, %v1379_v9  ;;  %v2469_v7 = vrot.slane %v2467_v17, 4 }
  0xed   : > { %v1793_v27 = vrot.slane %v1791_v21, 4  ;;  %v1792_v32 = vsel %vm4428_vm5, %v3510_v26, %v1791_v21  ;;  %v3376_v26 = vrot.slane %v1273_v18, 10 }
  0xef   : > { %v1795_v33 = vsel %vm4428_vm5, %v1793_v27, %v1794_v28  ;;  %v1347_v27 = vrot.slane %v1345_v22, 4  ;;  %v1348_v28 = vrot.slane %v1274_v2, 6  ;;  %v1346_v35 = vsel %vm4559_vm8, %v3376_v26, %v1345_v22 }
  0xf1   : > { %v1349_v38 = vsel %vm4559_vm8, %v1347_v27, %v1348_v28 }
  0xf8   : > { %1233 = vmatmul.bf16.gmra.mxu1 %v3820_v41  ;;  %1470 = vmatmul.bf16.gmra.mxu2 %v1386_v42  ;;  %v1837_v41 = vunpack.c.l.b16 %v1792_v32  ;;  %v1838_v42 = vunpack.c.l.b16 %v1795_v33 }
  0xfa   : > { %1664 = vmatmul.bf16.gmra.mxu3 %v3852_v43  ;;  %1930 = vmatmul.bf16.gmra.mxu0 %v1846_v44  ;;  %v4739_v43 = vld [vmem:[#allocation2 + $0x64] sm:$0xf]  ;;  %v3822_v44 = vld [vmem:[#allocation2 + $0x3c] sm:$0xff]  ;;  %v1848_v47 = vpack.c.b16 %v1838_v42, %v1837_v41 }
  0xfb   : > { %v1798_v51 = vrot.slane %v4739_v43, 5 }
  0xfd   : > { %v1800_v58 = vrot.slane %v1798_v51, 4  ;;  %v1799_v0 = vsel %vm4428_vm5, %v3511_v57, %v1798_v51  ;;  %v3824_v51 = vld [vmem:[#allocation2 + $0x54] sm:$0xff] }
  0xff   : > { %v1802_v3 = vsel %vm4428_vm5, %v1800_v58, %v1801_v59  ;;  %v1973_v58 = vld [vmem:[#allocation2 + $0x20] sm:$0x3]  ;;  %v2417_v59 = vld [vmem:[#allocation2 + $0x30] sm:$0xe] }
 0x100   : > { %v2009_v1 = vrot.slane %v1973_v58, 6  ;;  %v3697_v9 = vrot.slane %v2417_v59, 9  ;;  %v2420_v58 = vld [vmem:[#allocation2 + $0x3c] sm:$0xe]  ;;  %v2422_v59 = vld [vmem:[#allocation2 + $0x44] sm:$0x1] }
 0x102   : > { %v2010_v2 = vsel %vm4559_vm8, %v2008_v52, %v2009_v1  ;;  %v2468_v25 = vsel %vm4428_vm5, %v3697_v9, %v2467_v17  ;;  %v3698_v52 = vrot.slane %v2420_v58, 9  ;;  %v2477_v9 = vrot.slane %v2422_v59, 5 }
 0x108   : > { %1238 = vmatmul.bf16.gmra.mxu1 %v3821_v11  ;;  %1475 = vmatmul.bf16.gmra.mxu2 %v1387_v12  ;;  %v1839_v11 = vunpack.c.l.b16 %v1799_v0  ;;  %v1840_v12 = vunpack.c.l.b16 %v1802_v3  ;;  %v2684_v0 = vld [vmem:[#allocation2 + $0x38] sm:$0x3]  ;;  %v3561_v3 = vrot.slane %v1972_v56, 10 }
 0x10a   : > { %1669 = vmatmul.bf16.gmra.mxu3 %v3853_v6  ;;  %1935 = vmatmul.bf16.gmra.mxu0 %v1847_v13  ;;  %v4763_v6 = vld [vmem:[#allocation2 + $0x70] sm:$0xf]  ;;  %v3823_v13 = vld [vmem:[#allocation2 + $0x48] sm:$0xff]  ;;  %v1849_v21 = vpack.c.b16 %v1840_v12, %v1839_v11  ;;  %v2470_v11 = vrot.slane %v2419_v62, 5  ;;  %v3753_v12 = vrot.slane %v2683_v63, 10  ;;  %v2007_v18 = vsel %vm4559_vm8, %v3561_v3, %v2006_v53 }
 0x10b   : > { %v1805_v24 = vrot.slane %v4763_v6, 5  ;;  %v2077_v28 = vunpack.c.l.b16 %v2007_v18  ;;  %v1974_v53 = vld [vmem:[#allocation2 + $0x24] sm:$0xc]  ;;  %v2685_v62 = vld [vmem:[#allocation2 + $0x3c] sm:$0xc] }
 0x10c   : > { %v2471_v4 = vsel %vm4428_vm5, %v2469_v7, %v2470_v11  ;;  %v2718_v26 = vsel %vm4559_vm8, %v3753_v12, %v2717_v61  ;;  %v2686_v63 = vld [vmem:[#allocation2 + $0x44] sm:$0x3]  ;;  %v3754_v7 = vrot.slane %v2685_v62, 10  ;;  %v1976_v62 = vld [vmem:[#allocation2 + $0x30] sm:$0xc] }
 0x10d   : > { %v1807_v30 = vrot.slane %v1805_v24, 4  ;;  %v1806_v41 = vsel %vm4428_vm5, %v3512_v29, %v1805_v24  ;;  %v2078_v29 = vunpack.c.l.b16 %v2010_v2  ;;  %v2727_v12 = vrot.slane %v2686_v63, 6  ;;  %v1977_v63 = vld [vmem:[#allocation2 + $0x38] sm:$0x3] }
 0x10f   : > { %v1809_v42 = vsel %vm4428_vm5, %v1807_v30, %v1808_v31  ;;  %v2538_v30 = vunpack.c.l.b16 %v2468_v25  ;;  %v2539_v31 = vunpack.c.l.b16 %v2471_v4 }
 0x118   : > { %1243 = vmatmul.bf16.gmra.mxu1 %v3822_v44  ;;  %1480 = vmatmul.bf16.gmra.mxu2 %v1388_v45  ;;  %v1381_v44 = vunpack.c.l.b16 %v1346_v35  ;;  %v1382_v45 = vunpack.c.l.b16 %v1349_v38  ;;  %v2788_v35 = vunpack.c.l.b16 %v2718_v26 }
 0x11a   : > { %1674 = vmatmul.bf16.gmra.mxu3 %v3854_v46  ;;  %1940 = vmatmul.bf16.gmra.mxu0 %v1848_v47  ;;  %v1841_v46 = vunpack.c.l.b16 %v1806_v41  ;;  %v1842_v47 = vunpack.c.l.b16 %v1809_v42  ;;  %v1390_v15 = vpack.c.b16 %v1382_v45, %v1381_v44  ;;  %v2421_v41 = vld [vmem:[#allocation2 + $0x40] sm:$0xf]  ;;  %v2093_v45 = vpack.c.b16 %v2078_v29, %v2077_v28 }
 0x11c   : > { %v1850_v55 = vpack.c.b16 %v1842_v47, %v1841_v46  ;;  %v3881_v46 = vld [vmem:[#allocation2 + $0x30] sm:$0xff]  ;;  %v2013_v47 = vrot.slane %v4607_v60, 6 }
 0x11e   : > { %v2015_v3 = vrot.slane %v2013_v47, 4 }
 0x125   : > { %v4765_v19 = vpop.f32.mrf.mxu1 }
 0x127   : > { %v4768_v23 = vpop.f32.mrf.mxu0 }
 0x128   : > { %1248 = vmatmul.bf16.gmra.mxu1 %v3823_v13  ;;  %1485 = vmatmul.bf16.gmra.mxu2 %v1389_v14  ;;  %v2719_v13 = vrot.slane %v2717_v61, 4  ;;  %v2720_v14 = vrot.slane %v2684_v0, 6  ;;  %v2724_v61 = vrot.slane %v2421_v41, 6  ;;  %v3562_v0 = vrot.slane %v1974_v53, 10 }
 0x129   : > { %v2020_v53 = vrot.slane %v4643_v36, 6  ;;  %v3563_v36 = vrot.slane %v1976_v62, 10  ;;  %v2027_v62 = vrot.slane %v4667_v8, 6 }
 0x12a   : > { %1679 = vmatmul.bf16.gmra.mxu3 %v3855_v20  ;;  %1945 = vmatmul.bf16.gmra.mxu0 %v1849_v21  ;;  %v2721_v27 = vsel %vm4559_vm8, %v2719_v13, %v2720_v14  ;;  %v2726_v11 = vrot.slane %v2724_v61, 4  ;;  %v2014_v2 = vsel %vm4559_vm8, %v3562_v0, %v2013_v47 }
 0x12b   : > { %v4771_v32 = vpop.f32.mrf.mxu2  ;;  %v2789_v38 = vunpack.c.l.b16 %v2721_v27 }
 0x12d   : > { %v4773_v5 = vpop.f32.mrf.mxu3  ;;  %v4775_v33 = vpop.f32.mrf.mxu1 }
 0x12f   : > { %v4781_v39 = vpop.f32.mrf.mxu0 }
 0x133   : > { %v4787_v49 = vpop.f32.mrf.mxu2 }
 0x135   : > { %v4789_v50 = vpop.f32.mrf.mxu3  ;;  %v4792_v54 = vpop.f32.mrf.mxu1 }
 0x137   : > { %v4794_v57 = vpop.f32.mrf.mxu0 }
 0x138   : > { %1253 = vmatmul.bf16.gmra.mxu1 %v3824_v51  ;;  %1490 = vmatmul.bf16.gmra.mxu2 %v1390_v15  ;;  %v2554_v51 = vpack.c.b16 %v2539_v31, %v2538_v30  ;;  %v2804_v15 = vpack.c.b16 %v2789_v38, %v2788_v35  ;;  %v2725_v30 = vsel %vm4559_vm8, %v3754_v7, %v2724_v61  ;;  %v2079_v35 = vunpack.c.l.b16 %v2014_v2  ;;  %v2687_v7 = vld [vmem:[#allocation2 + $0x48] sm:$0xc] }
 0x139   : > { %v2728_v31 = vsel %vm4559_vm8, %v2726_v11, %v2727_v12  ;;  %v2790_v47 = vunpack.c.l.b16 %v2725_v30  ;;  %v2688_v11 = vld [vmem:[#allocation2 + $0x50] sm:$0x3]  ;;  %v2022_v12 = vrot.slane %v2020_v53, 4 }
 0x13a   : > { %1684 = vmatmul.bf16.gmra.mxu3 %v3856_v16  ;;  %1950 = vmatmul.bf16.gmra.mxu0 %v1850_v55  ;;  %v1975_v16 = vld [vmem:[#allocation2 + $0x2c] sm:$0x3]  ;;  %v2474_v55 = vrot.slane %v2421_v41, 5 }
 0x13b   : > { %v4796_v20 = vpop.f32.mrf.mxu2  ;;  %v2016_v60 = vrot.slane %v1975_v16, 6 }
 0x13c   : > { %v2476_v1 = vrot.slane %v2474_v55, 4  ;;  %v2475_v4 = vsel %vm4428_vm5, %v3698_v52, %v2474_v55  ;;  %v2423_v52 = vld [vmem:[#allocation2 + $0x48] sm:$0xe] }
 0x13d   : > { %v4798_v21 = vpop.f32.mrf.mxu3  ;;  %v4800_v22 = vpop.f32.mrf.mxu1  ;;  %v2017_v25 = vsel %vm4559_vm8, %v2015_v3, %v2016_v60 }
 0x13e   : > { %v2478_v26 = vsel %vm4428_vm5, %v2476_v1, %v2477_v9  ;;  %v2080_v38 = vunpack.c.l.b16 %v2017_v25  ;;  %v2425_v1 = vld [vmem:[#allocation2 + $0x50] sm:$0x1]  ;;  %v3755_v25 = vrot.slane %v2687_v7, 10  ;;  %v1979_v7 = vld [vmem:[#allocation2 + $0x44] sm:$0x3] }
 0x13f   : > { %v4806_v24 = vpop.f32.mrf.mxu0  ;;  %v2484_v2 = vrot.slane %v2425_v1, 5 }
 0x140   : > { %v2094_v55 = vpack.c.b16 %v2080_v38, %v2079_v35 }
 0x143   : > { %v4816_v42 = vpop.f32.mrf.mxu2 }
 0x145   : > { %v4818_v44 = vpop.f32.mrf.mxu3  ;;  %v1219_v48 = vpop.f32.mrf.mxu1 }
 0x146   : > { %v1220_v56 = vadd.f32 %v1219_v48, %v4768_v23  ;;  %v2791_v48 = vunpack.c.l.b16 %v2728_v31  ;;  %v2021_v31 = vsel %vm4559_vm8, %v3563_v36, %v2020_v53 }
 0x147   : > { %v1916_v17 = vpop.f32.mrf.mxu0 }
 0x148   : > { %2165 = vmatmul.bf16.vlgmr.msra.gmra.mxu1 %v2093_v45  ;;  %2360 = vmatmul.bf16.vlgmr.msra.gmra.mxu2 %v3881_v46  ;;  %v2540_v45 = vunpack.c.l.b16 %v2475_v4  ;;  %v2541_v46 = vunpack.c.l.b16 %v2478_v26  ;;  %v2805_v61 = vpack.c.b16 %v2791_v48, %v2790_v47  ;;  %v2734_v4 = vrot.slane %v2688_v11, 6 }
 0x14a   : > { %2626 = vmatmul.bf16.vlgmr.msra.gmra.mxu3 %v2554_v51  ;;  %2876 = vmatmul.bf16.vlgmr.msra.gmra.mxu0 %v2804_v15  ;;  %v2424_v51 = vld [vmem:[#allocation2 + $0x4c] sm:$0xf]  ;;  %v2555_v59 = vpack.c.b16 %v2541_v46, %v2540_v45 }
 0x14b   : > { %v1456_v23 = vpop.f32.mrf.mxu2  ;;  %v2481_v0 = vrot.slane %v2424_v51, 5  ;;  %v2731_v9 = vrot.slane %v2424_v51, 6 }
 0x14c   : > { %v1496_v13 = vadd.f32 %v1456_v23, %v1220_v56  ;;  %v3882_v56 = vld [vmem:[#allocation2 + $0x3c] sm:$0xff] }
 0x14d   : > { %v1650_v14 = vpop.f32.mrf.mxu3  ;;  %v1221_v18 = vpop.f32.mrf.mxu1  ;;  %v2732_v48 = vsel %vm4559_vm8, %v3755_v25, %v2731_v9  ;;  %v2690_v25 = vld [vmem:[#allocation2 + $0x5c] sm:$0x3] }
 0x14e   : > { %v1690_v27 = vadd.f32 %v1650_v14, %v1496_v13  ;;  %v1222_v28 = vadd.f32 %v1221_v18, %v4781_v39  ;;  %v2023_v13 = vrot.slane %v1977_v63, 6  ;;  %v3699_v14 = vrot.slane %v2423_v52, 9 }
 0x14f   : > { %v1918_v29 = vpop.f32.mrf.mxu0  ;;  %v2483_v18 = vrot.slane %v2481_v0, 4 }
 0x150   : > { %v4835_v41 = vadd.f32 %v1916_v17, %v1690_v27  ;;  %v2482_v35 = vsel %vm4428_vm5, %v3699_v14, %v2481_v0  ;;  %v2428_v14 = vld [vmem:[#allocation2 + $0x5c] sm:$0x1] }
 0x151   : > { %v2485_v38 = vsel %vm4428_vm5, %v2483_v18, %v2484_v2  ;;  %v2689_v2 = vld [vmem:[#allocation2 + $0x54] sm:$0xc] }
 0x153   : > { %v1458_v15 = vpop.f32.mrf.mxu2 }
 0x154   : > { %v1497_v39 = vadd.f32 %v1458_v15, %v1222_v28  ;;  %v2081_v15 = vunpack.c.l.b16 %v2021_v31  ;;  %v3756_v31 = vrot.slane %v2689_v2, 10 }
 0x155   : > { %v1652_v16 = vpop.f32.mrf.mxu3  ;;  %v1224_v58 = vpop.f32.mrf.mxu1 }
 0x156   : > { %v1691_v17 = vadd.f32 %v1652_v16, %v1497_v39  ;;  %v1225_v3 = vadd.f32 %v1224_v58, %v4794_v57  ;;  %v2733_v57 = vrot.slane %v2731_v9, 4  ;;  %v2542_v16 = vunpack.c.l.b16 %v2482_v35  ;;  %v1978_v9 = vld [vmem:[#allocation2 + $0x3c] sm:$0xc] }
 0x157   : > { %v1921_v60 = vpop.f32.mrf.mxu0  ;;  %v3564_v8 = vrot.slane %v1978_v9, 10 }
 0x158   : > { %2170 = vmatmul.bf16.gmra.mxu1 %v2094_v55  ;;  %2365 = vmatmul.bf16.gmra.mxu2 %v3882_v56  ;;  %v4839_v23 = vadd.f32 %v1918_v29, %v1691_v17  ;;  %v2024_v29 = vsel %vm4559_vm8, %v2022_v12, %v2023_v13  ;;  %v2735_v51 = vsel %vm4559_vm8, %v2733_v57, %v2734_v4  ;;  %v2543_v55 = vunpack.c.l.b16 %v2485_v38  ;;  %v3883_v17 = vld [vmem:[#allocation2 + $0x48] sm:$0xff]  ;;  %v2426_v13 = vld [vmem:[#allocation2 + $0x54] sm:$0xe] }
 0x159   : > { %v2082_v53 = vunpack.c.l.b16 %v2024_v29  ;;  %v2792_v56 = vunpack.c.l.b16 %v2732_v48  ;;  %v2793_v58 = vunpack.c.l.b16 %v2735_v51  ;;  %v2029_v57 = vrot.slane %v2027_v62, 4 }
 0x15a   : > { %2631 = vmatmul.bf16.gmra.mxu3 %v2555_v59  ;;  %2881 = vmatmul.bf16.gmra.mxu0 %v2805_v61  ;;  %v2427_v59 = vld [vmem:[#allocation2 + $0x58] sm:$0xf]  ;;  %v2556_v52 = vpack.c.b16 %v2543_v55, %v2542_v16  ;;  %v2741_v29 = vrot.slane %v2690_v25, 6  ;;  %v2028_v48 = vsel %vm4559_vm8, %v3564_v8, %v2027_v62 }
 0x15b   : > { %v1461_v26 = vpop.f32.mrf.mxu2  ;;  %v2095_v0 = vpack.c.b16 %v2082_v53, %v2081_v15  ;;  %v2806_v1 = vpack.c.b16 %v2793_v58, %v2792_v56  ;;  %v2488_v11 = vrot.slane %v2427_v59, 5  ;;  %v2738_v18 = vrot.slane %v2427_v59, 6 }
 0x15c   : > { %v1498_v27 = vadd.f32 %v1461_v26, %v1225_v3  ;;  %v2030_v26 = vrot.slane %v1979_v7, 6  ;;  %v2083_v59 = vunpack.c.l.b16 %v2028_v48 }
 0x15d   : > { %v1655_v28 = vpop.f32.mrf.mxu3  ;;  %v1226_v30 = vpop.f32.mrf.mxu1  ;;  %v2739_v56 = vsel %vm4559_vm8, %v3756_v31, %v2738_v18 }
 0x15e   : > { %v1692_v45 = vadd.f32 %v1655_v28, %v1498_v27  ;;  %v1227_v46 = vadd.f32 %v1226_v30, %v4806_v24  ;;  %v3700_v27 = vrot.slane %v2426_v13, 9  ;;  %v2490_v28 = vrot.slane %v2488_v11, 4 }
 0x15f   : > { %v1923_v47 = vpop.f32.mrf.mxu0  ;;  %v2491_v30 = vrot.slane %v2428_v14, 5  ;;  %v1980_v14 = vld [vmem:[#allocation2 + $0x48] sm:$0xc] }
 0x160   : > { %v4854_v39 = vadd.f32 %v1921_v60, %v1692_v45  ;;  %v2489_v51 = vsel %vm4428_vm5, %v3700_v27, %v2488_v11  ;;  %v3884_v11 = vld [vmem:[#allocation2 + $0x54] sm:$0xff] }
 0x161   : > { %v2492_v15 = vsel %vm4428_vm5, %v2490_v28, %v2491_v30  ;;  %v2691_v28 = vld [vmem:[#allocation2 + $0x60] sm:$0xc]  ;;  %v2692_v30 = vld [vmem:[#allocation2 + $0x68] sm:$0x3] }
 0x162   : > { %v2748_v48 = vrot.slane %v2692_v30, 6  ;;  %v2432_v30 = vld [vmem:[#allocation2 + $0x6c] sm:$0xe] }
 0x163   : > { %v1463_v61 = vpop.f32.mrf.mxu2 }
 0x164   : > { %v1499_v24 = vadd.f32 %v1463_v61, %v1227_v46 }
 0x165   : > { %v1657_v63 = vpop.f32.mrf.mxu3  ;;  %v1229_v3 = vpop.f32.mrf.mxu1 }
 0x166   : > { %v1693_v60 = vadd.f32 %v1657_v63, %v1499_v24  ;;  %v1230_v36 = vadd.f32 %v1229_v3, %v4765_v19  ;;  %v2740_v19 = vrot.slane %v2738_v18, 4  ;;  %v2544_v24 = vunpack.c.l.b16 %v2489_v51  ;;  %v2430_v3 = vld [vmem:[#allocation2 + $0x64] sm:$0xf]  ;;  %v1981_v18 = vld [vmem:[#allocation2 + $0x50] sm:$0x3] }
 0x167   : > { %v1926_v12 = vpop.f32.mrf.mxu0  ;;  %v2545_v63 = vunpack.c.l.b16 %v2492_v15  ;;  %v2495_v2 = vrot.slane %v2430_v3, 5  ;;  %v2745_v27 = vrot.slane %v2430_v3, 6 }
 0x168   : > { %2175 = vmatmul.bf16.gmra.mxu1 %v2095_v0  ;;  %2370 = vmatmul.bf16.gmra.mxu2 %v3883_v17  ;;  %v4858_v4 = vadd.f32 %v1923_v47, %v1693_v60  ;;  %v2031_v47 = vsel %vm4559_vm8, %v2029_v57, %v2030_v26  ;;  %v2742_v58 = vsel %vm4559_vm8, %v2740_v19, %v2741_v29  ;;  %v2794_v0 = vunpack.c.l.b16 %v2739_v56  ;;  %v2429_v57 = vld [vmem:[#allocation2 + $0x60] sm:$0xe]  ;;  %v2431_v26 = vld [vmem:[#allocation2 + $0x68] sm:$0x1] }
 0x169   : > { %v2084_v61 = vunpack.c.l.b16 %v2031_v47  ;;  %v2795_v17 = vunpack.c.l.b16 %v2742_v58  ;;  %v2037_v29 = vrot.slane %v1981_v18, 6  ;;  %v3885_v18 = vld [vmem:[#allocation2 + $0x60] sm:$0xff] }
 0x16a   : > { %2636 = vmatmul.bf16.gmra.mxu3 %v2556_v52  ;;  %2886 = vmatmul.bf16.gmra.mxu0 %v2806_v1  ;;  %v2034_v1 = vrot.slane %v4691_v40, 6  ;;  %v3565_v40 = vrot.slane %v1980_v14, 10 }
 0x16b   : > { %v1466_v35 = vpop.f32.mrf.mxu2  ;;  %v2096_v7 = vpack.c.b16 %v2084_v61, %v2083_v59  ;;  %v2807_v13 = vpack.c.b16 %v2795_v17, %v2794_v0 }
 0x16c   : > { %v1500_v38 = vadd.f32 %v1466_v35, %v1230_v36  ;;  %v2557_v36 = vpack.c.b16 %v2545_v63, %v2544_v24  ;;  %v2036_v31 = vrot.slane %v2034_v1, 4  ;;  %v3701_v35 = vrot.slane %v2429_v57, 9  ;;  %v1982_v57 = vld [vmem:[#allocation2 + $0x54] sm:$0xc] }
 0x16d   : > { %v1660_v45 = vpop.f32.mrf.mxu3  ;;  %v1231_v46 = vpop.f32.mrf.mxu1 }
 0x16e   : > { %v1694_v53 = vadd.f32 %v1660_v45, %v1500_v38  ;;  %v1232_v16 = vadd.f32 %v1231_v46, %v4775_v33  ;;  %v2497_v38 = vrot.slane %v2495_v2, 4  ;;  %v2498_v45 = vrot.slane %v2431_v26, 5  ;;  %v1983_v26 = vld [vmem:[#allocation2 + $0x5c] sm:$0x3] }
 0x16f   : > { %v1928_v55 = vpop.f32.mrf.mxu0  ;;  %v3757_v46 = vrot.slane %v2691_v28, 10  ;;  %v2496_v56 = vsel %vm4428_vm5, %v3701_v35, %v2495_v2  ;;  %v2694_v35 = vld [vmem:[#allocation2 + $0x74] sm:$0x3] }
 0x170   : > { %v4873_v62 = vadd.f32 %v1926_v12, %v1694_v53  ;;  %v2499_v58 = vsel %vm4428_vm5, %v2497_v38, %v2498_v45 }
 0x171   : > { %v2746_v63 = vsel %vm4559_vm8, %v3757_v46, %v2745_v27  ;;  %v2044_v46 = vrot.slane %v1983_v26, 6  ;;  %v3886_v26 = vld [vmem:[#allocation2 + $0x6c] sm:$0xff] }
 0x173   : > { %v1468_v52 = vpop.f32.mrf.mxu2 }
 0x174   : > { %v1501_v33 = vadd.f32 %v1468_v52, %v1232_v16  ;;  %v2035_v16 = vsel %vm4559_vm8, %v3565_v40, %v2034_v1  ;;  %v2546_v1 = vunpack.c.l.b16 %v2496_v56  ;;  %v2434_v40 = vld [vmem:[#allocation2 + $0x74] sm:$0x1] }
 0x175   : > { %v1662_v9 = vpop.f32.mrf.mxu3  ;;  %v1234_v60 = vpop.f32.mrf.mxu1  ;;  %v2085_v17 = vunpack.c.l.b16 %v2035_v16  ;;  %v2755_v16 = vrot.slane %v2694_v35, 6 }
 0x176   : > { %v1695_v12 = vadd.f32 %v1662_v9, %v1501_v33  ;;  %v1235_v25 = vadd.f32 %v1234_v60, %v4792_v54  ;;  %v2747_v54 = vrot.slane %v2745_v27, 4  ;;  %v2547_v33 = vunpack.c.l.b16 %v2499_v58 }
 0x177   : > { %v1931_v8 = vpop.f32.mrf.mxu0  ;;  %v2796_v9 = vunpack.c.l.b16 %v2746_v63 }
 0x178   : > { %2180 = vmatmul.bf16.gmra.mxu1 %v2096_v7  ;;  %2375 = vmatmul.bf16.gmra.mxu2 %v3884_v11  ;;  %v4877_v19 = vadd.f32 %v1928_v55, %v1695_v12  ;;  %v2038_v55 = vsel %vm4559_vm8, %v2036_v31, %v2037_v29  ;;  %v2749_v0 = vsel %vm4559_vm8, %v2747_v54, %v2748_v48  ;;  %v2433_v11 = vld [vmem:[#allocation2 + $0x70] sm:$0xf]  ;;  %v2693_v29 = vld [vmem:[#allocation2 + $0x6c] sm:$0xc]  ;;  %v3702_v54 = vrot.slane %v2432_v30, 9 }
 0x179   : > { %v2086_v3 = vunpack.c.l.b16 %v2038_v55  ;;  %v2797_v7 = vunpack.c.l.b16 %v2749_v0  ;;  %v2558_v12 = vpack.c.b16 %v2547_v33, %v2546_v1  ;;  %v2502_v27 = vrot.slane %v2433_v11, 5 }
 0x17a   : > { %2641 = vmatmul.bf16.gmra.mxu3 %v2557_v36  ;;  %2891 = vmatmul.bf16.gmra.mxu0 %v2807_v13  ;;  %v2041_v36 = vrot.slane %v4715_v10, 6  ;;  %v2752_v31 = vrot.slane %v2433_v11, 6  ;;  %v3566_v10 = vrot.slane %v1982_v57, 10 }
 0x17b   : > { %v1471_v47 = vpop.f32.mrf.mxu2  ;;  %v2097_v14 = vpack.c.b16 %v2086_v3, %v2085_v17  ;;  %v2504_v48 = vrot.slane %v2502_v27, 4  ;;  %v2503_v63 = vsel %vm4428_vm5, %v3702_v54, %v2502_v27  ;;  %v2696_v54 = vld [vmem:[#allocation2 + $0x80] sm:$0x3] }
 0x17c   : > { %v1502_v51 = vadd.f32 %v1471_v47, %v1235_v25  ;;  %v2808_v25 = vpack.c.b16 %v2797_v7, %v2796_v9  ;;  %v2043_v38 = vrot.slane %v2041_v36, 4  ;;  %v2505_v47 = vrot.slane %v2434_v40, 5  ;;  %v1984_v40 = vld [vmem:[#allocation2 + $0x60] sm:$0xc] }
 0x17d   : > { %v1665_v15 = vpop.f32.mrf.mxu3  ;;  %v1236_v53 = vpop.f32.mrf.mxu1  ;;  %v2548_v11 = vunpack.c.l.b16 %v2503_v63 }
 0x17e   : > { %v1696_v59 = vadd.f32 %v1665_v15, %v1502_v51  ;;  %v1237_v61 = vadd.f32 %v1236_v53, %v4800_v22  ;;  %v3758_v15 = vrot.slane %v2693_v29, 10  ;;  %v2754_v53 = vrot.slane %v2752_v31, 4 }
 0x17f   : > { %v1933_v24 = vpop.f32.mrf.mxu0 }
 0x180   : > { %v4892_v52 = vadd.f32 %v1931_v8, %v1696_v59  ;;  %v2753_v3 = vsel %vm4559_vm8, %v3758_v15, %v2752_v31  ;;  %v2756_v1 = vsel %vm4559_vm8, %v2754_v53, %v2755_v16 }
 0x183   : > { %v1473_v60 = vpop.f32.mrf.mxu2 }
 0x184   : > { %v1503_v22 = vadd.f32 %v1473_v60, %v1237_v61  ;;  %v2042_v61 = vsel %vm4559_vm8, %v3566_v10, %v2041_v36  ;;  %v2798_v36 = vunpack.c.l.b16 %v2753_v3  ;;  %v2435_v10 = vld [vmem:[#allocation2 + $0x78] sm:$0xe] }
 0x185   : > { %v1667_v13 = vpop.f32.mrf.mxu3  ;;  %v1239_v2 = vpop.f32.mrf.mxu1  ;;  %v2087_v33 = vunpack.c.l.b16 %v2042_v61  ;;  %v3703_v15 = vrot.slane %v2435_v10, 9  ;;  %v1986_v10 = vld [vmem:[#allocation2 + $0x6c] sm:$0xc] }
 0x186   : > { %v1697_v8 = vadd.f32 %v1667_v13, %v1503_v22  ;;  %v1240_v51 = vadd.f32 %v1239_v2, %v4771_v32  ;;  %v2506_v32 = vsel %vm4428_vm5, %v2504_v48, %v2505_v47  ;;  %v2799_v22 = vunpack.c.l.b16 %v2756_v1 }
 0x187   : > { %v1936_v28 = vpop.f32.mrf.mxu0  ;;  %v2549_v60 = vunpack.c.l.b16 %v2506_v32  ;;  %v2048_v2 = vrot.slane %v4739_v43, 6  ;;  %v3567_v43 = vrot.slane %v1984_v40, 10  ;;  %v3887_v40 = vld [vmem:[#allocation2 + $0x78] sm:$0xff] }
 0x188   : > { %2185 = vmatmul.bf16.gmra.mxu1 %v2097_v14  ;;  %2380 = vmatmul.bf16.gmra.mxu2 %v3885_v18  ;;  %v4895_v45 = vadd.f32 %v1933_v24, %v1697_v8  ;;  %v2045_v24 = vsel %vm4559_vm8, %v2043_v38, %v2044_v46  ;;  %v2436_v14 = vld [vmem:[#allocation2 + $0x7c] sm:$0xf]  ;;  %v2809_v30 = vpack.c.b16 %v2799_v22, %v2798_v36  ;;  %v2437_v38 = vld [vmem:[#allocation2 + $0x80] sm:$0x1] }
 0x189   : > { %v2088_v9 = vunpack.c.l.b16 %v2045_v24  ;;  %v2559_v8 = vpack.c.b16 %v2549_v60, %v2548_v11  ;;  %v2509_v31 = vrot.slane %v2436_v14, 5  ;;  %v2759_v46 = vrot.slane %v2436_v14, 6 }
 0x18a   : > { %2646 = vmatmul.bf16.gmra.mxu3 %v2558_v12  ;;  %2896 = vmatmul.bf16.gmra.mxu0 %v2808_v25  ;;  %v2050_v48 = vrot.slane %v2048_v2, 4  ;;  %v2512_v16 = vrot.slane %v2437_v38, 5  ;;  %v2049_v32 = vsel %vm4559_vm8, %v3567_v43, %v2048_v2  ;;  %v2440_v43 = vld [vmem:[#allocation2 + $0x8c] sm:$0x1] }
 0x18b   : > { %v1476_v55 = vpop.f32.mrf.mxu2  ;;  %v2098_v57 = vpack.c.b16 %v2088_v9, %v2087_v33  ;;  %v2511_v53 = vrot.slane %v2509_v31, 4  ;;  %v2510_v3 = vsel %vm4428_vm5, %v3703_v15, %v2509_v31  ;;  %v2089_v60 = vunpack.c.l.b16 %v2049_v32 }
 0x18c   : > { %v1504_v56 = vadd.f32 %v1476_v55, %v1240_v51 }
 0x18d   : > { %v1670_v58 = vpop.f32.mrf.mxu3  ;;  %v1241_v59 = vpop.f32.mrf.mxu1 }
 0x18e   : > { %v1698_v0 = vadd.f32 %v1670_v58, %v1504_v56  ;;  %v1242_v13 = vadd.f32 %v1241_v59, %v4787_v49  ;;  %v2695_v49 = vld [vmem:[#allocation2 + $0x78] sm:$0xc]  ;;  %v2761_v58 = vrot.slane %v2759_v46, 4  ;;  %v2762_v59 = vrot.slane %v2696_v54, 6  ;;  %v2438_v54 = vld [vmem:[#allocation2 + $0x84] sm:$0xe] }
 0x18f   : > { %v1938_v17 = vpop.f32.mrf.mxu0  ;;  %v3759_v56 = vrot.slane %v2695_v49, 10 }
 0x190   : > { %v4910_v7 = vadd.f32 %v1936_v28, %v1698_v0  ;;  %v1985_v28 = vld [vmem:[#allocation2 + $0x68] sm:$0x3]  ;;  %v2763_v11 = vsel %vm4559_vm8, %v2761_v58, %v2762_v59  ;;  %v2519_v58 = vrot.slane %v2440_v43, 5 }
 0x191   : > { %v2051_v51 = vrot.slane %v1985_v28, 6  ;;  %v2760_v9 = vsel %vm4559_vm8, %v3759_v56, %v2759_v46  ;;  %v2801_v2 = vunpack.c.l.b16 %v2763_v11 }
 0x193   : > { %v1478_v18 = vpop.f32.mrf.mxu2 }
 0x194   : > { %v1505_v12 = vadd.f32 %v1478_v18, %v1242_v13  ;;  %v2550_v13 = vunpack.c.l.b16 %v2510_v3  ;;  %v2800_v18 = vunpack.c.l.b16 %v2760_v9 }
 0x195   : > { %v1672_v25 = vpop.f32.mrf.mxu3  ;;  %v1244_v27 = vpop.f32.mrf.mxu1 }
 0x196   : > { %v1699_v29 = vadd.f32 %v1672_v25, %v1505_v12  ;;  %v1245_v55 = vadd.f32 %v1244_v27, %v4796_v20  ;;  %v2513_v20 = vsel %vm4428_vm5, %v2511_v53, %v2512_v16  ;;  %v2439_v25 = vld [vmem:[#allocation2 + $0x88] sm:$0xf] }
 0x197   : > { %v1941_v35 = vpop.f32.mrf.mxu0  ;;  %v2551_v14 = vunpack.c.l.b16 %v2513_v20  ;;  %v2516_v38 = vrot.slane %v2439_v25, 5 }
 0x198   : > { %2190 = vmatmul.bf16.gmra.mxu1 %v2098_v57  ;;  %2385 = vmatmul.bf16.gmra.mxu2 %v3886_v26  ;;  %v4914_v47 = vadd.f32 %v1938_v17, %v1699_v29  ;;  %v2052_v17 = vsel %vm4559_vm8, %v2050_v48, %v2051_v51  ;;  %v2055_v26 = vrot.slane %v4763_v6, 6  ;;  %v2810_v29 = vpack.c.b16 %v2801_v2, %v2800_v18  ;;  %v2698_v51 = vld [vmem:[#allocation2 + $0x8c] sm:$0x3] }
 0x199   : > { %v2090_v36 = vunpack.c.l.b16 %v2052_v17  ;;  %v2560_v31 = vpack.c.b16 %v2551_v14, %v2550_v13  ;;  %v2766_v48 = vrot.slane %v2439_v25, 6  ;;  %v3568_v6 = vrot.slane %v1986_v10, 10 }
 0x19a   : > { %2651 = vmatmul.bf16.gmra.mxu3 %v2559_v8  ;;  %2901 = vmatmul.bf16.gmra.mxu0 %v2809_v30  ;;  %v2057_v15 = vrot.slane %v2055_v26, 4  ;;  %v2518_v56 = vrot.slane %v2516_v38, 4 }
 0x19b   : > { %v1481_v61 = vpop.f32.mrf.mxu2  ;;  %v2099_v30 = vpack.c.b16 %v2090_v36, %v2089_v60 }
 0x19c   : > { %v1506_v24 = vadd.f32 %v1481_v61, %v1245_v55  ;;  %v3704_v55 = vrot.slane %v2438_v54, 9 }
 0x19d   : > { %v1675_v63 = vpop.f32.mrf.mxu3  ;;  %v1246_v0 = vpop.f32.mrf.mxu1 }
 0x19e   : > { %v1700_v1 = vadd.f32 %v1675_v63, %v1506_v24  ;;  %v1247_v12 = vadd.f32 %v1246_v0, %v4816_v42  ;;  %v2697_v42 = vld [vmem:[#allocation2 + $0x84] sm:$0xc]  ;;  %v2768_v24 = vrot.slane %v2766_v48, 4  ;;  %v2769_v63 = vrot.slane %v2698_v51, 6 }
 0x19f   : > { %v1943_v33 = vpop.f32.mrf.mxu0  ;;  %v3760_v61 = vrot.slane %v2697_v42, 10  ;;  %v2517_v20 = vsel %vm4428_vm5, %v3704_v55, %v2516_v38 }
 0x1a0   : > { %v4929_v22 = vadd.f32 %v1941_v35, %v1700_v1  ;;  %v1987_v35 = vld [vmem:[#allocation2 + $0x74] sm:$0x3]  ;;  %v2056_v1 = vsel %vm4559_vm8, %v3568_v6, %v2055_v26  ;;  %v2770_v36 = vsel %vm4559_vm8, %v2768_v24, %v2769_v63  ;;  %v2552_v2 = vunpack.c.l.b16 %v2517_v20 }
 0x1a1   : > { %v2058_v16 = vrot.slane %v1987_v35, 6  ;;  %v2767_v60 = vsel %vm4559_vm8, %v3760_v61, %v2766_v48  ;;  %v2091_v13 = vunpack.c.l.b16 %v2056_v1 }
 0x1a2   : > { %v2802_v25 = vunpack.c.l.b16 %v2767_v60 }
 0x1a3   : > { %v1483_v57 = vpop.f32.mrf.mxu2 }
 0x1a4   : > { %v1507_v27 = vadd.f32 %v1483_v57, %v1247_v12  ;;  %v2803_v57 = vunpack.c.l.b16 %v2770_v36 }
 0x1a5   : > { %v1677_v8 = vpop.f32.mrf.mxu3  ;;  %v1249_v28 = vpop.f32.mrf.mxu1 }
 0x1a6   : > { %v1701_v46 = vadd.f32 %v1677_v8, %v1507_v27  ;;  %v1250_v59 = vadd.f32 %v1249_v28, %v4773_v5  ;;  %v2520_v5 = vsel %vm4428_vm5, %v2518_v56, %v2519_v58 }
 0x1a7   : > { %v1946_v49 = vpop.f32.mrf.mxu0  ;;  %v2553_v12 = vunpack.c.l.b16 %v2520_v5 }
 0x1a8   : > { %2195 = vmatmul.bf16.gmra.mxu1 %v2099_v30  ;;  %2390 = vmatmul.bf16.gmra.mxu2 %v3887_v40  ;;  %v4933_v53 = vadd.f32 %v1943_v33, %v1701_v46  ;;  %v2059_v33 = vsel %vm4559_vm8, %v2057_v15, %v2058_v16  ;;  %v3888_v40 = vld [vmem:[#allocation2 + $0x84] sm:$0xff] }
 0x1a9   : > { %v2092_v14 = vunpack.c.l.b16 %v2059_v33 }
 0x1aa   : > { %2656 = vmatmul.bf16.gmra.mxu3 %v2560_v31  ;;  %2906 = vmatmul.bf16.gmra.mxu0 %v2810_v29  ;;  %v2561_v31 = vpack.c.b16 %v2553_v12, %v2552_v2  ;;  %v2811_v29 = vpack.c.b16 %v2803_v57, %v2802_v25 }
 0x1ab   : > { %v1486_v0 = vpop.f32.mrf.mxu2  ;;  %v2100_v30 = vpack.c.b16 %v2092_v14, %v2091_v13 }
 0x1ac   : > { %v1508_v32 = vadd.f32 %v1486_v0, %v1250_v59 }
 0x1ad   : > { %v1680_v17 = vpop.f32.mrf.mxu3  ;;  %v1251_v3 = vpop.f32.mrf.mxu1 }
 0x1ae   : > { %v1702_v9 = vadd.f32 %v1680_v17, %v1508_v32  ;;  %v1252_v26 = vadd.f32 %v1251_v3, %v4789_v50 }
 0x1af   : > { %v1948_v11 = vpop.f32.mrf.mxu0 }
 0x1b0   : > { %v4948_v18 = vadd.f32 %v1946_v49, %v1702_v9 }
 0x1b3   : > { %v1488_v27 = vpop.f32.mrf.mxu2 }
 0x1b4   : > { %v1509_v8 = vadd.f32 %v1488_v27, %v1252_v26 }
 0x1b5   : > { %v1682_v37 = vpop.f32.mrf.mxu3  ;;  %v1254_v28 = vpop.f32.mrf.mxu1 }
 0x1b6   : > { %v1703_v34 = vadd.f32 %v1682_v37, %v1509_v8  ;;  %v1255_v38 = vadd.f32 %v1254_v28, %v4798_v21 }
 0x1b7   : > { %v1951_v10 = vpop.f32.mrf.mxu0 }
 0x1b8   : > { %2200 = vmatmul.bf16.gmra.mxu1 %v2100_v30  ;;  %2395 = vmatmul.bf16.gmra.mxu2 %v3888_v40  ;;  %v4951_v35 = vadd.f32 %v1948_v11, %v1703_v34 }
 0x1ba   : > { %2661 = vmatmul.bf16.gmra.mxu3 %v2561_v31  ;;  %2911 = vmatmul.bf16.gmra.mxu0 %v2811_v29 }
 0x1bb   : > { %v1491_v46 = vpop.f32.mrf.mxu2 }
 0x1bc   : > { %v1510_v50 = vadd.f32 %v1491_v46, %v1255_v38 }
 0x1bd   : > { %v1685_v49 = vpop.f32.mrf.mxu3  ;;  %v1256_v54 = vpop.f32.mrf.mxu1 }
 0x1be   : > { %v1704_v43 = vadd.f32 %v1685_v49, %v1510_v50  ;;  %v1257_v51 = vadd.f32 %v1256_v54, %v4818_v44 }
 0x1bf   : > { %v1953_v48 = vpop.f32.mrf.mxu0 }
 0x1c0   : > { %v4954_v42 = vadd.f32 %v1951_v10, %v1704_v43 }
 0x1c3   : > { %v1493_v6 = vpop.f32.mrf.mxu2 }
 0x1c4   : > { %v1511_v15 = vadd.f32 %v1493_v6, %v1257_v51 }
 0x1c5   : > { %v1687_v16 = vpop.f32.mrf.mxu3  ;;  %v2166_v55 = vpop.f32.mrf.mxu1 }
 0x1c6   : > { %v1705_v56 = vadd.f32 %v1687_v16, %v1511_v15  ;;  %v2206_v21 = vadd.f32 %v2166_v55, %v4835_v41 }
 0x1c7   : > { %v2877_v58 = vpop.f32.mrf.mxu0 }
 0x1c8   : > { %v4957_v59 = vadd.f32 %v1953_v48, %v1705_v56 }
 0x1cb   : > { %v2361_v61 = vpop.f32.mrf.mxu2 }
 0x1cc   : > { %v2401_v63 = vadd.f32 %v2361_v61, %v2206_v21 }
 0x1cd   : > { %v2627_v24 = vpop.f32.mrf.mxu3  ;;  %v2168_v0 = vpop.f32.mrf.mxu1 }
 0x1ce   : > { %v2667_v17 = vadd.f32 %v2627_v24, %v2401_v63  ;;  %v2207_v3 = vadd.f32 %v2168_v0, %v4839_v23 }
 0x1cf   : > { %v2879_v32 = vpop.f32.mrf.mxu0 }
 0x1d0   : > { %v2917_v20 = vadd.f32 %v2877_v58, %v2667_v17 }
 0x1d2   : > { %v2987_v36 = vmul.f32 %v2917_v20, %v2917_v20 }
 0x1d3   : > { %v2363_v44 = vpop.f32.mrf.mxu2 }
 0x1d4   : > { %v2402_v1 = vadd.f32 %v2363_v44, %v2207_v3 }
 0x1d5   : > { %v2629_v33 = vpop.f32.mrf.mxu3  ;;  %v2171_v9 = vpop.f32.mrf.mxu1 }
 0x1d6   : > { %v2668_v11 = vadd.f32 %v2629_v33, %v2402_v1  ;;  %v2208_v2 = vadd.f32 %v2171_v9, %v4854_v39 }
 0x1d7   : > { %v2882_v5 = vpop.f32.mrf.mxu0 }
 0x1d8   : > { %v2918_v60 = vadd.f32 %v2879_v32, %v2668_v11 }
 0x1da   : > { %v3964_v13 = vpack.c.bf16 %v2918_v60, %v2917_v20  ;;  %v2965_v41 = vadd.f32 %v2918_v60, %v2917_v20  ;;  %v2988_v14 = vmul.f32 %v2918_v60, %v2918_v60 }
 0x1db   : > { %v2366_v12 = vpop.f32.mrf.mxu2 }
 0x1dc   : > { %3965 = vst [vmem:[%s4253_s19] sm:$0xff] %v3964_v13   ;;  %v3003_v25 = vadd.f32 %v2988_v14, %v2987_v36  ;;  %v2403_v57 = vadd.f32 %v2366_v12, %v2208_v2 }
 0x1dd   : > { %v2632_v26 = vpop.f32.mrf.mxu3  ;;  %v2173_v23 = vpop.f32.mrf.mxu1 }
 0x1de   : > { %v2669_v27 = vadd.f32 %v2632_v26, %v2403_v57  ;;  %v2209_v28 = vadd.f32 %v2173_v23, %v4858_v4 }
 0x1df   : > { %v2884_v8 = vpop.f32.mrf.mxu0 }
 0x1e0   : > { %v2919_v37 = vadd.f32 %v2882_v5, %v2669_v27 }
 0x1e2   : > { %v2966_v30 = vadd.f32 %v2965_v41, %v2919_v37  ;;  %v2989_v40 = vmul.f32 %v2919_v37, %v2919_v37 }
 0x1e3   : > { %v2368_v31 = vpop.f32.mrf.mxu2 }
 0x1e4   : > { %v3004_v29 = vadd.f32 %v3003_v25, %v2989_v40  ;;  %v2404_v34 = vadd.f32 %v2368_v31, %v2209_v28 }
 0x1e5   : > { %v2634_v10 = vpop.f32.mrf.mxu3  ;;  %v2176_v38 = vpop.f32.mrf.mxu1 }
 0x1e6   : > { %v2670_v39 = vadd.f32 %v2634_v10, %v2404_v34  ;;  %v2210_v48 = vadd.f32 %v2176_v38, %v4873_v62 }
 0x1e7   : > { %v2887_v46 = vpop.f32.mrf.mxu0 }
 0x1e8   : > { %v2920_v50 = vadd.f32 %v2884_v8, %v2670_v39 }
 0x1ea   : > { %v3969_v49 = vpack.c.bf16 %v2920_v50, %v2919_v37  ;;  %v2967_v54 = vadd.f32 %v2966_v30, %v2920_v50  ;;  %v2990_v43 = vmul.f32 %v2920_v50, %v2920_v50 }
 0x1eb   : > { %v2371_v51 = vpop.f32.mrf.mxu2 }
 0x1ec   : > { %4010 = vst [vmem:[%s4253_s19 + $0x8] sm:$0xff] %v3969_v49   ;;  %v3005_v6 = vadd.f32 %v3004_v29, %v2990_v43  ;;  %v2405_v15 = vadd.f32 %v2371_v51, %v2210_v48 }
 0x1ed   : > { %v2637_v16 = vpop.f32.mrf.mxu3  ;;  %v2178_v55 = vpop.f32.mrf.mxu1 }
 0x1ee   : > { %v2671_v4 = vadd.f32 %v2637_v16, %v2405_v15  ;;  %v2211_v24 = vadd.f32 %v2178_v55, %v4877_v19 }
 0x1ef   : > { %v2889_v56 = vpop.f32.mrf.mxu0 }
 0x1f0   : > { %v2921_v58 = vadd.f32 %v2887_v46, %v2671_v4 }
 0x1f2   : > { %v2968_v21 = vadd.f32 %v2967_v54, %v2921_v58  ;;  %v2991_v61 = vmul.f32 %v2921_v58, %v2921_v58 }
 0x1f3   : > { %v2373_v63 = vpop.f32.mrf.mxu2 }
 0x1f4   : > { %v3006_v0 = vadd.f32 %v3005_v6, %v2991_v61  ;;  %v2406_v32 = vadd.f32 %v2373_v63, %v2211_v24 }
 0x1f5   : > { %v2639_v17 = vpop.f32.mrf.mxu3  ;;  %v2181_v3 = vpop.f32.mrf.mxu1 }
 0x1f6   : > { %v2672_v62 = vadd.f32 %v2639_v17, %v2406_v32  ;;  %v2212_v11 = vadd.f32 %v2181_v3, %v4892_v52 }
 0x1f7   : > { %v2892_v44 = vpop.f32.mrf.mxu0 }
 0x1f8   : > { %v2922_v1 = vadd.f32 %v2889_v56, %v2672_v62 }
 0x1fa   : > { %v3974_v33 = vpack.c.bf16 %v2922_v1, %v2921_v58  ;;  %v2969_v20 = vadd.f32 %v2968_v21, %v2922_v1  ;;  %v2992_v9 = vmul.f32 %v2922_v1, %v2922_v1 }
 0x1fb   : > { %v2376_v5 = vpop.f32.mrf.mxu2 }
 0x1fc   : > { %4011 = vst [vmem:[%s4253_s19 + $0x10] sm:$0xff] %v3974_v33   ;;  %v3007_v60 = vadd.f32 %v3006_v0, %v2992_v9  ;;  %v2407_v36 = vadd.f32 %v2376_v5, %v2212_v11 }
 0x1fd   : > { %v2642_v13 = vpop.f32.mrf.mxu3  ;;  %v2183_v41 = vpop.f32.mrf.mxu1 }
 0x1fe   : > { %v2673_v19 = vadd.f32 %v2642_v13, %v2407_v36  ;;  %v2213_v57 = vadd.f32 %v2183_v41, %v4895_v45 }
 0x1ff   : > { %v2894_v14 = vpop.f32.mrf.mxu0 }
 0x200   : > { %v2923_v2 = vadd.f32 %v2892_v44, %v2673_v19 }
 0x202   : > { %v2970_v12 = vadd.f32 %v2969_v20, %v2923_v2  ;;  %v2993_v25 = vmul.f32 %v2923_v2, %v2923_v2 }
 0x203   : > { %v2378_v26 = vpop.f32.mrf.mxu2 }
 0x204   : > { %v3008_v23 = vadd.f32 %v3007_v60, %v2993_v25  ;;  %v2408_v27 = vadd.f32 %v2378_v26, %v2213_v57 }
 0x205   : > { %v2644_v8 = vpop.f32.mrf.mxu3  ;;  %v2186_v37 = vpop.f32.mrf.mxu1 }
 0x206   : > { %v2674_v52 = vadd.f32 %v2644_v8, %v2408_v27  ;;  %v2214_v34 = vadd.f32 %v2186_v37, %v4910_v7 }
 0x207   : > { %v2897_v30 = vpop.f32.mrf.mxu0 }
 0x208   : > { %v2924_v40 = vadd.f32 %v2894_v14, %v2674_v52 }
 0x20a   : > { %v3979_v28 = vpack.c.bf16 %v2924_v40, %v2923_v2  ;;  %v2971_v31 = vadd.f32 %v2970_v12, %v2924_v40  ;;  %v2994_v29 = vmul.f32 %v2924_v40, %v2924_v40 }
 0x20b   : > { %v2381_v10 = vpop.f32.mrf.mxu2 }
 0x20c   : > { %4012 = vst [vmem:[%s4253_s19 + $0x18] sm:$0xff] %v3979_v28   ;;  %v3009_v38 = vadd.f32 %v3008_v23, %v2994_v29  ;;  %v2409_v39 = vadd.f32 %v2381_v10, %v2214_v34 }
 0x20d   : > { %v2647_v46 = vpop.f32.mrf.mxu3  ;;  %v2188_v50 = vpop.f32.mrf.mxu1 }
 0x20e   : > { %v2675_v45 = vadd.f32 %v2647_v46, %v2409_v39  ;;  %v2215_v51 = vadd.f32 %v2188_v50, %v4914_v47 }
 0x20f   : > { %v2899_v49 = vpop.f32.mrf.mxu0 }
 0x210   : > { %v2925_v54 = vadd.f32 %v2897_v30, %v2675_v45 }
 0x212   : > { %v2972_v43 = vadd.f32 %v2971_v31, %v2925_v54  ;;  %v2995_v48 = vmul.f32 %v2925_v54, %v2925_v54 }
 0x213   : > { %v2383_v6 = vpop.f32.mrf.mxu2 }
 0x214   : > { %v3010_v15 = vadd.f32 %v3009_v38, %v2995_v48  ;;  %v2410_v16 = vadd.f32 %v2383_v6, %v2215_v51 }
 0x215   : > { %v2649_v55 = vpop.f32.mrf.mxu3  ;;  %v2191_v4 = vpop.f32.mrf.mxu1 }
 0x216   : > { %v2676_v7 = vadd.f32 %v2649_v55, %v2410_v16  ;;  %v2216_v63 = vadd.f32 %v2191_v4, %v4929_v22 }
 0x217   : > { %v2902_v56 = vpop.f32.mrf.mxu0 }
 0x218   : > { %v2926_v58 = vadd.f32 %v2899_v49, %v2676_v7 }
 0x21a   : > { %v3984_v21 = vpack.c.bf16 %v2926_v58, %v2925_v54  ;;  %v2973_v61 = vadd.f32 %v2972_v43, %v2926_v58  ;;  %v2996_v24 = vmul.f32 %v2926_v58, %v2926_v58 }
 0x21b   : > { %v2386_v0 = vpop.f32.mrf.mxu2 }
 0x21c   : > { %4013 = vst [vmem:[%s4253_s19 + $0x20] sm:$0xff] %v3984_v21   ;;  %v3011_v32 = vadd.f32 %v3010_v15, %v2996_v24  ;;  %v2411_v17 = vadd.f32 %v2386_v0, %v2216_v63 }
 0x21d   : > { %v2652_v3 = vpop.f32.mrf.mxu3  ;;  %v2193_v62 = vpop.f32.mrf.mxu1 }
 0x21e   : > { %v2677_v47 = vadd.f32 %v2652_v3, %v2411_v17  ;;  %v2217_v9 = vadd.f32 %v2193_v62, %v4933_v53 }
 0x21f   : > { %v2904_v44 = vpop.f32.mrf.mxu0 }
 0x220   : > { %v2927_v1 = vadd.f32 %v2902_v56, %v2677_v47 }
 0x222   : > { %v2974_v33 = vadd.f32 %v2973_v61, %v2927_v1  ;;  %v2997_v20 = vmul.f32 %v2927_v1, %v2927_v1 }
 0x223   : > { %v2388_v11 = vpop.f32.mrf.mxu2 }
 0x224   : > { %v3012_v5 = vadd.f32 %v3011_v32, %v2997_v20  ;;  %v2412_v60 = vadd.f32 %v2388_v11, %v2217_v9 }
 0x225   : > { %v2654_v36 = vpop.f32.mrf.mxu3  ;;  %v2196_v13 = vpop.f32.mrf.mxu1 }
 0x226   : > { %v2678_v22 = vadd.f32 %v2654_v36, %v2412_v60  ;;  %v2218_v25 = vadd.f32 %v2196_v13, %v4948_v18 }
 0x227   : > { %v2907_v19 = vpop.f32.mrf.mxu0 }
 0x228   : > { %v2928_v41 = vadd.f32 %v2904_v44, %v2678_v22 }
 0x22a   : > { %v3989_v14 = vpack.c.bf16 %v2928_v41, %v2927_v1  ;;  %v2975_v2 = vadd.f32 %v2974_v33, %v2928_v41  ;;  %v2998_v12 = vmul.f32 %v2928_v41, %v2928_v41 }
 0x22b   : > { %v2391_v57 = vpop.f32.mrf.mxu2 }
 0x22c   : > { %4014 = vst [vmem:[%s4253_s19 + $0x28] sm:$0xff] %v3989_v14   ;;  %v3013_v26 = vadd.f32 %v3012_v5, %v2998_v12  ;;  %v2413_v23 = vadd.f32 %v2391_v57, %v2218_v25 }
 0x22d   : > { %v2657_v27 = vpop.f32.mrf.mxu3  ;;  %v2198_v8 = vpop.f32.mrf.mxu1 }
 0x22e   : > { %v2679_v53 = vadd.f32 %v2657_v27, %v2413_v23  ;;  %v2219_v40 = vadd.f32 %v2198_v8, %v4951_v35 }
 0x22f   : > { %v2909_v28 = vpop.f32.mrf.mxu0 }
 0x230   : > { %v2929_v37 = vadd.f32 %v2907_v19, %v2679_v53 }
 0x232   : > { %v2976_v52 = vadd.f32 %v2975_v2, %v2929_v37  ;;  %v2999_v30 = vmul.f32 %v2929_v37, %v2929_v37 }
 0x233   : > { %v2393_v31 = vpop.f32.mrf.mxu2 }
 0x234   : > { %v3014_v29 = vadd.f32 %v3013_v26, %v2999_v30  ;;  %v2414_v34 = vadd.f32 %v2393_v31, %v2219_v40 }
 0x235   : > { %v2659_v10 = vpop.f32.mrf.mxu3  ;;  %v2201_v38 = vpop.f32.mrf.mxu1 }
 0x236   : > { %v2680_v18 = vadd.f32 %v2659_v10, %v2414_v34  ;;  %v2220_v49 = vadd.f32 %v2201_v38, %v4954_v42 }
 0x237   : > { %v2912_v6 = vpop.f32.mrf.mxu0 }
 0x238   : > { %v2930_v39 = vadd.f32 %v2909_v28, %v2680_v18 }
 0x23a   : > { %v3994_v46 = vpack.c.bf16 %v2930_v39, %v2929_v37  ;;  %v2977_v50 = vadd.f32 %v2976_v52, %v2930_v39  ;;  %v3000_v45 = vmul.f32 %v2930_v39, %v2930_v39 }
 0x23b   : > { %v2396_v54 = vpop.f32.mrf.mxu2 }
 0x23c   : > { %4015 = vst [vmem:[%s4253_s19 + $0x30] sm:$0xff] %v3994_v46   ;;  %v3015_v43 = vadd.f32 %v3014_v29, %v3000_v45  ;;  %v2415_v48 = vadd.f32 %v2396_v54, %v2220_v49 }
 0x23d   : > { %v2662_v51 = vpop.f32.mrf.mxu3  ;;  %v2203_v15 = vpop.f32.mrf.mxu1 }
 0x23e   : > { %v2681_v35 = vadd.f32 %v2662_v51, %v2415_v48  ;;  %v2221_v7 = vadd.f32 %v2203_v15, %v4957_v59 }
 0x23f   : > { %v2914_v42 = vpop.f32.mrf.mxu0 }
 0x240   : > { %v2931_v16 = vadd.f32 %v2912_v6, %v2681_v35 }
 0x242   : > { %v2978_v55 = vadd.f32 %v2977_v50, %v2931_v16  ;;  %v3001_v4 = vmul.f32 %v2931_v16, %v2931_v16 }
 0x243   : > { %v2398_v56 = vpop.f32.mrf.mxu2 }
 0x244   : > { %v3016_v58 = vadd.f32 %v3015_v43, %v3001_v4  ;;  %v2416_v21 = vadd.f32 %v2398_v56, %v2221_v7 }
 0x245   : > { %v2664_v61 = vpop.f32.mrf.mxu3 }
 0x246   : > { %v2682_v24 = vadd.f32 %v2664_v61, %v2416_v21 }
 0x248   : > { %v2932_v63 = vadd.f32 %v2914_v42, %v2682_v24 }
 0x24a   : > { %v3999_v0 = vpack.c.bf16 %v2932_v63, %v2931_v16  ;;  %v2979_v32 = vadd.f32 %v2978_v55, %v2932_v63  ;;  %v3002_v17 = vmul.f32 %v2932_v63, %v2932_v63 }
 0x24c   : > { %4016 = vst [vmem:[%s4253_s19 + $0x38] sm:$0xff] %v3999_v0   ;;  %v2980_v3 = vrot.slane %v2979_v32, 4  ;;  %v3017_v62 = vadd.f32 %v3016_v58, %v3002_v17 }
 0x24e   : > { %v2981_v47 = vadd.f32 %v2980_v3, %v2979_v32  ;;  %v3018_v44 = vrot.slane %v3017_v62, 4 }
 0x250   : > { %v2982_v1 = vrot.slane %v2981_v47, 2  ;;  %v3019_v33 = vadd.f32 %v3018_v44, %v3017_v62 }
 0x252   : > { %v2983_v59 = vadd.f32 %v2982_v1, %v2981_v47  ;;  %v3020_v20 = vrot.slane %v3019_v33, 2 }
 0x254   : > { %v2984_v9 = vrot.slane %v2983_v59, 1  ;;  %v3021_v11 = vadd.f32 %v3020_v20, %v3019_v33 }
 0x256   : > { %v2985_v5 = vadd.f32 %v2984_v9, %v2983_v59  ;;  %v3022_v60 = vrot.slane %v3021_v11, 1 }
 0x258   : > { %2986 = vst [vmem:[%s4310_s11] sm:$0x1] %v2985_v5  ;;  %v3023_v36 = vadd.f32 %v3022_v60, %v3021_v11 }
 0x25a   : > { %3024 = vst [vmem:[%s4310_s11 + $0x1] sm:$0x1] %v3023_v36 }
 0x25b PF: > { %s18_s28 = sadd.s32 1, %s4124_s28   ;;  %s5016_s24 = smov %s4116_s26 }
 0x25c   : > { %p15_p2 = scmp.ge.s32.totalorder %s18_s28, 6   ;;  %s5017_s25 = smov %s4120_s27 }
 0x25d   : > { %s5018_s26 = smov %s5021_s29  ;;  %s5019_s27 = smov %s5025_s30 }
 0x25e   :  { %17 = sbr.rel (!%p15_p2) target bundleno = 3 (0x3), region = 120 }

</bundles_post_ra>
